<compile_context>
chip_gen: v5e
topology: v5e:2x2
jax: 0.10.0
libtpu: 0.0.40
codegen_flags: <defaults>
</compile_context>

<pallas_src>
import jax
import jax.numpy as jnp
from jax.experimental import pallas as pl
from jax.experimental.pallas import tpu as pltpu


# Below this many total output pixels (N*H*W) we skip Pallas entirely.
_FAST_PATH_PIXELS = 2048
# At/above this many pixels per image we use the one-image-per-step path.
_MIN_P_SINGLE = 1024
# Cap on images per grid step for the batched small-feature-map path
# (bounds the static unroll in the kernel; DMA size is already bounded by
# nb * P <= tile_p pixels).
_MAX_IMAGES_PER_STEP = 16


def _default_tile_p():
    """Pixels per grid step.  Input tile = Cin*tile_p*4 bytes (~7 MiB @ 8192),
    double-buffered by BlockSpec.  On v7x (3.2 TB/s HBM, 64 MiB VMEM) a bigger
    tile shrinks the per-step overhead fraction; 8192 already hides it on
    v5e/v6e, so don't grow it there."""
    try:
        kind = jax.devices()[0].device_kind.lower()
    except Exception:
        kind = ""
    return 16384 if "v7" in kind else 8192


def _round_up(x, m):
    return ((x + m - 1) // m) * m


def conv1x1_relu_kernel(w_ref, b_ref, x_ref, o_ref):
    # w_ref: (Cout, Cin)   resident across the whole grid
    # b_ref: (Cout, 1)     resident; broadcasts along lanes
    # x_ref: (Cin, tp)     current pixel tile (batch dim squeezed)
    # o_ref: (Cout, tp)    lane-dense output tile
    acc = jnp.dot(w_ref[...], x_ref[...], preferred_element_type=jnp.float32)
    acc = acc + b_ref[...]
    o_ref[...] = jnp.maximum(acc, 0.0).astype(o_ref.dtype)


def conv1x1_relu_batched_kernel(w_ref, b_ref, x_ref, o_ref):
    # x_ref: (nb, Cin, P), o_ref: (nb, Cout, P): several small images per step.
    # nb is a small static int, so a Python loop of tiny matmuls is fine; all
    # of the compute hides under the multi-MiB input DMA.
    w = w_ref[...]
    b = b_ref[...]
    for i in range(x_ref.shape[0]):
        acc = jnp.dot(w, x_ref[i], preferred_element_type=jnp.float32) + b
        o_ref[i] = jnp.maximum(acc, 0.0).astype(o_ref.dtype)


def conv2d_1x1_relu(x_nchw, weight_oihw, bias, *, tile_p=None):
    """1x1 conv (stride 1) + ReLU.  NCHW float32 in, NCHW float32 out."""
    N, Cin, H, W = x_nchw.shape
    Cout = weight_oihw.shape[0]
    P = H * W

    w_mat = weight_oihw.reshape(Cout, Cin)

    # ---- Fast path: tiny problem (e.g. the shipped (1, 224, 1, 1)).  The
    # pallas_call launch + pipeline setup would dominate the <1 KiB of work.
    if N * P < _FAST_PATH_PIXELS:
        y = jnp.einsum("oc,ncp->nop", w_mat, x_nchw.reshape(N, Cin, P))
        y = y + bias.reshape(1, Cout, 1)
        return jnp.maximum(y, 0.0).reshape(N, Cout, H, W)

    if tile_p is None:
        tile_p = _default_tile_p()

    x3 = x_nchw.reshape(N, Cin, P)          # free view of NCHW
    b_mat = bias.reshape(Cout, 1)

    # Memory-bound (~3.9 flop/byte): advertise that to XLA's scheduler.
    cost = pl.CostEstimate(
        flops=2 * N * Cout * Cin * P,
        transcendentals=0,
        bytes_accessed=4 * (N * P * (Cin + Cout) + Cout * Cin + Cout),
    )

    if P >= _MIN_P_SINGLE:
        # One image per step; balance pixel tiles into near-equal multiples of
        # 128 (no tiny trailing DMA, even per-core HBM traffic on v7x).
        if P <= tile_p:
            tp = P
        else:
            n_ptiles = pl.cdiv(P, tile_p)
            tp = _round_up(pl.cdiv(P, n_ptiles), 128)
        grid = (N, pl.cdiv(P, tp))

        out = pl.pallas_call(
            conv1x1_relu_kernel,
            out_shape=jax.ShapeDtypeStruct((N, Cout, P), x_nchw.dtype),
            grid=grid,
            in_specs=[
                pl.BlockSpec((Cout, Cin), lambda n, i: (0, 0)),
                pl.BlockSpec((Cout, 1), lambda n, i: (0, 0)),
                pl.BlockSpec((None, Cin, tp), lambda n, i: (n, 0, i)),
            ],
            out_specs=pl.BlockSpec((None, Cout, tp), lambda n, i: (n, 0, i)),
            compiler_params=pltpu.CompilerParams(
                dimension_semantics=("parallel", "parallel"),
                # 2x ~7 MiB (or ~14 MiB on v7x) input buffers need more than
                # the scoped-VMEM default on v5e; 40 MiB still < v7x's 64 MiB.
                vmem_limit_bytes=(40 if tile_p > 8192 else 32) * 1024 * 1024,
            ),
            cost_estimate=cost,
        )(w_mat, b_mat, x3)
    else:
        # Small feature maps with batch: pack several images per grid step so
        # the per-step DMA stays in the MiB range (nb * P <= tile_p pixels).
        nb = max(1, min(N, tile_p // P, _MAX_IMAGES_PER_STEP))
        grid = (pl.cdiv(N, nb),)

        out = pl.pallas_call(
            conv1x1_relu_batched_kernel,
            out_shape=jax.ShapeDtypeStruct((N, Cout, P), x_nchw.dtype),
            grid=grid,
            in_specs=[
                pl.BlockSpec((Cout, Cin), lambda n: (0, 0)),
                pl.BlockSpec((Cout, 1), lambda n: (0, 0)),
                pl.BlockSpec((nb, Cin, P), lambda n: (n, 0, 0)),
            ],
            out_specs=pl.BlockSpec((nb, Cout, P), lambda n: (n, 0, 0)),
            compiler_params=pltpu.CompilerParams(
                dimension_semantics=("parallel",),
                vmem_limit_bytes=32 * 1024 * 1024,
            ),
            cost_estimate=cost,
        )(w_mat, b_mat, x3)

    return out.reshape(N, Cout, H, W)


def _reference(x, weight, bias):
    Cout = weight.shape[0]
    ref = jnp.einsum("nchw,oc->nohw", x, weight[:, :, 0, 0]) \
        + bias.reshape(1, Cout, 1, 1)
    return jnp.maximum(ref, 0.0)


if __name__ == "__main__":
    key = jax.random.PRNGKey(0)
    k_x, k_w, k_b, k_x2, k_x3 = jax.random.split(key, 5)

    # Shapes implied by the PyTorch module: Conv2d(224, 8, 1x1) + ReLU.
    Cin, Cout = 224, 8
    bound = 1.0 / (Cin ** 0.5)
    weight = jax.random.uniform(k_w, (Cout, Cin, 1, 1), dtype=jnp.float32,
                                minval=-bound, maxval=bound)
    bias = jax.random.uniform(k_b, (Cout,), dtype=jnp.float32,
                              minval=-bound, maxval=bound)

    # 1) The module's shipped shape (1, 224, 1, 1): jnp fast path (a pallas
    #    launch would dwarf the 896-byte matmul).
    x = jax.random.normal(k_x, (1, Cin, 1, 1), dtype=jnp.float32)
    out = jax.block_until_ready(conv2d_1x1_relu(x, weight, bias))
    ref = _reference(x, weight, bias)
    assert out.shape == (1, Cout, 1, 1)
    assert jnp.allclose(out, ref, atol=1e-4, rtol=1e-4)

    # 2) Larger spatial extent: Pallas single-image path with balanced pixel
    #    tiles (P = 96*96 = 9216 -> 2 x 4608 per image on v5e/v6e, no partial
    #    trailing tile; single full-extent tile on v7x).
    x2 = jax.random.normal(k_x2, (2, Cin, 96, 96), dtype=jnp.float32)
    out2 = jax.block_until_ready(conv2d_1x1_relu(x2, weight, bias))
    ref2 = _reference(x2, weight, bias)
    assert out2.shape == (2, Cout, 96, 96)
    assert jnp.allclose(out2, ref2, atol=1e-4, rtol=1e-4)

    # 3) Small feature map with batch: Pallas batched path (16 images/step,
    #    second grid step is a partial batch block -> exercises write clipping).
    x3 = jax.random.normal(k_x3, (20, Cin, 16, 16), dtype=jnp.float32)
    out3 = jax.block_until_ready(conv2d_1x1_relu(x3, weight, bias))
    ref3 = _reference(x3, weight, bias)
    assert out3.shape == (20, Cout, 16, 16)
    assert jnp.allclose(out3, ref3, atol=1e-4, rtol=1e-4)

    print("KERNEL_OK")
</pallas_src>

<mosaic_0001>
module attributes {stable_mosaic.version = 11 : i64} {
  func.func @conv1x1_relu_kernel(%arg0: i32, %arg1: i32, %arg2: memref<8x224xf32, #tpu.memory_space<vmem>>, %arg3: memref<8x1xf32, #tpu.memory_space<vmem>>, %arg4: memref<1x224x4608xf32, #tpu.memory_space<vmem>>, %arg5: memref<1x8x4608xf32, #tpu.memory_space<vmem>>) attributes {dimension_semantics = [#tpu.dimension_semantics<parallel>, #tpu.dimension_semantics<parallel>], iteration_bounds = array<i64: 2, 2>, scalar_prefetch = 0 : i64, scratch_operands = 0 : i64, tpu.core_type = #tpu.core_type<tc>, window_params = [{pipeline_mode = #tpu.pipeline_mode<synchronous>, transform_indices = @transform_0, window_bounds = array<i64: 8, 224>}, {pipeline_mode = #tpu.pipeline_mode<synchronous>, transform_indices = @transform_1, window_bounds = array<i64: 8, 1>}, {transform_indices = @transform_2, window_bounds = array<i64: 1, 224, 4608>}, {transform_indices = @transform_3, window_bounds = array<i64: 1, 8, 4608>}]} {
    %c0 = arith.constant 0 : index
    %c0_0 = arith.constant 0 : index
    %0 = vector.load %arg2[%c0, %c0_0] : memref<8x224xf32, #tpu.memory_space<vmem>>, vector<8x224xf32>
    %c0_1 = arith.constant 0 : index
    %c0_2 = arith.constant 0 : index
    %c0_3 = arith.constant 0 : index
    %1 = vector.load %arg4[%c0_1, %c0_2, %c0_3] : memref<1x224x4608xf32, #tpu.memory_space<vmem>>, vector<1x224x4608xf32>
    %2 = vector.shape_cast %1 : vector<1x224x4608xf32> to vector<224x4608xf32>
    %cst = arith.constant dense<0.000000e+00> : vector<8x4608xf32>
    %3 = tpu.matmul %0, %2, %cst {dimension_numbers = #tpu.dot_dimension_numbers<[1], [0], [0], [1], [0, 0, 1, 1], [], []>} : vector<8x224xf32>, vector<224x4608xf32>, vector<8x4608xf32> -> vector<8x4608xf32>
    %c0_4 = arith.constant 0 : index
    %c0_5 = arith.constant 0 : index
    %4 = vector.load %arg3[%c0_4, %c0_5] : memref<8x1xf32, #tpu.memory_space<vmem>>, vector<8x1xf32>
    %5 = vector.broadcast %4 : vector<8x1xf32> to vector<8x4608xf32>
    %6 = arith.addf %3, %5 : vector<8x4608xf32>
    %cst_6 = arith.constant 0.000000e+00 : f32
    %7 = vector.broadcast %cst_6 : f32 to vector<8x4608xf32>
    %8 = arith.maximumf %6, %7 : vector<8x4608xf32>
    %c0_7 = arith.constant 0 : index
    %c0_8 = arith.constant 0 : index
    %c0_9 = arith.constant 0 : index
    %9 = vector.load %arg5[%c0_7, %c0_8, %c0_9] : memref<1x8x4608xf32, #tpu.memory_space<vmem>>, vector<1x8x4608xf32>
    %10 = vector.shape_cast %9 : vector<1x8x4608xf32> to vector<8x4608xf32>
    %11 = vector.shape_cast %8 : vector<8x4608xf32> to vector<1x8x4608xf32>
    tpu.vector_store %arg5[%c0_7, %c0_8, %c0_9], %11 {strides = array<i32>} : memref<1x8x4608xf32, #tpu.memory_space<vmem>>, vector<1x8x4608xf32>,
    return
  }
  func.func @transform_0(%arg0: i32, %arg1: i32) -> (i32, i32) {
    %c0_i32 = arith.constant 0 : i32
    %c0_i32_0 = arith.constant 0 : i32
    %c0_i32_1 = arith.constant 0 : i32
    return %c0_i32, %c0_i32_0 : i32, i32
  }
  func.func @transform_1(%arg0: i32, %arg1: i32) -> (i32, i32) {
    %c0_i32 = arith.constant 0 : i32
    %c0_i32_0 = arith.constant 0 : i32
    %c0_i32_1 = arith.constant 0 : i32
    return %c0_i32, %c0_i32_0 : i32, i32
  }
  func.func @transform_2(%arg0: i32, %arg1: i32) -> (i32, i32, i32) {
    %c0_i32 = arith.constant 0 : i32
    %c0_i32_0 = arith.constant 0 : i32
    return %arg0, %c0_i32, %arg1 : i32, i32, i32
  }
  func.func @transform_3(%arg0: i32, %arg1: i32) -> (i32, i32, i32) {
    %c0_i32 = arith.constant 0 : i32
    %c0_i32_0 = arith.constant 0 : i32
    return %arg0, %c0_i32, %arg1 : i32, i32, i32
  }
}

</mosaic_0001>

<bundles_post_ra>
// kernel: tpu_custom_call.1
= control target key start
LH: loop header
LB: loop body
LE: loop exit
PB: predicated region body
PF: predicated region fallthrough
CT: control target
= control target key end

     0   :  { %s4607_s0 = inlined_call_operand.hbm [shape: f32[8,224], index: 0, kind: input, shape index: {}]   ;;  %s4608_s1 = inlined_call_operand.vmem [shape: f32[8,1], index: 1, kind: input, shape index: {}]   ;;  %s4609_s2 = inlined_call_operand.hbm [shape: f32[2,224,9216], index: 2, kind: input, shape index: {}]   ;;  %s4610_s3 = inlined_call_operand.hbm [shape: f32[2,8,9216], index: 3, kind: output, shape index: {}]  }
   0x1   :  { %4620 = sst [smem:[#allocation17_spill]] %s4607_s0 }
   0x2   :  { %4621 = sst [smem:[#allocation18_spill]] %s4610_s3 }
   0x3   :  { %8 = vsyncpa [#allocation3], 0 }
   0x4   :  { %9 = vsyncpa [#allocation6], 0 }
   0x5   :  { %11 = vsyncpa [#allocation6 + $0x1], 0 }
   0x6   :  { %12 = vsyncpa [#allocation4], 0 }
   0x7   :  { %14 = vsyncpa [#allocation4 + $0x1], 0  ;;  %s3217_s12 = smov 0   ;;  %s3219_s13 = smov 0  }
   0x8   :  { %s3221_s14 = smov 0   ;;  %s3223_s15 = smov 0  }
   0x9   :  { %s3225_s16 = smov 0   ;;  %s3227_s17 = smov 0  }
   0xa   :  { %s3229_s18 = smov 0   ;;  %s3231_s19 = smov 0  }
   0xb LB: > { %4622 = sst [smem:[#allocation11_spill]] %s3162_s12  ;;  %s2876_s20 = sadd.s32 4294967295, %s3190_s19   ;;  %s3190_s19 = sphi %s3231_s19, %s4649_s19   ;;  %s3186_s18 = sphi %s3229_s18, %s4648_s18   ;;  %s3182_s17 = sphi %s3227_s17, %s4643_s17   ;;  %s3178_s16 = sphi %s3225_s16, %s4647_s16   ;;  %s3174_s15 = sphi %s3223_s15, %s4642_s15   ;;  %s3170_s14 = sphi %s3221_s14, %s4646_s14   ;;  %s3166_s13 = sphi %s3219_s13, %s4645_s13   ;;  %s3162_s12 = sphi %s3217_s12, %s4644_s12  }
   0xc   : > { %4623 = sst [smem:[#allocation12_spill]] %s3182_s17  ;;  %s2877_s21 = sadd.s32 4294967294, %s3190_s19  }
   0xd   : > { %4624 = sst [smem:[#allocation13_spill]] %s3190_s19  ;;  %p90_p0 = scmp.ne.s32.totalorder %s3170_s14, %s3166_s13 }
   0xe   : > { %p91_p1 = scmp.eq.s32.totalorder %s3190_s19, 0  ;;  %p96_p2 = scmp.ne.s32.totalorder %s3166_s13, %s3162_s12 }
   0xf   : > { %p3265_p3 = scmp.eq.s32.totalorder %s2876_s20, 0  ;;  %p122_p4 = scmp.eq.s32.totalorder %s2876_s20, 3 }
  0x10   : > { %p3269_p5 = por %p91_p1, %p90_p0  ;;  %p128_p6 = scmp.eq.s32.totalorder %s2877_s21, 3 }
  0x11   : > { %p3275_p7 = por %p3265_p3, %p96_p2  ;;  %p3279_p8 = por %p122_p4, %p90_p0 }
  0x12   : > { %p3283_p9 = por %p128_p6, %p96_p2  ;;  %p2878_p10 = scmp.ge.s32.totalorder %s3190_s19, 1 }
  0x13   : > { %s4628_s26 = scalar_select %p3279_p8, 1, 0 }
  0x14   : > { %s4630_s27 = scalar_select %p3283_p9, 1, 0 }
  0x15   : > { %4629 = sst [smem:[#allocation14_spill]] %s4628_s26  ;;  %p135_p11 = scmp.lt.s32.totalorder %s3190_s19, 5 }
  0x16   : > { %4631 = sst [smem:[#allocation15_spill]] %s4630_s27  ;;  %s3192_s5 = smov [#allocation2]  }
  0x17   : > { %s4632_s0 = sld [smem:[#allocation17_spill]]  ;;  %p3292_p12 = pnand %p2878_p10, %p135_p11 }
  0x18   : > { %s149_s6 = sshll.u32 %s3192_s5, 4  ;;  %p2949_p0 = scmp.lt.s32.totalorder %s3190_s19, 4  ;;  %s150_s6 = int_to_ptr.vmem [resolvable:$true] %s149_s6 }
  0x19   : > { %p2936_p13 = pneg %p3292_p12  ;;  %s29_s8 = sadd.s32 1, %s3182_s17 }
  0x1a   : > { %p3303_p2 = pnand %p2949_p0, %p3269_p5  ;;  %p30_p4 = scmp.ge.s32.totalorder %s29_s8, 2 }
  0x1b   : > { %p2937_p1 = pnand %p2936_p13, %p3265_p3  ;;  %s32_s9 = sadd.s32 1, %s3186_s18 }
  0x1c   : > { %s163_s10 = sand.u32 1, %s3170_s14   ;;  %s168_s11 = smul.u32 36, %s3182_s17 }
  0x1d   : > { %s147_s30 = sshll.u32 %s4632_s0, 4  ;;  %s4651_s8 = smov (%p30_p4, %s29_s8), 0  ;;  %s148_s30 = int_to_ptr.hbm [resolvable:$true] %s147_s30 }
  0x1e   : > { %2939 = dma.hbm_to_vmem [thread:$0]  (!%p2937_p1), %s148_s30, 256, %s150_s6, [#allocation3]  }
  0x1f   : > { %4635 = sst [smem:[#allocation16_spill]] %s4651_s8  ;;  %s4653_s9 = smov (!%p30_p4, %s32_s9), %s3186_s18 }
  0x20   : > { %s79_s20 = ssub.s32 %s3182_s17, %s4651_s8  ;;  %p34_p6 = scmp.ge.s32.totalorder %s4653_s9, 2 }
  0x21   : > { %s2923_s21 = smul.u32 8064, %s163_s10  ;;  %s4636_s17 = sadd.s32 1, %s3170_s14 }
  0x22   : > { %s2924_s24 = smul.u32 2016, %s3186_s18  ;;  %s4655_s9 = smov (%p34_p6, %s4653_s9), 0 }
  0x23   : > { %s78_s29 = ssub.s32 %s3186_s18, %s4655_s9  ;;  %s167_s12 = scalar_lea.vmem [#allocation5], %s2923_s21 }
  0x24   : > { %s172_s28 = sadd.s32 %s2924_s24, %s168_s11  ;;  %s80_s5 = sor.u32 %s79_s20, %s78_s29 }
  0x25   : > { %s2881_s30 = sshll.u32 %s172_s28, 3  ;;  %p81_p5 = scmp.eq.s32.totalorder %s80_s5, 0 }
  0x26   : > { %s174_s0 = scalar_lea.hbm %s4609_s2, %s2881_s30  ;;  %s177_s8 = sshll.u32 %s167_s12, 4  ;;  %s178_s8 = int_to_ptr.vmem [resolvable:$true] %s177_s8 }
  0x27   : > { %s175_s27 = sshll.u32 %s174_s0, 4  ;;  %s164_s26 = scalar_lea.sflag [#allocation6], %s163_s10  ;;  %s176_s27 = int_to_ptr.hbm [resolvable:$true] %s175_s27 }
  0x28   : > { %s3327_s19 = scalar_select %p81_p5, %s3170_s14, %s4636_s17  }
  0x29   : > { %s3193_s3 = smov 9216   ;;  %s3194_s11 = smov 4608  }
  0x2a   : > { %s3195_s24 = smov 288   ;;  %189 = sbr.rel (%p3292_p12) target bundleno = 732 (0x2dc), region = 32 }
  0x2b   : > { %2943 = dma.hbm_to_vmem [thread:$0]  (!%p3303_p2), %s176_s27, 129024, %s178_s8, %s164_s26, %s3193_s3, %s3194_s11, %s3195_s24  }
  0x2f   : > { %3149 = dma.done.wait (%p3265_p3), [#allocation3], 256  }
  0x30   : > { %3151 = vsyncadd (%p3265_p3), [#allocation3], 4294967040  ;;  %s3338_s0 = sand.u32 1, %s3166_s13  }
  0x31   : > { %s2925_s12 = smul.u32 8064, %s3338_s0  ;;  %s197_s17 = scalar_lea.sflag [#allocation6], %s3338_s0 }
  0x33   : > { %s3342_s22 = scalar_lea.vmem [#allocation5], %s2925_s12 }
  0x34   : > { %3153 = dma.done.wait (%p3275_p7), %s197_s17, 129024  }
  0x35   : > { %3155 = vsyncadd (%p3275_p7), %s197_s17, 4294838272  ;;  %v768_v0 = vld [vmem:[%s3342_s22 + $0x10e0] sm:$0xff]  ;;  %v769_v2 = vld [vmem:[%s3342_s22 + $0x10e8] sm:$0xff]  ;;  %vm1242_vm0 = vcmask 785408   ;;  %s2926_s25 = smul.u32 288, %s3338_s0  ;;  %s4637_s21 = sld [smem:[#allocation18_spill]] }
  0x36   : > { %v732_v1 = vld [vmem:[%s3342_s22 + $0xfc0] sm:$0xff]  ;;  %1246 = vmatpush.msra.mxu0 %v768_v0  ;;  %v733_v3 = vld [vmem:[%s3342_s22 + $0xfc8] sm:$0xff]  ;;  %1286 = vmatpush.msra.mxu2 %v769_v2  ;;  %v770_v48 = vld [vmem:[%s3342_s22 + $0x10f0] sm:$0xff]  ;;  %s2766_s27 = smul.u32 36, %s3174_s15  ;;  %s2759_s30 = scalar_lea.sflag [#allocation4], %s3338_s0 }
  0x37   : > { %v696_v4 = vld [vmem:[%s3342_s22 + $0xea0] sm:$0xff]  ;;  %v697_v6 = vld [vmem:[%s3342_s22 + $0xea8] sm:$0xff]  ;;  %v734_v52 = vld [vmem:[%s3342_s22 + $0xfd0] sm:$0xff]  ;;  %s3761_s26 = scalar_lea.vmem [#allocation7], %s2926_s25  ;;  %s2927_s4 = smul.u32 72, %s3178_s16 }
  0x38   : > { %v1200_v5 = vld [vmem:[%s3342_s22 + $0x1e60] sm:$0xff]  ;;  %1247 = vmatpush.msra.mxu0 %v732_v1  ;;  %1287 = vmatpush.msra.mxu2 %v733_v3  ;;  %v661_v10 = vld [vmem:[%s3342_s22 + $0xd88] sm:$0xff]  ;;  %v698_v56 = vld [vmem:[%s3342_s22 + $0xeb0] sm:$0xff]  ;;  %s2774_s28 = sshll.u32 %s3761_s26, 4  ;;  %s2775_s28 = int_to_ptr.vmem [resolvable:$true] %s2774_s28 }
  0x39   : > { %1270 = vmatpush.msra.mxu1 %v1200_v5  ;;  %v1164_v7 = vld [vmem:[%s3342_s22 + $0x1d40] sm:$0xff]  ;;  %v1201_v11 = vld [vmem:[%s3342_s22 + $0x1e68] sm:$0xff]  ;;  %v1202_v58 = vld [vmem:[%s3342_s22 + $0x1e70] sm:$0xff]  ;;  %s2770_s7 = sadd.s32 %s2927_s4, %s2766_s27 }
  0x3a   : > { %v660_v8 = vld [vmem:[%s3342_s22 + $0xd80] sm:$0xff]  ;;  %1248 = vmatpush.msra.mxu0 %v696_v4  ;;  %1288 = vmatpush.msra.mxu2 %v697_v6  ;;  %v1165_v14 = vld [vmem:[%s3342_s22 + $0x1d48] sm:$0xff]  ;;  %v771_v59 = vld [vmem:[%s3342_s22 + $0x10f8] sm:$0xff]  ;;  %s2920_s8 = sshll.u32 %s2770_s7, 3 }
  0x3b   : > { %v1128_v9 = vld [vmem:[%s3342_s22 + $0x1c20] sm:$0xff]  ;;  %1271 = vmatpush.msra.mxu1 %v1164_v7  ;;  %1310 = vmatpush.msra.mxu3 %v1201_v11  ;;  %v625_v15 = vld [vmem:[%s3342_s22 + $0xc68] sm:$0xff]  ;;  %v1203_v61 = vld [vmem:[%s3342_s22 + $0x1e78] sm:$0xff]  ;;  %s2772_s15 = scalar_lea.hbm %s4637_s21, %s2920_s8  ;;  %s3108_s12 = scalar_lea.hbm %s4637_s21, 1152 }
  0x3c   : > { %v624_v12 = vld [vmem:[%s3342_s22 + $0xc60] sm:$0xff]  ;;  %1249 = vmatpush.msra.mxu0 %v660_v8  ;;  %v1129_v16 = vld [vmem:[%s3342_s22 + $0x1c28] sm:$0xff]  ;;  %1289 = vmatpush.msra.mxu2 %v661_v10  ;;  %v662_v62 = vld [vmem:[%s3342_s22 + $0xd90] sm:$0xff]  ;;  %s2776_s29 = sshll.u32 %s2772_s15, 4  ;;  %s2777_s29 = int_to_ptr.hbm [resolvable:$true] %s2776_s29 }
  0x3d   : > { %v1092_v13 = vld [vmem:[%s3342_s22 + $0x1b00] sm:$0xff]  ;;  %1272 = vmatpush.msra.mxu1 %v1128_v9  ;;  %1311 = vmatpush.msra.mxu3 %v1165_v14  ;;  %v589_v19 = vld [vmem:[%s3342_s22 + $0xb48] sm:$0xff]  ;;  %v735_v63 = vld [vmem:[%s3342_s22 + $0xfd8] sm:$0xff]  ;;  %s3102_s5 = sshra.s32 %s2777_s29, 4  ;;  %s3103_s5 = int_to_ptr.hbm [resolvable:$true] %s3102_s5 }
  0x3e   : > { %v588_v17 = vld [vmem:[%s3342_s22 + $0xb40] sm:$0xff]  ;;  %1250 = vmatpush.msra.mxu0 %v624_v12  ;;  %v1093_v20 = vld [vmem:[%s3342_s22 + $0x1b08] sm:$0xff]  ;;  %1290 = vmatpush.msra.mxu2 %v625_v15  ;;  %v1166_v0 = vld [vmem:[%s3342_s22 + $0x1d50] sm:$0xff]  ;;  %s3104_s6 = scalar_lea.hbm %s3103_s5, 288  ;;  %p3109_p11 = scmp.lt.s32.totalorder %s3103_s5, %s4637_s21 }
  0x3f   : > { %v1056_v18 = vld [vmem:[%s3342_s22 + $0x19e0] sm:$0xff]  ;;  %1273 = vmatpush.msra.mxu1 %v1092_v13  ;;  %1312 = vmatpush.msra.mxu3 %v1129_v16  ;;  %v553_v23 = vld [vmem:[%s3342_s22 + $0xa28] sm:$0xff]  ;;  %v1167_v1 = vld [vmem:[%s3342_s22 + $0x1d58] sm:$0xff]  ;;  %p3105_p3 = scmp.ne.s32.totalorder %s3103_s5, %s3104_s6  ;;  %p3110_p12 = scmp.lt.s32.totalorder %s3108_s12, %s3104_s6 }
  0x40   : > { %v552_v21 = vld [vmem:[%s3342_s22 + $0xa20] sm:$0xff]  ;;  %1251 = vmatpush.msra.mxu0 %v588_v17  ;;  %v1057_v24 = vld [vmem:[%s3342_s22 + $0x19e8] sm:$0xff]  ;;  %1291 = vmatpush.msra.mxu2 %v589_v19  ;;  %v626_v2 = vld [vmem:[%s3342_s22 + $0xc70] sm:$0xff] }
  0x41   : > { %v1020_v22 = vld [vmem:[%s3342_s22 + $0x18c0] sm:$0xff]  ;;  %1274 = vmatpush.msra.mxu1 %v1056_v18  ;;  %1313 = vmatpush.msra.mxu3 %v1093_v20  ;;  %v517_v27 = vld [vmem:[%s3342_s22 + $0x908] sm:$0xff]  ;;  %v699_v3 = vld [vmem:[%s3342_s22 + $0xeb8] sm:$0xff]  ;;  %p3106_p7 = pnand %p3105_p3, %p3279_p8  ;;  %p3111_p13 = por %p3110_p12, %p3109_p11 }
  0x42   : > { %v516_v25 = vld [vmem:[%s3342_s22 + $0x900] sm:$0xff]  ;;  %1252 = vmatpush.msra.mxu0 %v552_v21  ;;  %v1021_v28 = vld [vmem:[%s3342_s22 + $0x18c8] sm:$0xff]  ;;  %1292 = vmatpush.msra.mxu2 %v553_v23  ;;  %v1130_v4 = vld [vmem:[%s3342_s22 + $0x1c30] sm:$0xff] }
  0x43   : > { %v984_v26 = vld [vmem:[%s3342_s22 + $0x17a0] sm:$0xff]  ;;  %1275 = vmatpush.msra.mxu1 %v1020_v22  ;;  %1314 = vmatpush.msra.mxu3 %v1057_v24  ;;  %v481_v31 = vld [vmem:[%s3342_s22 + $0x7e8] sm:$0xff]  ;;  %v1131_v5 = vld [vmem:[%s3342_s22 + $0x1c38] sm:$0xff]  ;;  %p3107_p10 = pneg %p3106_p7 }
  0x44   : > { %v480_v29 = vld [vmem:[%s3342_s22 + $0x7e0] sm:$0xff]  ;;  %1253 = vmatpush.msra.mxu0 %v516_v25  ;;  %v985_v32 = vld [vmem:[%s3342_s22 + $0x17a8] sm:$0xff]  ;;  %1293 = vmatpush.msra.mxu2 %v517_v27  ;;  %v590_v6 = vld [vmem:[%s3342_s22 + $0xb50] sm:$0xff] }
  0x45   : > { %v948_v30 = vld [vmem:[%s3342_s22 + $0x1680] sm:$0xff]  ;;  %1276 = vmatpush.msra.mxu1 %v984_v26  ;;  %1315 = vmatpush.msra.mxu3 %v1021_v28  ;;  %v445_v35 = vld [vmem:[%s3342_s22 + $0x6c8] sm:$0xff]  ;;  %v663_v7 = vld [vmem:[%s3342_s22 + $0xd98] sm:$0xff]  ;;  %p3112_p0 = pnand %p3111_p13, %p3107_p10 }
  0x46   : > { %v444_v33 = vld [vmem:[%s3342_s22 + $0x6c0] sm:$0xff]  ;;  %1254 = vmatpush.msra.mxu0 %v480_v29  ;;  %v949_v36 = vld [vmem:[%s3342_s22 + $0x1688] sm:$0xff]  ;;  %1294 = vmatpush.msra.mxu2 %v481_v31  ;;  %v1094_v8 = vld [vmem:[%s3342_s22 + $0x1b10] sm:$0xff] }
  0x47   : > { %v912_v34 = vld [vmem:[%s3342_s22 + $0x1560] sm:$0xff]  ;;  %1277 = vmatpush.msra.mxu1 %v948_v30  ;;  %1316 = vmatpush.msra.mxu3 %v985_v32  ;;  %v409_v39 = vld [vmem:[%s3342_s22 + $0x5a8] sm:$0xff]  ;;  %v1095_v9 = vld [vmem:[%s3342_s22 + $0x1b18] sm:$0xff] }
  0x48   : > { %v408_v37 = vld [vmem:[%s3342_s22 + $0x5a0] sm:$0xff]  ;;  %1255 = vmatpush.msra.mxu0 %v444_v33  ;;  %v913_v40 = vld [vmem:[%s3342_s22 + $0x1568] sm:$0xff]  ;;  %1295 = vmatpush.msra.mxu2 %v445_v35  ;;  %v554_v10 = vld [vmem:[%s3342_s22 + $0xa30] sm:$0xff] }
  0x49   : > { %v876_v38 = vld [vmem:[%s3342_s22 + $0x1440] sm:$0xff]  ;;  %1278 = vmatpush.msra.mxu1 %v912_v34  ;;  %1317 = vmatpush.msra.mxu3 %v949_v36  ;;  %v373_v43 = vld [vmem:[%s3342_s22 + $0x488] sm:$0xff]  ;;  %v627_v11 = vld [vmem:[%s3342_s22 + $0xc78] sm:$0xff] }
  0x4a   : > { %v372_v41 = vld [vmem:[%s3342_s22 + $0x480] sm:$0xff]  ;;  %1256 = vmatpush.msra.mxu0 %v408_v37  ;;  %v877_v44 = vld [vmem:[%s3342_s22 + $0x1448] sm:$0xff]  ;;  %1296 = vmatpush.msra.mxu2 %v409_v39  ;;  %v1058_v12 = vld [vmem:[%s3342_s22 + $0x19f0] sm:$0xff] }
  0x4b   : > { %v840_v42 = vld [vmem:[%s3342_s22 + $0x1320] sm:$0xff]  ;;  %1279 = vmatpush.msra.mxu1 %v876_v38  ;;  %1318 = vmatpush.msra.mxu3 %v913_v40  ;;  %v337_v47 = vld [vmem:[%s3342_s22 + $0x368] sm:$0xff]  ;;  %v1059_v13 = vld [vmem:[%s3342_s22 + $0x19f8] sm:$0xff] }
  0x4c   : > { %v336_v45 = vld [vmem:[%s3342_s22 + $0x360] sm:$0xff]  ;;  %1257 = vmatpush.msra.mxu0 %v372_v41  ;;  %1297 = vmatpush.msra.mxu2 %v373_v43  ;;  %v841_v50 = vld [vmem:[%s3342_s22 + $0x1328] sm:$0xff]  ;;  %v518_v14 = vld [vmem:[%s3342_s22 + $0x910] sm:$0xff] }
  0x4d   : > { %v804_v46 = vld [vmem:[%s3342_s22 + $0x1200] sm:$0xff]  ;;  %1280 = vmatpush.msra.mxu1 %v840_v42  ;;  %1319 = vmatpush.msra.mxu3 %v877_v44  ;;  %v301_v51 = vld [vmem:[%s3342_s22 + $0x248] sm:$0xff]  ;;  %v591_v15 = vld [vmem:[%s3342_s22 + $0xb58] sm:$0xff] }
  0x4e   : > { %v300_v49 = vld [vmem:[%s3342_s22 + $0x240] sm:$0xff]  ;;  %1258 = vmatpush.msra.mxu0 %v336_v45  ;;  %1298 = vmatpush.msra.mxu2 %v337_v47  ;;  %v805_v54 = vld [vmem:[%s3342_s22 + $0x1208] sm:$0xff]  ;;  %v1022_v16 = vld [vmem:[%s3342_s22 + $0x18d0] sm:$0xff] }
  0x4f   : > { %1281 = vmatpush.msra.mxu1 %v804_v46  ;;  %v264_v53 = vld [vmem:[%s3342_s22 + $0x120] sm:$0xff]  ;;  %v265_v55 = vld [vmem:[%s3342_s22 + $0x128] sm:$0xff]  ;;  %1320 = vmatpush.msra.mxu3 %v841_v50  ;;  %v1023_v17 = vld [vmem:[%s3342_s22 + $0x18d8] sm:$0xff] }
  0x50   : > { %1259 = vmatpush.msra.mxu0 %v300_v49  ;;  %v228_v57 = vld [vmem:[%s3342_s22] sm:$0xff]  ;;  %1299 = vmatpush.msra.mxu2 %v301_v51  ;;  %v229_v60 = vld [vmem:[%s3342_s22 + $0x8] sm:$0xff]  ;;  %v482_v18 = vld [vmem:[%s3342_s22 + $0x7f0] sm:$0xff] }
  0x51   : > { %1326 = vmatpush.msrb.mxu1 %v770_v48  ;;  %1321 = vmatpush.msra.mxu3 %v805_v54  ;;  %v555_v19 = vld [vmem:[%s3342_s22 + $0xa38] sm:$0xff]  ;;  %v986_v20 = vld [vmem:[%s3342_s22 + $0x17b0] sm:$0xff]  ;;  %v772_v45 = vld [vmem:[%s3342_s22 + $0x1100] sm:$0xff] }
  0x52   : > { %1260 = vmatpush.msra.mxu0 %v264_v53  ;;  %1300 = vmatpush.msra.mxu2 %v265_v55  ;;  %v987_v21 = vld [vmem:[%s3342_s22 + $0x17b8] sm:$0xff]  ;;  %v446_v22 = vld [vmem:[%s3342_s22 + $0x6d0] sm:$0xff]  ;;  %v773_v46 = vld [vmem:[%s3342_s22 + $0x1108] sm:$0xff] }
  0x53   : > { %1327 = vmatpush.msrb.mxu1 %v734_v52  ;;  %1350 = vmatpush.msrb.mxu3 %v1202_v58  ;;  %v519_v23 = vld [vmem:[%s3342_s22 + $0x918] sm:$0xff]  ;;  %v950_v24 = vld [vmem:[%s3342_s22 + $0x1690] sm:$0xff]  ;;  %v736_v49 = vld [vmem:[%s3342_s22 + $0xfe0] sm:$0xff] }
  0x54   : > { %1261 = vmatpush.msra.mxu0 %v228_v57  ;;  %1301 = vmatpush.msra.mxu2 %v229_v60  ;;  %v951_v25 = vld [vmem:[%s3342_s22 + $0x1698] sm:$0xff]  ;;  %v410_v26 = vld [vmem:[%s3342_s22 + $0x5b0] sm:$0xff]  ;;  %v737_v51 = vld [vmem:[%s3342_s22 + $0xfe8] sm:$0xff] }
  0x55   : > { %1328 = vmatpush.msrb.mxu1 %v698_v56  ;;  %1351 = vmatpush.msrb.mxu3 %v1166_v0  ;;  %v483_v27 = vld [vmem:[%s3342_s22 + $0x7f8] sm:$0xff]  ;;  %v914_v28 = vld [vmem:[%s3342_s22 + $0x1570] sm:$0xff]  ;;  %v700_v53 = vld [vmem:[%s3342_s22 + $0xec0] sm:$0xff] }
  0x56   : > { %1366 = vmatpush.msrb.mxu0 %v771_v59  ;;  %1390 = vmatpush.msrb.mxu2 %v1203_v61  ;;  %v915_v29 = vld [vmem:[%s3342_s22 + $0x1578] sm:$0xff]  ;;  %v374_v30 = vld [vmem:[%s3342_s22 + $0x490] sm:$0xff]  ;;  %v1204_v55 = vld [vmem:[%s3342_s22 + $0x1e80] sm:$0xff] }
  0x57   : > { %1329 = vmatpush.msrb.mxu1 %v662_v62  ;;  %1352 = vmatpush.msrb.mxu3 %v1130_v4  ;;  %v447_v31 = vld [vmem:[%s3342_s22 + $0x6d8] sm:$0xff]  ;;  %v878_v32 = vld [vmem:[%s3342_s22 + $0x1450] sm:$0xff]  ;;  %v701_v56 = vld [vmem:[%s3342_s22 + $0xec8] sm:$0xff] }
  0x58   : > { %1367 = vmatpush.msrb.mxu0 %v735_v63  ;;  %1391 = vmatpush.msrb.mxu2 %v1167_v1  ;;  %v879_v33 = vld [vmem:[%s3342_s22 + $0x1458] sm:$0xff]  ;;  %v338_v34 = vld [vmem:[%s3342_s22 + $0x370] sm:$0xff]  ;;  %v1205_v57 = vld [vmem:[%s3342_s22 + $0x1e88] sm:$0xff] }
  0x59   : > { %1330 = vmatpush.msrb.mxu1 %v626_v2  ;;  %1353 = vmatpush.msrb.mxu3 %v1094_v8  ;;  %v411_v35 = vld [vmem:[%s3342_s22 + $0x5b8] sm:$0xff]  ;;  %v842_v36 = vld [vmem:[%s3342_s22 + $0x1330] sm:$0xff]  ;;  %v664_v58 = vld [vmem:[%s3342_s22 + $0xda0] sm:$0xff] }
  0x5a   : > { %1368 = vmatpush.msrb.mxu0 %v699_v3  ;;  %1392 = vmatpush.msrb.mxu2 %v1131_v5  ;;  %v843_v37 = vld [vmem:[%s3342_s22 + $0x1338] sm:$0xff]  ;;  %v302_v38 = vld [vmem:[%s3342_s22 + $0x250] sm:$0xff]  ;;  %v1168_v59 = vld [vmem:[%s3342_s22 + $0x1d60] sm:$0xff] }
  0x5b   : > { %1331 = vmatpush.msrb.mxu1 %v590_v6  ;;  %1354 = vmatpush.msrb.mxu3 %v1058_v12  ;;  %v375_v39 = vld [vmem:[%s3342_s22 + $0x498] sm:$0xff]  ;;  %v3452_v40 = vld [vmem:[#allocation2] sm:$0xff]  ;;  %v665_v60 = vld [vmem:[%s3342_s22 + $0xda8] sm:$0xff] }
  0x5c   : > { %1369 = vmatpush.msrb.mxu0 %v663_v7  ;;  %1393 = vmatpush.msrb.mxu2 %v1095_v9  ;;  %v806_v41 = vld [vmem:[%s3342_s22 + $0x1210] sm:$0xff]  ;;  %v807_v42 = vld [vmem:[%s3342_s22 + $0x1218] sm:$0xff]  ;;  %v1169_v61 = vld [vmem:[%s3342_s22 + $0x1d68] sm:$0xff] }
  0x5d   : > { %1332 = vmatpush.msrb.mxu1 %v554_v10  ;;  %1355 = vmatpush.msrb.mxu3 %v1022_v16  ;;  %v339_v43 = vld [vmem:[%s3342_s22 + $0x378] sm:$0xff]  ;;  %v266_v48 = vld [vmem:[%s3342_s22 + $0x130] sm:$0xff]  ;;  %v628_v62 = vld [vmem:[%s3342_s22 + $0xc80] sm:$0xff]  ;;  %v3196_v10 = vmov 0  }
  0x5e   : > { %1370 = vmatpush.msrb.mxu0 %v627_v11  ;;  %1394 = vmatpush.msrb.mxu2 %v1059_v13  ;;  %v3457_v44 = vld [vmem:[#allocation2 + $0x8] sm:$0xff]  ;;  %v230_v52 = vld [vmem:[%s3342_s22 + $0x10] sm:$0xff]  ;;  %v1132_v63 = vld [vmem:[%s3342_s22 + $0x1c40] sm:$0xff] }
  0x5f   : > { %1333 = vmatpush.msrb.mxu1 %v518_v14  ;;  %1356 = vmatpush.msrb.mxu3 %v986_v20  ;;  %v303_v47 = vld [vmem:[%s3342_s22 + $0x258] sm:$0xff]  ;;  %v629_v0 = vld [vmem:[%s3342_s22 + $0xc88] sm:$0xff]  ;;  %v592_v2 = vld [vmem:[%s3342_s22 + $0xb60] sm:$0xff] }
  0x60   : > { %1371 = vmatpush.msrb.mxu0 %v591_v15  ;;  %1395 = vmatpush.msrb.mxu2 %v1023_v17  ;;  %v267_v50 = vld [vmem:[%s3342_s22 + $0x138] sm:$0xff]  ;;  %v1133_v1 = vld [vmem:[%s3342_s22 + $0x1c48] sm:$0xff]  ;;  %v1096_v3 = vld [vmem:[%s3342_s22 + $0x1b20] sm:$0xff] }
  0x61   : > { %1334 = vmatpush.msrb.mxu1 %v482_v18  ;;  %1357 = vmatpush.msrb.mxu3 %v950_v24  ;;  %v231_v54 = vld [vmem:[%s3342_s22 + $0x18] sm:$0xff]  ;;  %v593_v4 = vld [vmem:[%s3342_s22 + $0xb68] sm:$0xff]  ;;  %v556_v6 = vld [vmem:[%s3342_s22 + $0xa40] sm:$0xff] }
  0x62   : > { %1372 = vmatpush.msrb.mxu0 %v555_v19  ;;  %1396 = vmatpush.msrb.mxu2 %v987_v21  ;;  %v1097_v5 = vld [vmem:[%s3342_s22 + $0x1b28] sm:$0xff]  ;;  %v1060_v7 = vld [vmem:[%s3342_s22 + $0x1a00] sm:$0xff]  ;;  %v1236_v11 = vld [vmem:[%s4608_s1] sm:$0xff] }
  0x63   : > { %1335 = vmatpush.msrb.mxu1 %v446_v22  ;;  %1358 = vmatpush.msrb.mxu3 %v914_v28  ;;  %v557_v8 = vld [vmem:[%s3342_s22 + $0xa48] sm:$0xff]  ;;  %v520_v12 = vld [vmem:[%s3342_s22 + $0x920] sm:$0xff] }
  0x64   : > { %1373 = vmatpush.msrb.mxu0 %v519_v23  ;;  %1397 = vmatpush.msrb.mxu2 %v951_v25  ;;  %v1061_v9 = vld [vmem:[%s3342_s22 + $0x1a08] sm:$0xff]  ;;  %v1024_v13 = vld [vmem:[%s3342_s22 + $0x18e0] sm:$0xff] }
  0x65   : > { %1336 = vmatpush.msrb.mxu1 %v410_v26  ;;  %1359 = vmatpush.msrb.mxu3 %v878_v32  ;;  %v521_v14 = vld [vmem:[%s3342_s22 + $0x928] sm:$0xff]  ;;  %v484_v16 = vld [vmem:[%s3342_s22 + $0x800] sm:$0xff] }
  0x66   : > { %1374 = vmatpush.msrb.mxu0 %v483_v27  ;;  %1398 = vmatpush.msrb.mxu2 %v915_v29  ;;  %v1025_v15 = vld [vmem:[%s3342_s22 + $0x18e8] sm:$0xff]  ;;  %v988_v17 = vld [vmem:[%s3342_s22 + $0x17c0] sm:$0xff] }
  0x67   : > { %1337 = vmatpush.msrb.mxu1 %v374_v30  ;;  %1360 = vmatpush.msrb.mxu3 %v842_v36  ;;  %v485_v18 = vld [vmem:[%s3342_s22 + $0x808] sm:$0xff]  ;;  %v448_v20 = vld [vmem:[%s3342_s22 + $0x6e0] sm:$0xff] }
  0x68   : > { %1375 = vmatpush.msrb.mxu0 %v447_v31  ;;  %1399 = vmatpush.msrb.mxu2 %v879_v33  ;;  %v989_v19 = vld [vmem:[%s3342_s22 + $0x17c8] sm:$0xff]  ;;  %v952_v21 = vld [vmem:[%s3342_s22 + $0x16a0] sm:$0xff] }
  0x69   : > { %1338 = vmatpush.msrb.mxu1 %v338_v34  ;;  %1302 = vmatmul.f32.vlgmr.msra.gmra.mxu2 %v3452_v40  ;;  %v449_v22 = vld [vmem:[%s3342_s22 + $0x6e8] sm:$0xff]  ;;  %v412_v24 = vld [vmem:[%s3342_s22 + $0x5c0] sm:$0xff] }
  0x6a   : > { %1376 = vmatpush.msrb.mxu0 %v411_v35  ;;  %1400 = vmatpush.msrb.mxu2 %v843_v37  ;;  %v953_v23 = vld [vmem:[%s3342_s22 + $0x16a8] sm:$0xff]  ;;  %v916_v25 = vld [vmem:[%s3342_s22 + $0x1580] sm:$0xff] }
  0x6b   : > { %1339 = vmatpush.msrb.mxu1 %v302_v38  ;;  %1361 = vmatpush.msrb.mxu3 %v806_v41  ;;  %v413_v26 = vld [vmem:[%s3342_s22 + $0x5c8] sm:$0xff]  ;;  %v376_v28 = vld [vmem:[%s3342_s22 + $0x4a0] sm:$0xff]  ;;  %v774_v41 = vld [vmem:[%s3342_s22 + $0x1110] sm:$0xff] }
  0x6c   : > { %1377 = vmatpush.msrb.mxu0 %v375_v39  ;;  %1401 = vmatpush.msrb.mxu2 %v807_v42  ;;  %v917_v27 = vld [vmem:[%s3342_s22 + $0x1588] sm:$0xff]  ;;  %v880_v29 = vld [vmem:[%s3342_s22 + $0x1460] sm:$0xff]  ;;  %v775_v42 = vld [vmem:[%s3342_s22 + $0x1118] sm:$0xff] }
  0x6d   : > { %2885 = vmatmul.msk.f32.vlgmr.msra.gmra.mxu3 %vm1242_vm0, %v3457_v44  ;;  %1340 = vmatpush.msrb.mxu1 %v266_v48  ;;  %v377_v30 = vld [vmem:[%s3342_s22 + $0x4a8] sm:$0xff]  ;;  %v340_v32 = vld [vmem:[%s3342_s22 + $0x380] sm:$0xff] }
  0x6e   : > { %1378 = vmatpush.msrb.mxu0 %v339_v43  ;;  %1406 = vmatpush.msra.mxu3 %v772_v45  ;;  %v881_v31 = vld [vmem:[%s3342_s22 + $0x1468] sm:$0xff]  ;;  %v844_v33 = vld [vmem:[%s3342_s22 + $0x1340] sm:$0xff] }
  0x6f   : > { %1446 = vmatpush.msra.mxu2 %v773_v46  ;;  %1262 = vmatmul.f32.vlgmr.msra.gmra.mxu0 %v3452_v40  ;;  %v341_v34 = vld [vmem:[%s3342_s22 + $0x388] sm:$0xff]  ;;  %v304_v36 = vld [vmem:[%s3342_s22 + $0x260] sm:$0xff]  ;;  %v738_v46 = vld [vmem:[%s3342_s22 + $0xff0] sm:$0xff] }
  0x70   : > { %1379 = vmatpush.msrb.mxu0 %v303_v47  ;;  %1407 = vmatpush.msra.mxu3 %v736_v49  ;;  %v845_v35 = vld [vmem:[%s3342_s22 + $0x1348] sm:$0xff]  ;;  %v808_v37 = vld [vmem:[%s3342_s22 + $0x1220] sm:$0xff]  ;;  %v739_v47 = vld [vmem:[%s3342_s22 + $0xff8] sm:$0xff] }
  0x71   : > { %1447 = vmatpush.msra.mxu2 %v737_v51  ;;  %1341 = vmatpush.msrb.mxu1 %v230_v52  ;;  %v305_v38 = vld [vmem:[%s3342_s22 + $0x268] sm:$0xff]  ;;  %v268_v43 = vld [vmem:[%s3342_s22 + $0x140] sm:$0xff]  ;;  %v1206_v51 = vld [vmem:[%s3342_s22 + $0x1e90] sm:$0xff] }
  0x72   : > { %1380 = vmatpush.msrb.mxu0 %v267_v50  ;;  %1408 = vmatpush.msra.mxu3 %v700_v53  ;;  %v809_v39 = vld [vmem:[%s3342_s22 + $0x1228] sm:$0xff]  ;;  %v232_v48 = vld [vmem:[%s3342_s22 + $0x20] sm:$0xff]  ;;  %v702_v50 = vld [vmem:[%s3342_s22 + $0xed0] sm:$0xff] }
  0x73   : > { %2884 = vmatmul.msk.f32.vlgmr.msra.gmra.mxu1 %vm1242_vm0, %v3457_v44  ;;  %1448 = vmatpush.msra.mxu2 %v701_v56  ;;  %v269_v45 = vld [vmem:[%s3342_s22 + $0x148] sm:$0xff]  ;;  %v703_v52 = vld [vmem:[%s3342_s22 + $0xed8] sm:$0xff] }
  0x74   : > { %1381 = vmatpush.msrb.mxu0 %v231_v54  ;;  %1430 = vmatpush.msra.mxu1 %v1204_v55  ;;  %v233_v49 = vld [vmem:[%s3342_s22 + $0x28] sm:$0xff]  ;;  %v1207_v53 = vld [vmem:[%s3342_s22 + $0x1e98] sm:$0xff]  ;;  %v666_v54 = vld [vmem:[%s3342_s22 + $0xdb0] sm:$0xff] }
  0x75   : > { %1409 = vmatpush.msra.mxu3 %v664_v58  ;;  %1449 = vmatpush.msra.mxu2 %v665_v60  ;;  %v1170_v55 = vld [vmem:[%s3342_s22 + $0x1d70] sm:$0xff]  ;;  %v667_v56 = vld [vmem:[%s3342_s22 + $0xdb8] sm:$0xff] }
  0x76   : > { %1470 = vmatpush.msra.mxu0 %v1205_v57  ;;  %1431 = vmatpush.msra.mxu1 %v1168_v59  ;;  %v1171_v57 = vld [vmem:[%s3342_s22 + $0x1d78] sm:$0xff]  ;;  %v630_v58 = vld [vmem:[%s3342_s22 + $0xc90] sm:$0xff] }
  0x77   : > { %1410 = vmatpush.msra.mxu3 %v628_v62  ;;  %1450 = vmatpush.msra.mxu2 %v629_v0  ;;  %v1134_v59 = vld [vmem:[%s3342_s22 + $0x1c50] sm:$0xff]  ;;  %v631_v60 = vld [vmem:[%s3342_s22 + $0xc98] sm:$0xff] }
  0x78   : > { %1471 = vmatpush.msra.mxu0 %v1169_v61  ;;  %1432 = vmatpush.msra.mxu1 %v1132_v63  ;;  %v1135_v61 = vld [vmem:[%s3342_s22 + $0x1c58] sm:$0xff]  ;;  %v594_v62 = vld [vmem:[%s3342_s22 + $0xb70] sm:$0xff] }
  0x79   : > { %1411 = vmatpush.msra.mxu3 %v592_v2  ;;  %1451 = vmatpush.msra.mxu2 %v593_v4  ;;  %v1098_v63 = vld [vmem:[%s3342_s22 + $0x1b30] sm:$0xff]  ;;  %v595_v0 = vld [vmem:[%s3342_s22 + $0xb78] sm:$0xff] }
  0x7a   : > { %1472 = vmatpush.msra.mxu0 %v1133_v1  ;;  %1433 = vmatpush.msra.mxu1 %v1096_v3  ;;  %v1099_v1 = vld [vmem:[%s3342_s22 + $0x1b38] sm:$0xff]  ;;  %v558_v2 = vld [vmem:[%s3342_s22 + $0xa50] sm:$0xff] }
  0x7b   : > { %3021 = vset.pattern.permute.xlu0 %v3196_v10  ;;  %1412 = vmatpush.msra.mxu3 %v556_v6  ;;  %v1062_v3 = vld [vmem:[%s3342_s22 + $0x1a10] sm:$0xff]  ;;  %v559_v4 = vld [vmem:[%s3342_s22 + $0xa58] sm:$0xff] }
  0x7c   : > { %1473 = vmatpush.msra.mxu0 %v1097_v5  ;;  %1434 = vmatpush.msra.mxu1 %v1060_v7  ;;  %v1063_v5 = vld [vmem:[%s3342_s22 + $0x1a18] sm:$0xff]  ;;  %v522_v6 = vld [vmem:[%s3342_s22 + $0x930] sm:$0xff] }
  0x7d   : > { %1452 = vmatpush.msra.mxu2 %v557_v8  ;;  %1239 = vperm.xlu0 %3021, %v1236_v11   ;;  %v1026_v7 = vld [vmem:[%s3342_s22 + $0x18f0] sm:$0xff]  ;;  %v523_v8 = vld [vmem:[%s3342_s22 + $0x938] sm:$0xff] }
  0x7e   : > { %1474 = vmatpush.msra.mxu0 %v1061_v9  ;;  %1413 = vmatpush.msra.mxu3 %v520_v12  ;;  %v1027_v9 = vld [vmem:[%s3342_s22 + $0x18f8] sm:$0xff]  ;;  %v486_v10 = vld [vmem:[%s3342_s22 + $0x810] sm:$0xff] }
  0x7f   : > { %1435 = vmatpush.msra.mxu1 %v1024_v13  ;;  %1453 = vmatpush.msra.mxu2 %v521_v14  ;;  %v990_v11 = vld [vmem:[%s3342_s22 + $0x17d0] sm:$0xff]  ;;  %v487_v12 = vld [vmem:[%s3342_s22 + $0x818] sm:$0xff] }
  0x80   : > { %1475 = vmatpush.msra.mxu0 %v1025_v15  ;;  %1414 = vmatpush.msra.mxu3 %v484_v16  ;;  %v991_v13 = vld [vmem:[%s3342_s22 + $0x17d8] sm:$0xff]  ;;  %v450_v14 = vld [vmem:[%s3342_s22 + $0x6f0] sm:$0xff] }
  0x81   : > { %1436 = vmatpush.msra.mxu1 %v988_v17  ;;  %1454 = vmatpush.msra.mxu2 %v485_v18  ;;  %v954_v15 = vld [vmem:[%s3342_s22 + $0x16b0] sm:$0xff]  ;;  %v451_v16 = vld [vmem:[%s3342_s22 + $0x6f8] sm:$0xff] }
  0x82   : > { %1476 = vmatpush.msra.mxu0 %v989_v19  ;;  %1415 = vmatpush.msra.mxu3 %v448_v20  ;;  %v955_v17 = vld [vmem:[%s3342_s22 + $0x16b8] sm:$0xff]  ;;  %v414_v18 = vld [vmem:[%s3342_s22 + $0x5d0] sm:$0xff] }
  0x83   : > { %1437 = vmatpush.msra.mxu1 %v952_v21  ;;  %1455 = vmatpush.msra.mxu2 %v449_v22  ;;  %v918_v19 = vld [vmem:[%s3342_s22 + $0x1590] sm:$0xff]  ;;  %v415_v20 = vld [vmem:[%s3342_s22 + $0x5d8] sm:$0xff] }
  0x84   : > { %1477 = vmatpush.msra.mxu0 %v953_v23  ;;  %1416 = vmatpush.msra.mxu3 %v412_v24  ;;  %v919_v21 = vld [vmem:[%s3342_s22 + $0x1598] sm:$0xff]  ;;  %v378_v22 = vld [vmem:[%s3342_s22 + $0x4b0] sm:$0xff] }
  0x85   : > { %1438 = vmatpush.msra.mxu1 %v916_v25  ;;  %1456 = vmatpush.msra.mxu2 %v413_v26  ;;  %v882_v23 = vld [vmem:[%s3342_s22 + $0x1470] sm:$0xff]  ;;  %v379_v24 = vld [vmem:[%s3342_s22 + $0x4b8] sm:$0xff] }
  0x86   : > { %1478 = vmatpush.msra.mxu0 %v917_v27  ;;  %1417 = vmatpush.msra.mxu3 %v376_v28  ;;  %v883_v25 = vld [vmem:[%s3342_s22 + $0x1478] sm:$0xff]  ;;  %v342_v26 = vld [vmem:[%s3342_s22 + $0x390] sm:$0xff] }
  0x87   : > { %1439 = vmatpush.msra.mxu1 %v880_v29  ;;  %1457 = vmatpush.msra.mxu2 %v377_v30  ;;  %v846_v27 = vld [vmem:[%s3342_s22 + $0x1350] sm:$0xff]  ;;  %v343_v28 = vld [vmem:[%s3342_s22 + $0x398] sm:$0xff] }
  0x88   : > { %1479 = vmatpush.msra.mxu0 %v881_v31  ;;  %2886 = vmatmul.msk.f32.vlgmr.msrb.gmra.mxu3 %vm1242_vm0, %v3457_v44  ;;  %v847_v29 = vld [vmem:[%s3342_s22 + $0x1358] sm:$0xff]  ;;  %v306_v30 = vld [vmem:[%s3342_s22 + $0x270] sm:$0xff] }
  0x89   : > { %2887 = vmatmul.msk.f32.vlgmr.msrb.gmra.mxu2 %vm1242_vm0, %v3457_v44  ;;  %1418 = vmatpush.msra.mxu3 %v340_v32  ;;  %v810_v31 = vld [vmem:[%s3342_s22 + $0x1230] sm:$0xff]  ;;  %v307_v32 = vld [vmem:[%s3342_s22 + $0x278] sm:$0xff] }
  0x8a   : > { %1440 = vmatpush.msra.mxu1 %v844_v33  ;;  %1458 = vmatpush.msra.mxu2 %v341_v34  ;;  %v811_v33 = vld [vmem:[%s3342_s22 + $0x1238] sm:$0xff]  ;;  %v776_v34 = vld [vmem:[%s3342_s22 + $0x1120] sm:$0xff] }
  0x8b   : > { %1480 = vmatpush.msra.mxu0 %v845_v35  ;;  %1419 = vmatpush.msra.mxu3 %v304_v36  ;;  %v777_v35 = vld [vmem:[%s3342_s22 + $0x1128] sm:$0xff]  ;;  %v270_v36 = vld [vmem:[%s3342_s22 + $0x150] sm:$0xff] }
  0x8c   : > { %1441 = vmatpush.msra.mxu1 %v808_v37  ;;  %1459 = vmatpush.msra.mxu2 %v305_v38  ;;  %v271_v37 = vld [vmem:[%s3342_s22 + $0x158] sm:$0xff]  ;;  %v740_v38 = vld [vmem:[%s3342_s22 + $0x1000] sm:$0xff] }
  0x8d   : > { %1481 = vmatpush.msra.mxu0 %v809_v39  ;;  %1342 = vmatmul.f32.vlgmr.msrb.gmra.mxu1 %v3452_v40  ;;  %v741_v39 = vld [vmem:[%s3342_s22 + $0x1008] sm:$0xff] }
  0x8e   : > { %1382 = vmatmul.f32.vlgmr.msrb.gmra.mxu0 %v3452_v40  ;;  %1486 = vmatpush.msrb.mxu1 %v774_v41  ;;  %v234_v41 = vld [vmem:[%s3342_s22 + $0x30] sm:$0xff] }
  0x8f   : > { %1526 = vmatpush.msrb.mxu0 %v775_v42  ;;  %1420 = vmatpush.msra.mxu3 %v268_v43  ;;  %v235_v42 = vld [vmem:[%s3342_s22 + $0x38] sm:$0xff]  ;;  %v704_v43 = vld [vmem:[%s3342_s22 + $0xee0] sm:$0xff] }
  0x90   : > { %1460 = vmatpush.msra.mxu2 %v269_v45  ;;  %1487 = vmatpush.msrb.mxu1 %v738_v46  ;;  %v1208_v45 = vld [vmem:[%s3342_s22 + $0x1ea0] sm:$0xff]  ;;  %v705_v46 = vld [vmem:[%s3342_s22 + $0xee8] sm:$0xff] }
  0x91   : > { %1527 = vmatpush.msrb.mxu0 %v739_v47  ;;  %1421 = vmatpush.msra.mxu3 %v232_v48  ;;  %v1209_v47 = vld [vmem:[%s3342_s22 + $0x1ea8] sm:$0xff]  ;;  %v668_v48 = vld [vmem:[%s3342_s22 + $0xdc0] sm:$0xff] }
  0x92   : > { %1461 = vmatpush.msra.mxu2 %v233_v49  ;;  %1488 = vmatpush.msrb.mxu1 %v702_v50  ;;  %v1172_v49 = vld [vmem:[%s3342_s22 + $0x1d80] sm:$0xff]  ;;  %v669_v50 = vld [vmem:[%s3342_s22 + $0xdc8] sm:$0xff] }
  0x93   : > { %1510 = vmatpush.msrb.mxu3 %v1206_v51  ;;  %1528 = vmatpush.msrb.mxu0 %v703_v52  ;;  %v1173_v51 = vld [vmem:[%s3342_s22 + $0x1d88] sm:$0xff]  ;;  %v632_v52 = vld [vmem:[%s3342_s22 + $0xca0] sm:$0xff] }
  0x94   : > { %1550 = vmatpush.msrb.mxu2 %v1207_v53  ;;  %1489 = vmatpush.msrb.mxu1 %v666_v54  ;;  %v1136_v53 = vld [vmem:[%s3342_s22 + $0x1c60] sm:$0xff]  ;;  %v633_v54 = vld [vmem:[%s3342_s22 + $0xca8] sm:$0xff] }
  0x95   : > { %1511 = vmatpush.msrb.mxu3 %v1170_v55  ;;  %1529 = vmatpush.msrb.mxu0 %v667_v56  ;;  %v1137_v55 = vld [vmem:[%s3342_s22 + $0x1c68] sm:$0xff]  ;;  %v596_v56 = vld [vmem:[%s3342_s22 + $0xb80] sm:$0xff] }
  0x96   : > { %1551 = vmatpush.msrb.mxu2 %v1171_v57  ;;  %1490 = vmatpush.msrb.mxu1 %v630_v58  ;;  %v1100_v57 = vld [vmem:[%s3342_s22 + $0x1b40] sm:$0xff]  ;;  %v597_v58 = vld [vmem:[%s3342_s22 + $0xb88] sm:$0xff] }
  0x97   : > { %1512 = vmatpush.msrb.mxu3 %v1134_v59  ;;  %1530 = vmatpush.msrb.mxu0 %v631_v60  ;;  %v1101_v59 = vld [vmem:[%s3342_s22 + $0x1b48] sm:$0xff]  ;;  %v560_v60 = vld [vmem:[%s3342_s22 + $0xa60] sm:$0xff] }
  0x98   : > { %1552 = vmatpush.msrb.mxu2 %v1135_v61  ;;  %1491 = vmatpush.msrb.mxu1 %v594_v62  ;;  %v1064_v61 = vld [vmem:[%s3342_s22 + $0x1a20] sm:$0xff]  ;;  %v561_v62 = vld [vmem:[%s3342_s22 + $0xa68] sm:$0xff] }
  0x99   : > { %1513 = vmatpush.msrb.mxu3 %v1098_v63  ;;  %1531 = vmatpush.msrb.mxu0 %v595_v0  ;;  %v1065_v63 = vld [vmem:[%s3342_s22 + $0x1a28] sm:$0xff]  ;;  %v524_v0 = vld [vmem:[%s3342_s22 + $0x940] sm:$0xff] }
  0x9a   : > { %1553 = vmatpush.msrb.mxu2 %v1099_v1  ;;  %1492 = vmatpush.msrb.mxu1 %v558_v2  ;;  %v1028_v1 = vld [vmem:[%s3342_s22 + $0x1900] sm:$0xff]  ;;  %v525_v2 = vld [vmem:[%s3342_s22 + $0x948] sm:$0xff] }
  0x9b   : > { %1514 = vmatpush.msrb.mxu3 %v1062_v3  ;;  %1532 = vmatpush.msrb.mxu0 %v559_v4  ;;  %v1029_v3 = vld [vmem:[%s3342_s22 + $0x1908] sm:$0xff]  ;;  %v488_v4 = vld [vmem:[%s3342_s22 + $0x820] sm:$0xff] }
  0x9c   : > { %1554 = vmatpush.msrb.mxu2 %v1063_v5  ;;  %1493 = vmatpush.msrb.mxu1 %v522_v6  ;;  %v992_v5 = vld [vmem:[%s3342_s22 + $0x17e0] sm:$0xff]  ;;  %v489_v6 = vld [vmem:[%s3342_s22 + $0x828] sm:$0xff] }
  0x9d   : > { %1515 = vmatpush.msrb.mxu3 %v1026_v7  ;;  %1533 = vmatpush.msrb.mxu0 %v523_v8  ;;  %v993_v7 = vld [vmem:[%s3342_s22 + $0x17e8] sm:$0xff]  ;;  %v452_v8 = vld [vmem:[%s3342_s22 + $0x700] sm:$0xff] }
  0x9e   : > { %1555 = vmatpush.msrb.mxu2 %v1027_v9  ;;  %1494 = vmatpush.msrb.mxu1 %v486_v10  ;;  %v956_v9 = vld [vmem:[%s3342_s22 + $0x16c0] sm:$0xff]  ;;  %v453_v10 = vld [vmem:[%s3342_s22 + $0x708] sm:$0xff] }
  0x9f   : > { %1516 = vmatpush.msrb.mxu3 %v990_v11  ;;  %1534 = vmatpush.msrb.mxu0 %v487_v12  ;;  %v957_v11 = vld [vmem:[%s3342_s22 + $0x16c8] sm:$0xff]  ;;  %v416_v12 = vld [vmem:[%s3342_s22 + $0x5e0] sm:$0xff] }
  0xa0   : > { %1556 = vmatpush.msrb.mxu2 %v991_v13  ;;  %1495 = vmatpush.msrb.mxu1 %v450_v14  ;;  %v920_v13 = vld [vmem:[%s3342_s22 + $0x15a0] sm:$0xff]  ;;  %v417_v14 = vld [vmem:[%s3342_s22 + $0x5e8] sm:$0xff] }
  0xa1   : > { %1517 = vmatpush.msrb.mxu3 %v954_v15  ;;  %1535 = vmatpush.msrb.mxu0 %v451_v16  ;;  %v921_v15 = vld [vmem:[%s3342_s22 + $0x15a8] sm:$0xff]  ;;  %v380_v16 = vld [vmem:[%s3342_s22 + $0x4c0] sm:$0xff] }
  0xa2   : > { %1557 = vmatpush.msrb.mxu2 %v955_v17  ;;  %1496 = vmatpush.msrb.mxu1 %v414_v18  ;;  %v884_v17 = vld [vmem:[%s3342_s22 + $0x1480] sm:$0xff]  ;;  %v381_v18 = vld [vmem:[%s3342_s22 + $0x4c8] sm:$0xff] }
  0xa3   : > { %1518 = vmatpush.msrb.mxu3 %v918_v19  ;;  %1536 = vmatpush.msrb.mxu0 %v415_v20  ;;  %v885_v19 = vld [vmem:[%s3342_s22 + $0x1488] sm:$0xff]  ;;  %v344_v20 = vld [vmem:[%s3342_s22 + $0x3a0] sm:$0xff] }
  0xa4   : > { %1558 = vmatpush.msrb.mxu2 %v919_v21  ;;  %1497 = vmatpush.msrb.mxu1 %v378_v22  ;;  %v848_v21 = vld [vmem:[%s3342_s22 + $0x1360] sm:$0xff]  ;;  %v345_v22 = vld [vmem:[%s3342_s22 + $0x3a8] sm:$0xff] }
  0xa5   : > { %1519 = vmatpush.msrb.mxu3 %v882_v23  ;;  %1537 = vmatpush.msrb.mxu0 %v379_v24  ;;  %v849_v23 = vld [vmem:[%s3342_s22 + $0x1368] sm:$0xff]  ;;  %v308_v24 = vld [vmem:[%s3342_s22 + $0x280] sm:$0xff] }
  0xa6   : > { %1559 = vmatpush.msrb.mxu2 %v883_v25  ;;  %1422 = vmatmul.f32.vlgmr.msra.gmra.mxu3 %v3452_v40  ;;  %v812_v25 = vld [vmem:[%s3342_s22 + $0x1240] sm:$0xff] }
  0xa7   : > { %1462 = vmatmul.f32.vlgmr.msra.gmra.mxu2 %v3452_v40  ;;  %1498 = vmatpush.msrb.mxu1 %v342_v26  ;;  %v309_v26 = vld [vmem:[%s3342_s22 + $0x288] sm:$0xff] }
  0xa8   : > { %1520 = vmatpush.msrb.mxu3 %v846_v27  ;;  %1538 = vmatpush.msrb.mxu0 %v343_v28  ;;  %v813_v27 = vld [vmem:[%s3342_s22 + $0x1248] sm:$0xff]  ;;  %v778_v28 = vld [vmem:[%s3342_s22 + $0x1130] sm:$0xff] }
  0xa9   : > { %1560 = vmatpush.msrb.mxu2 %v847_v29  ;;  %1499 = vmatpush.msrb.mxu1 %v306_v30  ;;  %v779_v29 = vld [vmem:[%s3342_s22 + $0x1138] sm:$0xff]  ;;  %v272_v30 = vld [vmem:[%s3342_s22 + $0x160] sm:$0xff] }
  0xaa   : > { %1521 = vmatpush.msrb.mxu3 %v810_v31  ;;  %1539 = vmatpush.msrb.mxu0 %v307_v32  ;;  %v273_v31 = vld [vmem:[%s3342_s22 + $0x168] sm:$0xff]  ;;  %v742_v32 = vld [vmem:[%s3342_s22 + $0x1010] sm:$0xff] }
  0xab   : > { %1561 = vmatpush.msrb.mxu2 %v811_v33  ;;  %1500 = vmatpush.msrb.mxu1 %v270_v36  ;;  %v743_v33 = vld [vmem:[%s3342_s22 + $0x1018] sm:$0xff]  ;;  %v706_v36 = vld [vmem:[%s3342_s22 + $0xef0] sm:$0xff] }
  0xac   : > { %1566 = vmatpush.msra.mxu3 %v776_v34  ;;  %1540 = vmatpush.msrb.mxu0 %v271_v37  ;;  %v236_v34 = vld [vmem:[%s3342_s22 + $0x40] sm:$0xff]  ;;  %v1210_v37 = vld [vmem:[%s3342_s22 + $0x1eb0] sm:$0xff] }
  0xad   : > { %1606 = vmatpush.msra.mxu2 %v777_v35  ;;  %1501 = vmatpush.msrb.mxu1 %v234_v41  ;;  %v237_v35 = vld [vmem:[%s3342_s22 + $0x48] sm:$0xff]  ;;  %v670_v41 = vld [vmem:[%s3342_s22 + $0xdd0] sm:$0xff] }
  0xae   : > { %1567 = vmatpush.msra.mxu3 %v740_v38  ;;  %1541 = vmatpush.msrb.mxu0 %v235_v42  ;;  %v707_v38 = vld [vmem:[%s3342_s22 + $0xef8] sm:$0xff]  ;;  %v1174_v42 = vld [vmem:[%s3342_s22 + $0x1d90] sm:$0xff] }
  0xaf   : > { %1607 = vmatpush.msra.mxu2 %v741_v39  ;;  %2888 = vmatmul.msk.f32.vlgmr.msra.gmra.mxu1 %vm1242_vm0, %v3457_v44  ;;  %v1211_v39 = vld [vmem:[%s3342_s22 + $0x1eb8] sm:$0xff] }
  0xb0   : > { %2889 = vmatmul.msk.f32.vlgmr.msra.gmra.mxu0 %vm1242_vm0, %v3457_v44  ;;  %1568 = vmatpush.msra.mxu3 %v704_v43  ;;  %v671_v43 = vld [vmem:[%s3342_s22 + $0xdd8] sm:$0xff] }
  0xb1   : > { %1590 = vmatpush.msra.mxu1 %v1208_v45  ;;  %1608 = vmatpush.msra.mxu2 %v705_v46  ;;  %v1175_v45 = vld [vmem:[%s3342_s22 + $0x1d98] sm:$0xff]  ;;  %v634_v46 = vld [vmem:[%s3342_s22 + $0xcb0] sm:$0xff] }
  0xb2   : > { %1630 = vmatpush.msra.mxu0 %v1209_v47  ;;  %1569 = vmatpush.msra.mxu3 %v668_v48  ;;  %v1138_v47 = vld [vmem:[%s3342_s22 + $0x1c70] sm:$0xff]  ;;  %v635_v48 = vld [vmem:[%s3342_s22 + $0xcb8] sm:$0xff] }
  0xb3   : > { %1591 = vmatpush.msra.mxu1 %v1172_v49  ;;  %1609 = vmatpush.msra.mxu2 %v669_v50  ;;  %v1139_v49 = vld [vmem:[%s3342_s22 + $0x1c78] sm:$0xff]  ;;  %v598_v50 = vld [vmem:[%s3342_s22 + $0xb90] sm:$0xff] }
  0xb4   : > { %1631 = vmatpush.msra.mxu0 %v1173_v51  ;;  %1570 = vmatpush.msra.mxu3 %v632_v52  ;;  %v1102_v51 = vld [vmem:[%s3342_s22 + $0x1b50] sm:$0xff]  ;;  %v599_v52 = vld [vmem:[%s3342_s22 + $0xb98] sm:$0xff] }
  0xb5   : > { %1592 = vmatpush.msra.mxu1 %v1136_v53  ;;  %1610 = vmatpush.msra.mxu2 %v633_v54  ;;  %v1103_v53 = vld [vmem:[%s3342_s22 + $0x1b58] sm:$0xff]  ;;  %v562_v54 = vld [vmem:[%s3342_s22 + $0xa70] sm:$0xff] }
  0xb6   : > { %1632 = vmatpush.msra.mxu0 %v1137_v55  ;;  %1571 = vmatpush.msra.mxu3 %v596_v56  ;;  %v1066_v55 = vld [vmem:[%s3342_s22 + $0x1a30] sm:$0xff]  ;;  %v563_v56 = vld [vmem:[%s3342_s22 + $0xa78] sm:$0xff] }
  0xb7   : > { %1593 = vmatpush.msra.mxu1 %v1100_v57  ;;  %1611 = vmatpush.msra.mxu2 %v597_v58  ;;  %v1067_v57 = vld [vmem:[%s3342_s22 + $0x1a38] sm:$0xff]  ;;  %v526_v58 = vld [vmem:[%s3342_s22 + $0x950] sm:$0xff] }
  0xb8   : > { %1633 = vmatpush.msra.mxu0 %v1101_v59  ;;  %1572 = vmatpush.msra.mxu3 %v560_v60  ;;  %v1030_v59 = vld [vmem:[%s3342_s22 + $0x1910] sm:$0xff]  ;;  %v527_v60 = vld [vmem:[%s3342_s22 + $0x958] sm:$0xff] }
  0xb9   : > { %1594 = vmatpush.msra.mxu1 %v1064_v61  ;;  %1612 = vmatpush.msra.mxu2 %v561_v62  ;;  %v1031_v61 = vld [vmem:[%s3342_s22 + $0x1918] sm:$0xff]  ;;  %v490_v62 = vld [vmem:[%s3342_s22 + $0x830] sm:$0xff] }
  0xba   : > { %1634 = vmatpush.msra.mxu0 %v1065_v63  ;;  %1573 = vmatpush.msra.mxu3 %v524_v0  ;;  %v994_v63 = vld [vmem:[%s3342_s22 + $0x17f0] sm:$0xff]  ;;  %v491_v0 = vld [vmem:[%s3342_s22 + $0x838] sm:$0xff] }
  0xbb   : > { %1595 = vmatpush.msra.mxu1 %v1028_v1  ;;  %1613 = vmatpush.msra.mxu2 %v525_v2  ;;  %v995_v1 = vld [vmem:[%s3342_s22 + $0x17f8] sm:$0xff]  ;;  %v454_v2 = vld [vmem:[%s3342_s22 + $0x710] sm:$0xff] }
  0xbc   : > { %1635 = vmatpush.msra.mxu0 %v1029_v3  ;;  %1574 = vmatpush.msra.mxu3 %v488_v4  ;;  %v958_v3 = vld [vmem:[%s3342_s22 + $0x16d0] sm:$0xff]  ;;  %v455_v4 = vld [vmem:[%s3342_s22 + $0x718] sm:$0xff] }
  0xbd   : > { %1596 = vmatpush.msra.mxu1 %v992_v5  ;;  %1614 = vmatpush.msra.mxu2 %v489_v6  ;;  %v959_v5 = vld [vmem:[%s3342_s22 + $0x16d8] sm:$0xff]  ;;  %v418_v6 = vld [vmem:[%s3342_s22 + $0x5f0] sm:$0xff] }
  0xbe   : > { %1636 = vmatpush.msra.mxu0 %v993_v7  ;;  %1575 = vmatpush.msra.mxu3 %v452_v8  ;;  %v922_v7 = vld [vmem:[%s3342_s22 + $0x15b0] sm:$0xff]  ;;  %v419_v8 = vld [vmem:[%s3342_s22 + $0x5f8] sm:$0xff] }
  0xbf   : > { %1597 = vmatpush.msra.mxu1 %v956_v9  ;;  %1615 = vmatpush.msra.mxu2 %v453_v10  ;;  %v923_v9 = vld [vmem:[%s3342_s22 + $0x15b8] sm:$0xff]  ;;  %v382_v10 = vld [vmem:[%s3342_s22 + $0x4d0] sm:$0xff] }
  0xc0   : > { %1637 = vmatpush.msra.mxu0 %v957_v11  ;;  %1576 = vmatpush.msra.mxu3 %v416_v12  ;;  %v886_v11 = vld [vmem:[%s3342_s22 + $0x1490] sm:$0xff]  ;;  %v383_v12 = vld [vmem:[%s3342_s22 + $0x4d8] sm:$0xff] }
  0xc1   : > { %1598 = vmatpush.msra.mxu1 %v920_v13  ;;  %1616 = vmatpush.msra.mxu2 %v417_v14  ;;  %v887_v13 = vld [vmem:[%s3342_s22 + $0x1498] sm:$0xff]  ;;  %v346_v14 = vld [vmem:[%s3342_s22 + $0x3b0] sm:$0xff] }
  0xc2   : > { %1638 = vmatpush.msra.mxu0 %v921_v15  ;;  %1577 = vmatpush.msra.mxu3 %v380_v16  ;;  %v850_v15 = vld [vmem:[%s3342_s22 + $0x1370] sm:$0xff]  ;;  %v347_v16 = vld [vmem:[%s3342_s22 + $0x3b8] sm:$0xff] }
  0xc3   : > { %1599 = vmatpush.msra.mxu1 %v884_v17  ;;  %1617 = vmatpush.msra.mxu2 %v381_v18  ;;  %v851_v17 = vld [vmem:[%s3342_s22 + $0x1378] sm:$0xff]  ;;  %v310_v18 = vld [vmem:[%s3342_s22 + $0x290] sm:$0xff] }
  0xc4   : > { %1639 = vmatpush.msra.mxu0 %v885_v19  ;;  %2890 = vmatmul.msk.f32.vlgmr.msrb.gmra.mxu3 %vm1242_vm0, %v3457_v44  ;;  %v814_v19 = vld [vmem:[%s3342_s22 + $0x1250] sm:$0xff] }
  0xc5   : > { %2891 = vmatmul.msk.f32.vlgmr.msrb.gmra.mxu2 %vm1242_vm0, %v3457_v44  ;;  %1578 = vmatpush.msra.mxu3 %v344_v20  ;;  %v311_v20 = vld [vmem:[%s3342_s22 + $0x298] sm:$0xff] }
  0xc6   : > { %1600 = vmatpush.msra.mxu1 %v848_v21  ;;  %1618 = vmatpush.msra.mxu2 %v345_v22  ;;  %v815_v21 = vld [vmem:[%s3342_s22 + $0x1258] sm:$0xff]  ;;  %v780_v22 = vld [vmem:[%s3342_s22 + $0x1140] sm:$0xff] }
  0xc7   : > { %1640 = vmatpush.msra.mxu0 %v849_v23  ;;  %1579 = vmatpush.msra.mxu3 %v308_v24  ;;  %v781_v23 = vld [vmem:[%s3342_s22 + $0x1148] sm:$0xff]  ;;  %v274_v24 = vld [vmem:[%s3342_s22 + $0x170] sm:$0xff] }
  0xc8   : > { %1601 = vmatpush.msra.mxu1 %v812_v25  ;;  %1619 = vmatpush.msra.mxu2 %v309_v26  ;;  %v744_v25 = vld [vmem:[%s3342_s22 + $0x1020] sm:$0xff]  ;;  %v745_v26 = vld [vmem:[%s3342_s22 + $0x1028] sm:$0xff] }
  0xc9   : > { %1641 = vmatpush.msra.mxu0 %v813_v27  ;;  %1502 = vmatmul.f32.vlgmr.msrb.gmra.mxu1 %v3452_v40  ;;  %v238_v27 = vld [vmem:[%s3342_s22 + $0x50] sm:$0xff] }
  0xca   : > { %1542 = vmatmul.f32.vlgmr.msrb.gmra.mxu0 %v3452_v40  ;;  %1646 = vmatpush.msrb.mxu1 %v778_v28  ;;  %v239_v28 = vld [vmem:[%s3342_s22 + $0x58] sm:$0xff] }
  0xcb   : > { %1686 = vmatpush.msrb.mxu0 %v779_v29  ;;  %1580 = vmatpush.msra.mxu3 %v272_v30  ;;  %v708_v29 = vld [vmem:[%s3342_s22 + $0xf00] sm:$0xff] }
  0xcc   : > { %1620 = vmatpush.msra.mxu2 %v273_v31  ;;  %1647 = vmatpush.msrb.mxu1 %v742_v32  ;;  %v1212_v30 = vld [vmem:[%s3342_s22 + $0x1ec0] sm:$0xff]  ;;  %v709_v31 = vld [vmem:[%s3342_s22 + $0xf08] sm:$0xff] }
  0xcd   : > { %1687 = vmatpush.msrb.mxu0 %v743_v33  ;;  %1581 = vmatpush.msra.mxu3 %v236_v34  ;;  %v1213_v32 = vld [vmem:[%s3342_s22 + $0x1ec8] sm:$0xff]  ;;  %v672_v33 = vld [vmem:[%s3342_s22 + $0xde0] sm:$0xff] }
  0xce   : > { %1621 = vmatpush.msra.mxu2 %v237_v35  ;;  %1648 = vmatpush.msrb.mxu1 %v706_v36  ;;  %v1176_v34 = vld [vmem:[%s3342_s22 + $0x1da0] sm:$0xff]  ;;  %v673_v35 = vld [vmem:[%s3342_s22 + $0xde8] sm:$0xff] }
  0xcf   : > { %1670 = vmatpush.msrb.mxu3 %v1210_v37  ;;  %1688 = vmatpush.msrb.mxu0 %v707_v38  ;;  %v1177_v36 = vld [vmem:[%s3342_s22 + $0x1da8] sm:$0xff]  ;;  %v636_v37 = vld [vmem:[%s3342_s22 + $0xcc0] sm:$0xff] }
  0xd0   : > { %1710 = vmatpush.msrb.mxu2 %v1211_v39  ;;  %1649 = vmatpush.msrb.mxu1 %v670_v41  ;;  %v1140_v38 = vld [vmem:[%s3342_s22 + $0x1c80] sm:$0xff]  ;;  %v637_v39 = vld [vmem:[%s3342_s22 + $0xcc8] sm:$0xff] }
  0xd1   : > { %1671 = vmatpush.msrb.mxu3 %v1174_v42  ;;  %1689 = vmatpush.msrb.mxu0 %v671_v43  ;;  %v1141_v42 = vld [vmem:[%s3342_s22 + $0x1c88] sm:$0xff]  ;;  %v600_v43 = vld [vmem:[%s3342_s22 + $0xba0] sm:$0xff] }
  0xd2   : > { %1711 = vmatpush.msrb.mxu2 %v1175_v45  ;;  %1650 = vmatpush.msrb.mxu1 %v634_v46  ;;  %v1104_v45 = vld [vmem:[%s3342_s22 + $0x1b60] sm:$0xff]  ;;  %v601_v46 = vld [vmem:[%s3342_s22 + $0xba8] sm:$0xff] }
  0xd3   : > { %1672 = vmatpush.msrb.mxu3 %v1138_v47  ;;  %1690 = vmatpush.msrb.mxu0 %v635_v48 }
  0xd4   : > { %1712 = vmatpush.msrb.mxu2 %v1139_v49  ;;  %1651 = vmatpush.msrb.mxu1 %v598_v50  ;;  %v1105_v49 = vld [vmem:[%s3342_s22 + $0x1b68] sm:$0xff]  ;;  %v564_v50 = vld [vmem:[%s3342_s22 + $0xa80] sm:$0xff] }
  0xd5   : > { %1673 = vmatpush.msrb.mxu3 %v1102_v51  ;;  %1691 = vmatpush.msrb.mxu0 %v599_v52 }
  0xd6   : > { %1713 = vmatpush.msrb.mxu2 %v1103_v53  ;;  %1652 = vmatpush.msrb.mxu1 %v562_v54  ;;  %v1068_v54 = vld [vmem:[%s3342_s22 + $0x1a40] sm:$0xff] }
  0xd7   : > { %1674 = vmatpush.msrb.mxu3 %v1066_v55  ;;  %1692 = vmatpush.msrb.mxu0 %v563_v56  ;;  %v565_v55 = vld [vmem:[%s3342_s22 + $0xa88] sm:$0xff] }
  0xd8   : > { %1714 = vmatpush.msrb.mxu2 %v1067_v57  ;;  %1653 = vmatpush.msrb.mxu1 %v526_v58  ;;  %v1069_v56 = vld [vmem:[%s3342_s22 + $0x1a48] sm:$0xff]  ;;  %v528_v57 = vld [vmem:[%s3342_s22 + $0x960] sm:$0xff] }
  0xd9   : > { %1675 = vmatpush.msrb.mxu3 %v1030_v59  ;;  %1693 = vmatpush.msrb.mxu0 %v527_v60  ;;  %v1032_v60 = vld [vmem:[%s3342_s22 + $0x1920] sm:$0xff] }
  0xda   : > { %1715 = vmatpush.msrb.mxu2 %v1031_v61  ;;  %1654 = vmatpush.msrb.mxu1 %v490_v62  ;;  %v529_v61 = vld [vmem:[%s3342_s22 + $0x968] sm:$0xff] }
  0xdb   : > { %1676 = vmatpush.msrb.mxu3 %v994_v63  ;;  %1694 = vmatpush.msrb.mxu0 %v491_v0  ;;  %v1033_v62 = vld [vmem:[%s3342_s22 + $0x1928] sm:$0xff]  ;;  %v492_v63 = vld [vmem:[%s3342_s22 + $0x840] sm:$0xff] }
  0xdc   : > { %1716 = vmatpush.msrb.mxu2 %v995_v1  ;;  %1655 = vmatpush.msrb.mxu1 %v454_v2  ;;  %v996_v2 = vld [vmem:[%s3342_s22 + $0x1800] sm:$0xff] }
  0xdd   : > { %1677 = vmatpush.msrb.mxu3 %v958_v3  ;;  %1695 = vmatpush.msrb.mxu0 %v455_v4  ;;  %v493_v3 = vld [vmem:[%s3342_s22 + $0x848] sm:$0xff] }
  0xde   : > { %1717 = vmatpush.msrb.mxu2 %v959_v5  ;;  %1656 = vmatpush.msrb.mxu1 %v418_v6  ;;  %v997_v4 = vld [vmem:[%s3342_s22 + $0x1808] sm:$0xff]  ;;  %v456_v5 = vld [vmem:[%s3342_s22 + $0x720] sm:$0xff] }
  0xdf   : > { %1678 = vmatpush.msrb.mxu3 %v922_v7  ;;  %1696 = vmatpush.msrb.mxu0 %v419_v8  ;;  %v960_v6 = vld [vmem:[%s3342_s22 + $0x16e0] sm:$0xff]  ;;  %v457_v7 = vld [vmem:[%s3342_s22 + $0x728] sm:$0xff] }
  0xe0   : > { %1718 = vmatpush.msrb.mxu2 %v923_v9  ;;  %1657 = vmatpush.msrb.mxu1 %v382_v10  ;;  %v961_v8 = vld [vmem:[%s3342_s22 + $0x16e8] sm:$0xff]  ;;  %v420_v9 = vld [vmem:[%s3342_s22 + $0x600] sm:$0xff] }
  0xe1   : > { %1679 = vmatpush.msrb.mxu3 %v886_v11  ;;  %1697 = vmatpush.msrb.mxu0 %v383_v12  ;;  %v924_v10 = vld [vmem:[%s3342_s22 + $0x15c0] sm:$0xff]  ;;  %v421_v11 = vld [vmem:[%s3342_s22 + $0x608] sm:$0xff] }
  0xe2   : > { %1719 = vmatpush.msrb.mxu2 %v887_v13  ;;  %1582 = vmatmul.f32.vlgmr.msra.gmra.mxu3 %v3452_v40  ;;  %v925_v12 = vld [vmem:[%s3342_s22 + $0x15c8] sm:$0xff]  ;;  %v384_v13 = vld [vmem:[%s3342_s22 + $0x4e0] sm:$0xff] }
  0xe3   : > { %1622 = vmatmul.f32.vlgmr.msra.gmra.mxu2 %v3452_v40  ;;  %1658 = vmatpush.msrb.mxu1 %v346_v14  ;;  %v275_v40 = vld [vmem:[%s3342_s22 + $0x178] sm:$0xff]  ;;  %v888_v14 = vld [vmem:[%s3342_s22 + $0x14a0] sm:$0xff] }
  0xe4   : > { %1680 = vmatpush.msrb.mxu3 %v850_v15  ;;  %1698 = vmatpush.msrb.mxu0 %v347_v16  ;;  %v385_v15 = vld [vmem:[%s3342_s22 + $0x4e8] sm:$0xff] }
  0xe5   : > { %1720 = vmatpush.msrb.mxu2 %v851_v17  ;;  %1659 = vmatpush.msrb.mxu1 %v310_v18  ;;  %v889_v16 = vld [vmem:[%s3342_s22 + $0x14a8] sm:$0xff]  ;;  %v348_v17 = vld [vmem:[%s3342_s22 + $0x3c0] sm:$0xff] }
  0xe6   : > { %1681 = vmatpush.msrb.mxu3 %v814_v19  ;;  %1699 = vmatpush.msrb.mxu0 %v311_v20  ;;  %v852_v18 = vld [vmem:[%s3342_s22 + $0x1380] sm:$0xff]  ;;  %v349_v19 = vld [vmem:[%s3342_s22 + $0x3c8] sm:$0xff]  ;;  %v3779_v20 = vld [vmem:[#allocation2 + $0x8] sm:$0xff] }
  0xe7   : > { %1721 = vmatpush.msrb.mxu2 %v815_v21  ;;  %1660 = vmatpush.msrb.mxu1 %v274_v24  ;;  %v853_v21 = vld [vmem:[%s3342_s22 + $0x1388] sm:$0xff] }
  0xe8   : > { %1726 = vmatpush.msra.mxu3 %v780_v22  ;;  %1700 = vmatpush.msrb.mxu0 %v275_v40  ;;  %v312_v22 = vld [vmem:[%s3342_s22 + $0x2a0] sm:$0xff]  ;;  %v313_v24 = vld [vmem:[%s3342_s22 + $0x2a8] sm:$0xff] }
  0xe9   : > { %1766 = vmatpush.msra.mxu2 %v781_v23  ;;  %1661 = vmatpush.msrb.mxu1 %v238_v27  ;;  %v816_v23 = vld [vmem:[%s3342_s22 + $0x1260] sm:$0xff]  ;;  %v817_v40 = vld [vmem:[%s3342_s22 + $0x1268] sm:$0xff] }
  0xea   : > { %1727 = vmatpush.msra.mxu3 %v744_v25  ;;  %1701 = vmatpush.msrb.mxu0 %v239_v28  ;;  %v782_v25 = vld [vmem:[%s3342_s22 + $0x1150] sm:$0xff]  ;;  %v276_v27 = vld [vmem:[%s3342_s22 + $0x180] sm:$0xff] }
  0xeb   : > { %1767 = vmatpush.msra.mxu2 %v745_v26  ;;  %2892 = vmatmul.msk.f32.vlgmr.msra.gmra.mxu1 %vm1242_vm0, %v3457_v44  ;;  %v783_v26 = vld [vmem:[%s3342_s22 + $0x1158] sm:$0xff]  ;;  %v3793_v28 = vld [vmem:[#allocation2] sm:$0xff] }
  0xec   : > { %2893 = vmatmul.msk.f32.vlgmr.msra.gmra.mxu0 %vm1242_vm0, %v3457_v44  ;;  %1728 = vmatpush.msra.mxu3 %v708_v29  ;;  %v1263_v41 = vpop.f32.mrf.mxu0  ;;  %v1303_v44 = vpop.f32.mrf.mxu2  ;;  %v277_v29 = vld [vmem:[%s3342_s22 + $0x188] sm:$0xff] }
  0xed   : > { %1750 = vmatpush.msra.mxu1 %v1212_v30  ;;  %1768 = vmatpush.msra.mxu2 %v709_v31  ;;  %v746_v30 = vld [vmem:[%s3342_s22 + $0x1030] sm:$0xff]  ;;  %v747_v31 = vld [vmem:[%s3342_s22 + $0x1038] sm:$0xff] }
  0xee   : > { %1790 = vmatpush.msra.mxu0 %v1213_v32  ;;  %1729 = vmatpush.msra.mxu3 %v672_v33  ;;  %v240_v32 = vld [vmem:[%s3342_s22 + $0x60] sm:$0xff]  ;;  %v241_v33 = vld [vmem:[%s3342_s22 + $0x68] sm:$0xff] }
  0xef   : > { %1751 = vmatpush.msra.mxu1 %v1176_v34  ;;  %1769 = vmatpush.msra.mxu2 %v673_v35  ;;  %v3740_v47 = vpop.permute.xlu0 %1239  ;;  %v710_v34 = vld [vmem:[%s3342_s22 + $0xf10] sm:$0xff] }
  0xf0   : > { %1791 = vmatpush.msra.mxu0 %v1177_v36  ;;  %1730 = vmatpush.msra.mxu3 %v636_v37  ;;  %v1283_v48 = vpop.f32.mrf.mxu1  ;;  %v1264_v51 = vadd.f32 %v1263_v41, %v3740_v47  ;;  %v1304_v52 = vadd.f32 %v1303_v44, %v3740_v47  ;;  %v1323_v53 = vpop.f32.mrf.mxu3  ;;  %v1214_v35 = vld [vmem:[%s3342_s22 + $0x1ed0] sm:$0xff]  ;;  %v711_v36 = vld [vmem:[%s3342_s22 + $0xf18] sm:$0xff] }
  0xf1   : > { %1752 = vmatpush.msra.mxu1 %v1140_v38  ;;  %1770 = vmatpush.msra.mxu2 %v637_v39  ;;  %v1215_v37 = vld [vmem:[%s3342_s22 + $0x1ed8] sm:$0xff]  ;;  %v674_v38 = vld [vmem:[%s3342_s22 + $0xdf0] sm:$0xff] }
  0xf2   : > { %1792 = vmatpush.msra.mxu0 %v1141_v42  ;;  %1731 = vmatpush.msra.mxu3 %v600_v43  ;;  %v1284_v58 = vadd.f32 %v1283_v48, %v1264_v51  ;;  %v1324_v59 = vadd.f32 %v1323_v53, %v1304_v52  ;;  %v1178_v39 = vld [vmem:[%s3342_s22 + $0x1db0] sm:$0xff]  ;;  %v675_v41 = vld [vmem:[%s3342_s22 + $0xdf8] sm:$0xff] }
  0xf3   : > { %1753 = vmatpush.msra.mxu1 %v1104_v45  ;;  %1771 = vmatpush.msra.mxu2 %v601_v46  ;;  %v1179_v42 = vld [vmem:[%s3342_s22 + $0x1db8] sm:$0xff]  ;;  %v638_v43 = vld [vmem:[%s3342_s22 + $0xcd0] sm:$0xff] }
  0xf4   : > { %1793 = vmatpush.msra.mxu0 %v1105_v49  ;;  %1732 = vmatpush.msra.mxu3 %v564_v50  ;;  %v2686_v0 = vmax.f32 %v1284_v58, 0.0  ;;  %v2687_v1 = vmax.f32 %v1324_v59, 0.0  ;;  %v1142_v49 = vld [vmem:[%s3342_s22 + $0x1c90] sm:$0xff]  ;;  %v639_v50 = vld [vmem:[%s3342_s22 + $0xcd8] sm:$0xff] }
  0xf5   : > { %1754 = vmatpush.msra.mxu1 %v1068_v54  ;;  %1772 = vmatpush.msra.mxu2 %v565_v55  ;;  %v1143_v53 = vld [vmem:[%s3342_s22 + $0x1c98] sm:$0xff]  ;;  %v602_v54 = vld [vmem:[%s3342_s22 + $0xbb0] sm:$0xff] }
  0xf6   : > { %1794 = vmatpush.msra.mxu0 %v1069_v56  ;;  %1733 = vmatpush.msra.mxu3 %v528_v57  ;;  %2722 = vst [vmem:[%s3761_s26] sm:$0xff] %v2686_v0  ;;  %v1106_v56 = vld [vmem:[%s3342_s22 + $0x1b70] sm:$0xff]  ;;  %v603_v57 = vld [vmem:[%s3342_s22 + $0xbb8] sm:$0xff] }
  0xf7   : > { %1755 = vmatpush.msra.mxu1 %v1032_v60  ;;  %1773 = vmatpush.msra.mxu2 %v529_v61  ;;  %2723 = vst [vmem:[%s3761_s26 + $0x8] sm:$0xff] %v2687_v1  ;;  %v1107_v59 = vld [vmem:[%s3342_s22 + $0x1b78] sm:$0xff]  ;;  %v566_v60 = vld [vmem:[%s3342_s22 + $0xa90] sm:$0xff] }
  0xf8   : > { %1795 = vmatpush.msra.mxu0 %v1033_v62  ;;  %1734 = vmatpush.msra.mxu3 %v492_v63  ;;  %v1070_v62 = vld [vmem:[%s3342_s22 + $0x1a50] sm:$0xff]  ;;  %v567_v63 = vld [vmem:[%s3342_s22 + $0xa98] sm:$0xff] }
  0xf9   : > { %1756 = vmatpush.msra.mxu1 %v996_v2  ;;  %1774 = vmatpush.msra.mxu2 %v493_v3  ;;  %v1071_v1 = vld [vmem:[%s3342_s22 + $0x1a58] sm:$0xff]  ;;  %v530_v2 = vld [vmem:[%s3342_s22 + $0x970] sm:$0xff] }
  0xfa   : > { %1796 = vmatpush.msra.mxu0 %v997_v4  ;;  %1735 = vmatpush.msra.mxu3 %v456_v5  ;;  %v1034_v3 = vld [vmem:[%s3342_s22 + $0x1930] sm:$0xff]  ;;  %v531_v4 = vld [vmem:[%s3342_s22 + $0x978] sm:$0xff] }
  0xfb   : > { %1757 = vmatpush.msra.mxu1 %v960_v6  ;;  %1775 = vmatpush.msra.mxu2 %v457_v7  ;;  %v1035_v5 = vld [vmem:[%s3342_s22 + $0x1938] sm:$0xff]  ;;  %v494_v6 = vld [vmem:[%s3342_s22 + $0x850] sm:$0xff] }
  0xfc   : > { %1797 = vmatpush.msra.mxu0 %v961_v8  ;;  %1736 = vmatpush.msra.mxu3 %v420_v9  ;;  %v998_v7 = vld [vmem:[%s3342_s22 + $0x1810] sm:$0xff]  ;;  %v495_v8 = vld [vmem:[%s3342_s22 + $0x858] sm:$0xff] }
  0xfd   : > { %1758 = vmatpush.msra.mxu1 %v924_v10  ;;  %1776 = vmatpush.msra.mxu2 %v421_v11  ;;  %v999_v9 = vld [vmem:[%s3342_s22 + $0x1818] sm:$0xff]  ;;  %v458_v10 = vld [vmem:[%s3342_s22 + $0x730] sm:$0xff] }
  0xfe   : > { %1798 = vmatpush.msra.mxu0 %v925_v12  ;;  %1737 = vmatpush.msra.mxu3 %v384_v13  ;;  %v962_v11 = vld [vmem:[%s3342_s22 + $0x16f0] sm:$0xff]  ;;  %v459_v12 = vld [vmem:[%s3342_s22 + $0x738] sm:$0xff] }
  0xff   : > { %1759 = vmatpush.msra.mxu1 %v888_v14  ;;  %1777 = vmatpush.msra.mxu2 %v385_v15  ;;  %v963_v13 = vld [vmem:[%s3342_s22 + $0x16f8] sm:$0xff]  ;;  %v422_v14 = vld [vmem:[%s3342_s22 + $0x610] sm:$0xff] }
 0x100   : > { %1799 = vmatpush.msra.mxu0 %v889_v16  ;;  %2894 = vmatmul.msk.f32.vlgmr.msrb.gmra.mxu3 %vm1242_vm0, %v3779_v20  ;;  %v926_v15 = vld [vmem:[%s3342_s22 + $0x15d0] sm:$0xff]  ;;  %v423_v16 = vld [vmem:[%s3342_s22 + $0x618] sm:$0xff] }
 0x101   : > { %2895 = vmatmul.msk.f32.vlgmr.msrb.gmra.mxu2 %vm1242_vm0, %v3779_v20  ;;  %1738 = vmatpush.msra.mxu3 %v348_v17  ;;  %v927_v17 = vld [vmem:[%s3342_s22 + $0x15d8] sm:$0xff] }
 0x102   : > { %1760 = vmatpush.msra.mxu1 %v852_v18  ;;  %1778 = vmatpush.msra.mxu2 %v349_v19  ;;  %v386_v18 = vld [vmem:[%s3342_s22 + $0x4f0] sm:$0xff] }
 0x103   : > { %1800 = vmatpush.msra.mxu0 %v853_v21  ;;  %1739 = vmatpush.msra.mxu3 %v312_v22  ;;  %v890_v19 = vld [vmem:[%s3342_s22 + $0x14b0] sm:$0xff]  ;;  %v387_v21 = vld [vmem:[%s3342_s22 + $0x4f8] sm:$0xff] }
 0x104   : > { %1761 = vmatpush.msra.mxu1 %v816_v23  ;;  %1779 = vmatpush.msra.mxu2 %v313_v24  ;;  %v891_v22 = vld [vmem:[%s3342_s22 + $0x14b8] sm:$0xff]  ;;  %v350_v23 = vld [vmem:[%s3342_s22 + $0x3d0] sm:$0xff] }
 0x105   : > { %1801 = vmatpush.msra.mxu0 %v817_v40  ;;  %1662 = vmatmul.f32.vlgmr.msrb.gmra.mxu1 %v3793_v28  ;;  %v854_v24 = vld [vmem:[%s3342_s22 + $0x1390] sm:$0xff]  ;;  %v351_v40 = vld [vmem:[%s3342_s22 + $0x3d8] sm:$0xff] }
 0x106   : > { %1702 = vmatmul.f32.vlgmr.msrb.gmra.mxu0 %v3793_v28  ;;  %1806 = vmatpush.msrb.mxu1 %v782_v25  ;;  %v855_v25 = vld [vmem:[%s3342_s22 + $0x1398] sm:$0xff] }
 0x107   : > { %1846 = vmatpush.msrb.mxu0 %v783_v26  ;;  %1740 = vmatpush.msra.mxu3 %v276_v27  ;;  %v314_v26 = vld [vmem:[%s3342_s22 + $0x2b0] sm:$0xff] }
 0x108   : > { %1780 = vmatpush.msra.mxu2 %v277_v29  ;;  %1807 = vmatpush.msrb.mxu1 %v746_v30  ;;  %v818_v27 = vld [vmem:[%s3342_s22 + $0x1270] sm:$0xff]  ;;  %v315_v29 = vld [vmem:[%s3342_s22 + $0x2b8] sm:$0xff] }
 0x109   : > { %1847 = vmatpush.msrb.mxu0 %v747_v31  ;;  %1741 = vmatpush.msra.mxu3 %v240_v32  ;;  %v819_v30 = vld [vmem:[%s3342_s22 + $0x1278] sm:$0xff]  ;;  %v784_v31 = vld [vmem:[%s3342_s22 + $0x1160] sm:$0xff]  ;;  %v785_v32 = vld [vmem:[%s3342_s22 + $0x1168] sm:$0xff] }
 0x10a   : > { %1781 = vmatpush.msra.mxu2 %v241_v33  ;;  %1808 = vmatpush.msrb.mxu1 %v710_v34  ;;  %v1343_v44 = vpop.f32.mrf.mxu1  ;;  %v278_v33 = vld [vmem:[%s3342_s22 + $0x190] sm:$0xff]  ;;  %v279_v34 = vld [vmem:[%s3342_s22 + $0x198] sm:$0xff] }
 0x10b   : > { %1830 = vmatpush.msrb.mxu3 %v1214_v35  ;;  %1848 = vmatpush.msrb.mxu0 %v711_v36  ;;  %v1344_v45 = vadd.f32 %v1343_v44, %v3740_v47  ;;  %v1383_v46 = vpop.f32.mrf.mxu0  ;;  %v1363_v48 = vpop.f32.mrf.mxu3  ;;  %v748_v35 = vld [vmem:[%s3342_s22 + $0x1040] sm:$0xff]  ;;  %v749_v36 = vld [vmem:[%s3342_s22 + $0x1048] sm:$0xff] }
 0x10c   : > { %1870 = vmatpush.msrb.mxu2 %v1215_v37  ;;  %1809 = vmatpush.msrb.mxu1 %v674_v38  ;;  %v1384_v51 = vadd.f32 %v1383_v46, %v3740_v47  ;;  %v1403_v52 = vpop.f32.mrf.mxu2  ;;  %v242_v37 = vld [vmem:[%s3342_s22 + $0x70] sm:$0xff]  ;;  %v243_v38 = vld [vmem:[%s3342_s22 + $0x78] sm:$0xff]  ;;  %v713_v44 = vld [vmem:[%s3342_s22 + $0xf28] sm:$0xff] }
 0x10d   : > { %1831 = vmatpush.msrb.mxu3 %v1178_v39  ;;  %1849 = vmatpush.msrb.mxu0 %v675_v41  ;;  %v1364_v55 = vadd.f32 %v1363_v48, %v1344_v45  ;;  %v712_v39 = vld [vmem:[%s3342_s22 + $0xf20] sm:$0xff]  ;;  %v677_v46 = vld [vmem:[%s3342_s22 + $0xe08] sm:$0xff] }
 0x10e   : > { %1871 = vmatpush.msrb.mxu2 %v1179_v42  ;;  %1810 = vmatpush.msrb.mxu1 %v638_v43  ;;  %v1404_v58 = vadd.f32 %v1403_v52, %v1384_v51  ;;  %v1216_v41 = vld [vmem:[%s3342_s22 + $0x1ee0] sm:$0xff]  ;;  %v1217_v42 = vld [vmem:[%s3342_s22 + $0x1ee8] sm:$0xff] }
 0x10f   : > { %1832 = vmatpush.msrb.mxu3 %v1142_v49  ;;  %1850 = vmatpush.msrb.mxu0 %v639_v50  ;;  %v2688_v61 = vmax.f32 %v1364_v55, 0.0  ;;  %v676_v43 = vld [vmem:[%s3342_s22 + $0xe00] sm:$0xff]  ;;  %v1181_v48 = vld [vmem:[%s3342_s22 + $0x1dc8] sm:$0xff] }
 0x110   : > { %1872 = vmatpush.msrb.mxu2 %v1143_v53  ;;  %1811 = vmatpush.msrb.mxu1 %v602_v54  ;;  %v2689_v0 = vmax.f32 %v1404_v58, 0.0  ;;  %v1180_v45 = vld [vmem:[%s3342_s22 + $0x1dc0] sm:$0xff]  ;;  %v641_v52 = vld [vmem:[%s3342_s22 + $0xce8] sm:$0xff] }
 0x111   : > { %1833 = vmatpush.msrb.mxu3 %v1106_v56  ;;  %1851 = vmatpush.msrb.mxu0 %v603_v57  ;;  %2724 = vst [vmem:[%s3761_s26 + $0x10] sm:$0xff] %v2688_v61  ;;  %v640_v49 = vld [vmem:[%s3342_s22 + $0xce0] sm:$0xff]  ;;  %v1145_v55 = vld [vmem:[%s3342_s22 + $0x1ca8] sm:$0xff] }
 0x112   : > { %1873 = vmatpush.msrb.mxu2 %v1107_v59  ;;  %1812 = vmatpush.msrb.mxu1 %v566_v60  ;;  %2725 = vst [vmem:[%s3761_s26 + $0x18] sm:$0xff] %v2689_v0  ;;  %v1144_v51 = vld [vmem:[%s3342_s22 + $0x1ca0] sm:$0xff]  ;;  %v605_v59 = vld [vmem:[%s3342_s22 + $0xbc8] sm:$0xff] }
 0x113   : > { %1834 = vmatpush.msrb.mxu3 %v1070_v62  ;;  %1852 = vmatpush.msrb.mxu0 %v567_v63  ;;  %v604_v56 = vld [vmem:[%s3342_s22 + $0xbc0] sm:$0xff]  ;;  %v1109_v61 = vld [vmem:[%s3342_s22 + $0x1b88] sm:$0xff] }
 0x114   : > { %1874 = vmatpush.msrb.mxu2 %v1071_v1  ;;  %1813 = vmatpush.msrb.mxu1 %v530_v2  ;;  %v1108_v58 = vld [vmem:[%s3342_s22 + $0x1b80] sm:$0xff]  ;;  %v569_v2 = vld [vmem:[%s3342_s22 + $0xaa8] sm:$0xff] }
 0x115   : > { %1835 = vmatpush.msrb.mxu3 %v1034_v3  ;;  %1853 = vmatpush.msrb.mxu0 %v531_v4  ;;  %v568_v62 = vld [vmem:[%s3342_s22 + $0xaa0] sm:$0xff]  ;;  %v1073_v4 = vld [vmem:[%s3342_s22 + $0x1a68] sm:$0xff] }
 0x116   : > { %1875 = vmatpush.msrb.mxu2 %v1035_v5  ;;  %1814 = vmatpush.msrb.mxu1 %v494_v6  ;;  %v1072_v1 = vld [vmem:[%s3342_s22 + $0x1a60] sm:$0xff] }
 0x117   : > { %1836 = vmatpush.msrb.mxu3 %v998_v7  ;;  %1854 = vmatpush.msrb.mxu0 %v495_v8  ;;  %v532_v5 = vld [vmem:[%s3342_s22 + $0x980] sm:$0xff]  ;;  %v533_v8 = vld [vmem:[%s3342_s22 + $0x988] sm:$0xff] }
 0x118   : > { %1876 = vmatpush.msrb.mxu2 %v999_v9  ;;  %1815 = vmatpush.msrb.mxu1 %v458_v10  ;;  %v1036_v7 = vld [vmem:[%s3342_s22 + $0x1940] sm:$0xff]  ;;  %v1037_v10 = vld [vmem:[%s3342_s22 + $0x1948] sm:$0xff] }
 0x119   : > { %1837 = vmatpush.msrb.mxu3 %v962_v11  ;;  %1855 = vmatpush.msrb.mxu0 %v459_v12  ;;  %v496_v11 = vld [vmem:[%s3342_s22 + $0x860] sm:$0xff] }
 0x11a   : > { %1877 = vmatpush.msrb.mxu2 %v963_v13  ;;  %1816 = vmatpush.msrb.mxu1 %v422_v14  ;;  %v1000_v12 = vld [vmem:[%s3342_s22 + $0x1820] sm:$0xff]  ;;  %v497_v13 = vld [vmem:[%s3342_s22 + $0x868] sm:$0xff] }
 0x11b   : > { %1838 = vmatpush.msrb.mxu3 %v926_v15  ;;  %1856 = vmatpush.msrb.mxu0 %v423_v16  ;;  %v1001_v14 = vld [vmem:[%s3342_s22 + $0x1828] sm:$0xff]  ;;  %v460_v15 = vld [vmem:[%s3342_s22 + $0x740] sm:$0xff] }
 0x11c   : > { %1878 = vmatpush.msrb.mxu2 %v927_v17  ;;  %1817 = vmatpush.msrb.mxu1 %v386_v18  ;;  %v964_v16 = vld [vmem:[%s3342_s22 + $0x1700] sm:$0xff]  ;;  %v461_v17 = vld [vmem:[%s3342_s22 + $0x748] sm:$0xff] }
 0x11d   : > { %1839 = vmatpush.msrb.mxu3 %v890_v19  ;;  %1857 = vmatpush.msrb.mxu0 %v387_v21  ;;  %v965_v18 = vld [vmem:[%s3342_s22 + $0x1708] sm:$0xff]  ;;  %v424_v19 = vld [vmem:[%s3342_s22 + $0x620] sm:$0xff] }
 0x11e   : > { %1879 = vmatpush.msrb.mxu2 %v891_v22  ;;  %1742 = vmatmul.f32.vlgmr.msra.gmra.mxu3 %v3793_v28  ;;  %v928_v21 = vld [vmem:[%s3342_s22 + $0x15e0] sm:$0xff]  ;;  %v425_v22 = vld [vmem:[%s3342_s22 + $0x628] sm:$0xff] }
 0x11f   : > { %1782 = vmatmul.f32.vlgmr.msra.gmra.mxu2 %v3793_v28  ;;  %1818 = vmatpush.msrb.mxu1 %v350_v23  ;;  %v929_v23 = vld [vmem:[%s3342_s22 + $0x15e8] sm:$0xff] }
 0x120   : > { %1840 = vmatpush.msrb.mxu3 %v854_v24  ;;  %1858 = vmatpush.msrb.mxu0 %v351_v40  ;;  %v388_v24 = vld [vmem:[%s3342_s22 + $0x500] sm:$0xff] }
 0x121   : > { %1880 = vmatpush.msrb.mxu2 %v855_v25  ;;  %1819 = vmatpush.msrb.mxu1 %v314_v26  ;;  %v892_v40 = vld [vmem:[%s3342_s22 + $0x14c0] sm:$0xff]  ;;  %v389_v25 = vld [vmem:[%s3342_s22 + $0x508] sm:$0xff] }
 0x122   : > { %1841 = vmatpush.msrb.mxu3 %v818_v27  ;;  %1859 = vmatpush.msrb.mxu0 %v315_v29  ;;  %v893_v26 = vld [vmem:[%s3342_s22 + $0x14c8] sm:$0xff]  ;;  %v352_v27 = vld [vmem:[%s3342_s22 + $0x3e0] sm:$0xff] }
 0x123   : > { %1881 = vmatpush.msrb.mxu2 %v819_v30  ;;  %1820 = vmatpush.msrb.mxu1 %v278_v33  ;;  %v856_v29 = vld [vmem:[%s3342_s22 + $0x13a0] sm:$0xff]  ;;  %v353_v30 = vld [vmem:[%s3342_s22 + $0x3e8] sm:$0xff] }
 0x124   : > { %1886 = vmatpush.msra.mxu3 %v784_v31  ;;  %1860 = vmatpush.msrb.mxu0 %v279_v34  ;;  %v857_v31 = vld [vmem:[%s3342_s22 + $0x13a8] sm:$0xff]  ;;  %v820_v33 = vld [vmem:[%s3342_s22 + $0x1280] sm:$0xff] }
 0x125   : > { %1926 = vmatpush.msra.mxu2 %v785_v32  ;;  %1821 = vmatpush.msrb.mxu1 %v242_v37  ;;  %v316_v32 = vld [vmem:[%s3342_s22 + $0x2c0] sm:$0xff]  ;;  %v317_v34 = vld [vmem:[%s3342_s22 + $0x2c8] sm:$0xff]  ;;  %v787_v37 = vld [vmem:[%s3342_s22 + $0x1178] sm:$0xff] }
 0x126   : > { %1887 = vmatpush.msra.mxu3 %v748_v35  ;;  %1861 = vmatpush.msrb.mxu0 %v243_v38  ;;  %v821_v35 = vld [vmem:[%s3342_s22 + $0x1288] sm:$0xff]  ;;  %v280_v38 = vld [vmem:[%s3342_s22 + $0x1a0] sm:$0xff] }
 0x127   : > { %1927 = vmatpush.msra.mxu2 %v749_v36  ;;  %2896 = vmatmul.msk.f32.vlgmr.msra.gmra.mxu1 %vm1242_vm0, %v3779_v20  ;;  %v786_v36 = vld [vmem:[%s3342_s22 + $0x1170] sm:$0xff] }
 0x128   : > { %2897 = vmatmul.msk.f32.vlgmr.msra.gmra.mxu0 %vm1242_vm0, %v3779_v20  ;;  %1888 = vmatpush.msra.mxu3 %v712_v39  ;;  %v281_v39 = vld [vmem:[%s3342_s22 + $0x1a8] sm:$0xff] }
 0x129   : > { %1910 = vmatpush.msra.mxu1 %v1216_v41  ;;  %1928 = vmatpush.msra.mxu2 %v713_v44  ;;  %v1423_v50 = vpop.f32.mrf.mxu3  ;;  %v750_v41 = vld [vmem:[%s3342_s22 + $0x1050] sm:$0xff]  ;;  %v751_v44 = vld [vmem:[%s3342_s22 + $0x1058] sm:$0xff] }
 0x12a   : > { %1950 = vmatpush.msra.mxu0 %v1217_v42  ;;  %1889 = vmatpush.msra.mxu3 %v676_v43  ;;  %v1424_v53 = vadd.f32 %v1423_v50, %v3740_v47  ;;  %v1463_v54 = vpop.f32.mrf.mxu2  ;;  %v244_v42 = vld [vmem:[%s3342_s22 + $0x80] sm:$0xff]  ;;  %v245_v43 = vld [vmem:[%s3342_s22 + $0x88] sm:$0xff]  ;;  %v678_v50 = vld [vmem:[%s3342_s22 + $0xe10] sm:$0xff] }
 0x12b   : > { %1911 = vmatpush.msra.mxu1 %v1180_v45  ;;  %1929 = vmatpush.msra.mxu2 %v677_v46  ;;  %v1464_v57 = vadd.f32 %v1463_v54, %v3740_v47  ;;  %v714_v45 = vld [vmem:[%s3342_s22 + $0xf30] sm:$0xff]  ;;  %v1183_v54 = vld [vmem:[%s3342_s22 + $0x1dd8] sm:$0xff] }
 0x12c   : > { %1951 = vmatpush.msra.mxu0 %v1181_v48  ;;  %1890 = vmatpush.msra.mxu3 %v640_v49  ;;  %v1443_v60 = vpop.f32.mrf.mxu1  ;;  %v1218_v46 = vld [vmem:[%s3342_s22 + $0x1ef0] sm:$0xff]  ;;  %v715_v48 = vld [vmem:[%s3342_s22 + $0xf38] sm:$0xff] }
 0x12d   : > { %1912 = vmatpush.msra.mxu1 %v1144_v51  ;;  %1930 = vmatpush.msra.mxu2 %v641_v52  ;;  %v1444_v63 = vadd.f32 %v1443_v60, %v1424_v53  ;;  %v1483_v0 = vpop.f32.mrf.mxu0  ;;  %v1219_v49 = vld [vmem:[%s3342_s22 + $0x1ef8] sm:$0xff]  ;;  %v1182_v51 = vld [vmem:[%s3342_s22 + $0x1dd0] sm:$0xff] }
 0x12e   : > { %1952 = vmatpush.msra.mxu0 %v1145_v55  ;;  %1891 = vmatpush.msra.mxu3 %v604_v56  ;;  %v1484_v3 = vadd.f32 %v1483_v0, %v1464_v57  ;;  %v679_v52 = vld [vmem:[%s3342_s22 + $0xe18] sm:$0xff]  ;;  %v642_v55 = vld [vmem:[%s3342_s22 + $0xcf0] sm:$0xff] }
 0x12f   : > { %1913 = vmatpush.msra.mxu1 %v1108_v58  ;;  %1931 = vmatpush.msra.mxu2 %v605_v59  ;;  %v2690_v6 = vmax.f32 %v1444_v63, 0.0  ;;  %v1146_v59 = vld [vmem:[%s3342_s22 + $0x1cb0] sm:$0xff]  ;;  %v643_v60 = vld [vmem:[%s3342_s22 + $0xcf8] sm:$0xff] }
 0x130   : > { %1953 = vmatpush.msra.mxu0 %v1109_v61  ;;  %1892 = vmatpush.msra.mxu3 %v568_v62  ;;  %v2691_v9 = vmax.f32 %v1484_v3, 0.0  ;;  %v1147_v63 = vld [vmem:[%s3342_s22 + $0x1cb8] sm:$0xff]  ;;  %v606_v0 = vld [vmem:[%s3342_s22 + $0xbd0] sm:$0xff] }
 0x131   : > { %1914 = vmatpush.msra.mxu1 %v1072_v1  ;;  %1932 = vmatpush.msra.mxu2 %v569_v2  ;;  %2726 = vst [vmem:[%s3761_s26 + $0x20] sm:$0xff] %v2690_v6  ;;  %v1110_v2 = vld [vmem:[%s3342_s22 + $0x1b90] sm:$0xff]  ;;  %v607_v3 = vld [vmem:[%s3342_s22 + $0xbd8] sm:$0xff] }
 0x132   : > { %1954 = vmatpush.msra.mxu0 %v1073_v4  ;;  %1893 = vmatpush.msra.mxu3 %v532_v5  ;;  %2727 = vst [vmem:[%s3761_s26 + $0x28] sm:$0xff] %v2691_v9  ;;  %v1111_v5 = vld [vmem:[%s3342_s22 + $0x1b98] sm:$0xff]  ;;  %v570_v6 = vld [vmem:[%s3342_s22 + $0xab0] sm:$0xff] }
 0x133   : > { %1915 = vmatpush.msra.mxu1 %v1036_v7  ;;  %1933 = vmatpush.msra.mxu2 %v533_v8  ;;  %v1074_v8 = vld [vmem:[%s3342_s22 + $0x1a70] sm:$0xff]  ;;  %v571_v9 = vld [vmem:[%s3342_s22 + $0xab8] sm:$0xff] }
 0x134   : > { %1955 = vmatpush.msra.mxu0 %v1037_v10  ;;  %1894 = vmatpush.msra.mxu3 %v496_v11  ;;  %v1075_v11 = vld [vmem:[%s3342_s22 + $0x1a78] sm:$0xff] }
 0x135   : > { %1916 = vmatpush.msra.mxu1 %v1000_v12  ;;  %1934 = vmatpush.msra.mxu2 %v497_v13  ;;  %v534_v12 = vld [vmem:[%s3342_s22 + $0x990] sm:$0xff] }
 0x136   : > { %1956 = vmatpush.msra.mxu0 %v1001_v14  ;;  %1895 = vmatpush.msra.mxu3 %v460_v15  ;;  %v1038_v13 = vld [vmem:[%s3342_s22 + $0x1950] sm:$0xff]  ;;  %v535_v14 = vld [vmem:[%s3342_s22 + $0x998] sm:$0xff] }
 0x137   : > { %1917 = vmatpush.msra.mxu1 %v964_v16  ;;  %1935 = vmatpush.msra.mxu2 %v461_v17  ;;  %v1039_v15 = vld [vmem:[%s3342_s22 + $0x1958] sm:$0xff]  ;;  %v498_v16 = vld [vmem:[%s3342_s22 + $0x870] sm:$0xff] }
 0x138   : > { %1957 = vmatpush.msra.mxu0 %v965_v18  ;;  %1896 = vmatpush.msra.mxu3 %v424_v19  ;;  %v1002_v17 = vld [vmem:[%s3342_s22 + $0x1830] sm:$0xff]  ;;  %v499_v18 = vld [vmem:[%s3342_s22 + $0x878] sm:$0xff] }
 0x139   : > { %1918 = vmatpush.msra.mxu1 %v928_v21  ;;  %1936 = vmatpush.msra.mxu2 %v425_v22  ;;  %v1003_v19 = vld [vmem:[%s3342_s22 + $0x1838] sm:$0xff]  ;;  %v462_v21 = vld [vmem:[%s3342_s22 + $0x750] sm:$0xff] }
 0x13a   : > { %1958 = vmatpush.msra.mxu0 %v929_v23  ;;  %1897 = vmatpush.msra.mxu3 %v388_v24  ;;  %v966_v22 = vld [vmem:[%s3342_s22 + $0x1710] sm:$0xff]  ;;  %v463_v23 = vld [vmem:[%s3342_s22 + $0x758] sm:$0xff] }
 0x13b   : > { %1919 = vmatpush.msra.mxu1 %v892_v40  ;;  %1937 = vmatpush.msra.mxu2 %v389_v25  ;;  %v967_v24 = vld [vmem:[%s3342_s22 + $0x1718] sm:$0xff]  ;;  %v426_v40 = vld [vmem:[%s3342_s22 + $0x630] sm:$0xff] }
 0x13c   : > { %1959 = vmatpush.msra.mxu0 %v893_v26  ;;  %2898 = vmatmul.msk.f32.vlgmr.msrb.gmra.mxu3 %vm1242_vm0, %v3779_v20  ;;  %v930_v25 = vld [vmem:[%s3342_s22 + $0x15f0] sm:$0xff]  ;;  %v427_v26 = vld [vmem:[%s3342_s22 + $0x638] sm:$0xff] }
 0x13d   : > { %2899 = vmatmul.msk.f32.vlgmr.msrb.gmra.mxu2 %vm1242_vm0, %v3779_v20  ;;  %1898 = vmatpush.msra.mxu3 %v352_v27  ;;  %v931_v27 = vld [vmem:[%s3342_s22 + $0x15f8] sm:$0xff] }
 0x13e   : > { %1920 = vmatpush.msra.mxu1 %v856_v29  ;;  %1938 = vmatpush.msra.mxu2 %v353_v30  ;;  %v390_v29 = vld [vmem:[%s3342_s22 + $0x510] sm:$0xff] }
 0x13f   : > { %1960 = vmatpush.msra.mxu0 %v857_v31  ;;  %1899 = vmatpush.msra.mxu3 %v316_v32  ;;  %v894_v30 = vld [vmem:[%s3342_s22 + $0x14d0] sm:$0xff]  ;;  %v391_v31 = vld [vmem:[%s3342_s22 + $0x518] sm:$0xff] }
 0x140   : > { %1921 = vmatpush.msra.mxu1 %v820_v33  ;;  %1939 = vmatpush.msra.mxu2 %v317_v34  ;;  %v895_v32 = vld [vmem:[%s3342_s22 + $0x14d8] sm:$0xff]  ;;  %v354_v33 = vld [vmem:[%s3342_s22 + $0x3f0] sm:$0xff] }
 0x141   : > { %1961 = vmatpush.msra.mxu0 %v821_v35  ;;  %1822 = vmatmul.f32.vlgmr.msrb.gmra.mxu1 %v3793_v28  ;;  %v858_v34 = vld [vmem:[%s3342_s22 + $0x13b0] sm:$0xff]  ;;  %v355_v35 = vld [vmem:[%s3342_s22 + $0x3f8] sm:$0xff] }
 0x142   : > { %1862 = vmatmul.f32.vlgmr.msrb.gmra.mxu0 %v3793_v28  ;;  %1966 = vmatpush.msrb.mxu1 %v786_v36  ;;  %v859_v36 = vld [vmem:[%s3342_s22 + $0x13b8] sm:$0xff] }
 0x143   : > { %2006 = vmatpush.msrb.mxu0 %v787_v37  ;;  %1900 = vmatpush.msra.mxu3 %v280_v38  ;;  %v318_v37 = vld [vmem:[%s3342_s22 + $0x2d0] sm:$0xff] }
 0x144   : > { %1940 = vmatpush.msra.mxu2 %v281_v39  ;;  %1967 = vmatpush.msrb.mxu1 %v750_v41  ;;  %v822_v38 = vld [vmem:[%s3342_s22 + $0x1290] sm:$0xff]  ;;  %v319_v39 = vld [vmem:[%s3342_s22 + $0x2d8] sm:$0xff] }
 0x145   : > { %2007 = vmatpush.msrb.mxu0 %v751_v44  ;;  %1901 = vmatpush.msra.mxu3 %v244_v42  ;;  %v823_v41 = vld [vmem:[%s3342_s22 + $0x1298] sm:$0xff]  ;;  %v788_v44 = vld [vmem:[%s3342_s22 + $0x1180] sm:$0xff]  ;;  %v789_v42 = vld [vmem:[%s3342_s22 + $0x1188] sm:$0xff] }
 0x146   : > { %1941 = vmatpush.msra.mxu2 %v245_v43  ;;  %1968 = vmatpush.msrb.mxu1 %v714_v45  ;;  %v1503_v53 = vpop.f32.mrf.mxu1  ;;  %v282_v43 = vld [vmem:[%s3342_s22 + $0x1b0] sm:$0xff]  ;;  %v752_v45 = vld [vmem:[%s3342_s22 + $0x1060] sm:$0xff] }
 0x147   : > { %1990 = vmatpush.msrb.mxu3 %v1218_v46  ;;  %2008 = vmatpush.msrb.mxu0 %v715_v48  ;;  %v1504_v56 = vadd.f32 %v1503_v53, %v3740_v47  ;;  %v1543_v57 = vpop.f32.mrf.mxu0  ;;  %v1523_v58 = vpop.f32.mrf.mxu3  ;;  %v753_v46 = vld [vmem:[%s3342_s22 + $0x1068] sm:$0xff]  ;;  %v246_v48 = vld [vmem:[%s3342_s22 + $0x90] sm:$0xff] }
 0x148   : > { %2030 = vmatpush.msrb.mxu2 %v1219_v49  ;;  %1969 = vmatpush.msrb.mxu1 %v678_v50  ;;  %v1544_v61 = vadd.f32 %v1543_v57, %v3740_v47  ;;  %v1563_v62 = vpop.f32.mrf.mxu2  ;;  %v247_v49 = vld [vmem:[%s3342_s22 + $0x98] sm:$0xff]  ;;  %v716_v50 = vld [vmem:[%s3342_s22 + $0xf40] sm:$0xff]  ;;  %v1221_v53 = vld [vmem:[%s3342_s22 + $0x1f08] sm:$0xff] }
 0x149   : > { %1991 = vmatpush.msrb.mxu3 %v1182_v51  ;;  %2009 = vmatpush.msrb.mxu0 %v679_v52  ;;  %v1524_v1 = vadd.f32 %v1523_v58, %v1504_v56  ;;  %v1220_v51 = vld [vmem:[%s3342_s22 + $0x1f00] sm:$0xff]  ;;  %v717_v52 = vld [vmem:[%s3342_s22 + $0xf48] sm:$0xff] }
 0x14a   : > { %2031 = vmatpush.msrb.mxu2 %v1183_v54  ;;  %1970 = vmatpush.msrb.mxu1 %v642_v55  ;;  %v1564_v4 = vadd.f32 %v1563_v62, %v1544_v61  ;;  %v680_v54 = vld [vmem:[%s3342_s22 + $0xe20] sm:$0xff]  ;;  %v681_v56 = vld [vmem:[%s3342_s22 + $0xe28] sm:$0xff] }
 0x14b   : > { %1992 = vmatpush.msrb.mxu3 %v1146_v59  ;;  %2010 = vmatpush.msrb.mxu0 %v643_v60  ;;  %v2692_v7 = vmax.f32 %v1524_v1, 0.0  ;;  %v1184_v55 = vld [vmem:[%s3342_s22 + $0x1de0] sm:$0xff]  ;;  %v1185_v57 = vld [vmem:[%s3342_s22 + $0x1de8] sm:$0xff] }
 0x14c   : > { %2032 = vmatpush.msrb.mxu2 %v1147_v63  ;;  %1971 = vmatpush.msrb.mxu1 %v606_v0  ;;  %v2693_v10 = vmax.f32 %v1564_v4, 0.0  ;;  %v644_v58 = vld [vmem:[%s3342_s22 + $0xd00] sm:$0xff]  ;;  %v645_v61 = vld [vmem:[%s3342_s22 + $0xd08] sm:$0xff] }
 0x14d   : > { %1993 = vmatpush.msrb.mxu3 %v1110_v2  ;;  %2011 = vmatpush.msrb.mxu0 %v607_v3  ;;  %2728 = vst [vmem:[%s3761_s26 + $0x30] sm:$0xff] %v2692_v7  ;;  %v1148_v60 = vld [vmem:[%s3342_s22 + $0x1cc0] sm:$0xff]  ;;  %v1149_v63 = vld [vmem:[%s3342_s22 + $0x1cc8] sm:$0xff] }
 0x14e   : > { %2033 = vmatpush.msrb.mxu2 %v1111_v5  ;;  %1972 = vmatpush.msrb.mxu1 %v570_v6  ;;  %2729 = vst [vmem:[%s3761_s26 + $0x38] sm:$0xff] %v2693_v10  ;;  %v608_v0 = vld [vmem:[%s3342_s22 + $0xbe0] sm:$0xff]  ;;  %v609_v3 = vld [vmem:[%s3342_s22 + $0xbe8] sm:$0xff] }
 0x14f   : > { %1994 = vmatpush.msrb.mxu3 %v1074_v8  ;;  %2012 = vmatpush.msrb.mxu0 %v571_v9  ;;  %v1112_v2 = vld [vmem:[%s3342_s22 + $0x1ba0] sm:$0xff]  ;;  %v1113_v5 = vld [vmem:[%s3342_s22 + $0x1ba8] sm:$0xff] }
 0x150   : > { %2034 = vmatpush.msrb.mxu2 %v1075_v11  ;;  %1973 = vmatpush.msrb.mxu1 %v534_v12  ;;  %v572_v6 = vld [vmem:[%s3342_s22 + $0xac0] sm:$0xff]  ;;  %v573_v10 = vld [vmem:[%s3342_s22 + $0xac8] sm:$0xff] }
 0x151   : > { %1995 = vmatpush.msrb.mxu3 %v1038_v13  ;;  %2013 = vmatpush.msrb.mxu0 %v535_v14  ;;  %v1076_v9 = vld [vmem:[%s3342_s22 + $0x1a80] sm:$0xff]  ;;  %v1077_v12 = vld [vmem:[%s3342_s22 + $0x1a88] sm:$0xff] }
 0x152   : > { %2035 = vmatpush.msrb.mxu2 %v1039_v15  ;;  %1974 = vmatpush.msrb.mxu1 %v498_v16  ;;  %v536_v13 = vld [vmem:[%s3342_s22 + $0x9a0] sm:$0xff]  ;;  %v537_v16 = vld [vmem:[%s3342_s22 + $0x9a8] sm:$0xff] }
 0x153   : > { %1996 = vmatpush.msrb.mxu3 %v1002_v17  ;;  %2014 = vmatpush.msrb.mxu0 %v499_v18  ;;  %v1040_v15 = vld [vmem:[%s3342_s22 + $0x1960] sm:$0xff]  ;;  %v1041_v18 = vld [vmem:[%s3342_s22 + $0x1968] sm:$0xff] }
 0x154   : > { %2036 = vmatpush.msrb.mxu2 %v1003_v19  ;;  %1975 = vmatpush.msrb.mxu1 %v462_v21  ;;  %v500_v19 = vld [vmem:[%s3342_s22 + $0x880] sm:$0xff] }
 0x155   : > { %1997 = vmatpush.msrb.mxu3 %v966_v22  ;;  %2015 = vmatpush.msrb.mxu0 %v463_v23  ;;  %v1004_v21 = vld [vmem:[%s3342_s22 + $0x1840] sm:$0xff]  ;;  %v501_v22 = vld [vmem:[%s3342_s22 + $0x888] sm:$0xff] }
 0x156   : > { %2037 = vmatpush.msrb.mxu2 %v967_v24  ;;  %1976 = vmatpush.msrb.mxu1 %v426_v40  ;;  %v1005_v23 = vld [vmem:[%s3342_s22 + $0x1848] sm:$0xff]  ;;  %v464_v24 = vld [vmem:[%s3342_s22 + $0x760] sm:$0xff] }
 0x157   : > { %1998 = vmatpush.msrb.mxu3 %v930_v25  ;;  %2016 = vmatpush.msrb.mxu0 %v427_v26  ;;  %v968_v40 = vld [vmem:[%s3342_s22 + $0x1720] sm:$0xff]  ;;  %v465_v25 = vld [vmem:[%s3342_s22 + $0x768] sm:$0xff] }
 0x158   : > { %2038 = vmatpush.msrb.mxu2 %v931_v27  ;;  %1977 = vmatpush.msrb.mxu1 %v390_v29  ;;  %v969_v26 = vld [vmem:[%s3342_s22 + $0x1728] sm:$0xff]  ;;  %v428_v27 = vld [vmem:[%s3342_s22 + $0x640] sm:$0xff] }
 0x159   : > { %1999 = vmatpush.msrb.mxu3 %v894_v30  ;;  %2017 = vmatpush.msrb.mxu0 %v391_v31  ;;  %v932_v29 = vld [vmem:[%s3342_s22 + $0x1600] sm:$0xff]  ;;  %v429_v30 = vld [vmem:[%s3342_s22 + $0x648] sm:$0xff] }
 0x15a   : > { %2039 = vmatpush.msrb.mxu2 %v895_v32  ;;  %1902 = vmatmul.f32.vlgmr.msra.gmra.mxu3 %v3793_v28  ;;  %v933_v31 = vld [vmem:[%s3342_s22 + $0x1608] sm:$0xff]  ;;  %v392_v32 = vld [vmem:[%s3342_s22 + $0x520] sm:$0xff] }
 0x15b   : > { %1942 = vmatmul.f32.vlgmr.msra.gmra.mxu2 %v3793_v28  ;;  %1978 = vmatpush.msrb.mxu1 %v354_v33  ;;  %v283_v28 = vld [vmem:[%s3342_s22 + $0x1b8] sm:$0xff]  ;;  %v896_v33 = vld [vmem:[%s3342_s22 + $0x14e0] sm:$0xff] }
 0x15c   : > { %2000 = vmatpush.msrb.mxu3 %v858_v34  ;;  %2018 = vmatpush.msrb.mxu0 %v355_v35  ;;  %v393_v34 = vld [vmem:[%s3342_s22 + $0x528] sm:$0xff] }
 0x15d   : > { %2040 = vmatpush.msrb.mxu2 %v859_v36  ;;  %1979 = vmatpush.msrb.mxu1 %v318_v37  ;;  %v897_v35 = vld [vmem:[%s3342_s22 + $0x14e8] sm:$0xff]  ;;  %v356_v36 = vld [vmem:[%s3342_s22 + $0x400] sm:$0xff] }
 0x15e   : > { %2001 = vmatpush.msrb.mxu3 %v822_v38  ;;  %2019 = vmatpush.msrb.mxu0 %v319_v39  ;;  %v860_v37 = vld [vmem:[%s3342_s22 + $0x13c0] sm:$0xff]  ;;  %v357_v38 = vld [vmem:[%s3342_s22 + $0x408] sm:$0xff]  ;;  %v4047_v39 = vld [vmem:[#allocation2 + $0x8] sm:$0xff] }
 0x15f   : > { %2041 = vmatpush.msrb.mxu2 %v823_v41  ;;  %1980 = vmatpush.msrb.mxu1 %v282_v43  ;;  %v861_v41 = vld [vmem:[%s3342_s22 + $0x13c8] sm:$0xff] }
 0x160   : > { %2046 = vmatpush.msra.mxu3 %v788_v44  ;;  %2020 = vmatpush.msrb.mxu0 %v283_v28  ;;  %v320_v44 = vld [vmem:[%s3342_s22 + $0x2e0] sm:$0xff]  ;;  %v321_v43 = vld [vmem:[%s3342_s22 + $0x2e8] sm:$0xff] }
 0x161   : > { %2086 = vmatpush.msra.mxu2 %v789_v42  ;;  %1981 = vmatpush.msrb.mxu1 %v246_v48  ;;  %v824_v42 = vld [vmem:[%s3342_s22 + $0x12a0] sm:$0xff]  ;;  %v825_v28 = vld [vmem:[%s3342_s22 + $0x12a8] sm:$0xff] }
 0x162   : > { %2047 = vmatpush.msra.mxu3 %v752_v45  ;;  %2021 = vmatpush.msrb.mxu0 %v247_v49  ;;  %v790_v45 = vld [vmem:[%s3342_s22 + $0x1190] sm:$0xff]  ;;  %v284_v48 = vld [vmem:[%s3342_s22 + $0x1c0] sm:$0xff] }
 0x163   : > { %2087 = vmatpush.msra.mxu2 %v753_v46  ;;  %2900 = vmatmul.msk.f32.vlgmr.msra.gmra.mxu1 %vm1242_vm0, %v3779_v20  ;;  %v791_v46 = vld [vmem:[%s3342_s22 + $0x1198] sm:$0xff]  ;;  %v4061_v49 = vld [vmem:[#allocation2] sm:$0xff] }
 0x164   : > { %2901 = vmatmul.msk.f32.vlgmr.msra.gmra.mxu0 %vm1242_vm0, %v3779_v20  ;;  %2048 = vmatpush.msra.mxu3 %v716_v50  ;;  %v285_v50 = vld [vmem:[%s3342_s22 + $0x1c8] sm:$0xff] }
 0x165   : > { %2070 = vmatpush.msra.mxu1 %v1220_v51  ;;  %2088 = vmatpush.msra.mxu2 %v717_v52  ;;  %v1583_v59 = vpop.f32.mrf.mxu3  ;;  %v754_v51 = vld [vmem:[%s3342_s22 + $0x1070] sm:$0xff]  ;;  %v755_v52 = vld [vmem:[%s3342_s22 + $0x1078] sm:$0xff] }
 0x166   : > { %2110 = vmatpush.msra.mxu0 %v1221_v53  ;;  %2049 = vmatpush.msra.mxu3 %v680_v54  ;;  %v1584_v20 = vadd.f32 %v1583_v59, %v3740_v47  ;;  %v1623_v62 = vpop.f32.mrf.mxu2  ;;  %v248_v53 = vld [vmem:[%s3342_s22 + $0xa0] sm:$0xff]  ;;  %v249_v54 = vld [vmem:[%s3342_s22 + $0xa8] sm:$0xff]  ;;  %v682_v59 = vld [vmem:[%s3342_s22 + $0xe30] sm:$0xff] }
 0x167   : > { %2071 = vmatpush.msra.mxu1 %v1184_v55  ;;  %2089 = vmatpush.msra.mxu2 %v681_v56  ;;  %v1624_v1 = vadd.f32 %v1623_v62, %v3740_v47  ;;  %v718_v55 = vld [vmem:[%s3342_s22 + $0xf50] sm:$0xff]  ;;  %v1187_v62 = vld [vmem:[%s3342_s22 + $0x1df8] sm:$0xff] }
 0x168   : > { %2111 = vmatpush.msra.mxu0 %v1185_v57  ;;  %2050 = vmatpush.msra.mxu3 %v644_v58  ;;  %v1603_v4 = vpop.f32.mrf.mxu1  ;;  %v1222_v56 = vld [vmem:[%s3342_s22 + $0x1f10] sm:$0xff]  ;;  %v719_v57 = vld [vmem:[%s3342_s22 + $0xf58] sm:$0xff] }
 0x169   : > { %2072 = vmatpush.msra.mxu1 %v1148_v60  ;;  %2090 = vmatpush.msra.mxu2 %v645_v61  ;;  %v1604_v7 = vadd.f32 %v1603_v4, %v1584_v20  ;;  %v1643_v8 = vpop.f32.mrf.mxu0  ;;  %v1223_v58 = vld [vmem:[%s3342_s22 + $0x1f18] sm:$0xff]  ;;  %v1186_v60 = vld [vmem:[%s3342_s22 + $0x1df0] sm:$0xff] }
 0x16a   : > { %2112 = vmatpush.msra.mxu0 %v1149_v63  ;;  %2051 = vmatpush.msra.mxu3 %v608_v0  ;;  %v1644_v11 = vadd.f32 %v1643_v8, %v1624_v1  ;;  %v683_v61 = vld [vmem:[%s3342_s22 + $0xe38] sm:$0xff]  ;;  %v646_v63 = vld [vmem:[%s3342_s22 + $0xd10] sm:$0xff] }
 0x16b   : > { %2073 = vmatpush.msra.mxu1 %v1112_v2  ;;  %2091 = vmatpush.msra.mxu2 %v609_v3  ;;  %v2694_v14 = vmax.f32 %v1604_v7, 0.0  ;;  %v1150_v3 = vld [vmem:[%s3342_s22 + $0x1cd0] sm:$0xff]  ;;  %v647_v4 = vld [vmem:[%s3342_s22 + $0xd18] sm:$0xff] }
 0x16c   : > { %2113 = vmatpush.msra.mxu0 %v1113_v5  ;;  %2052 = vmatpush.msra.mxu3 %v572_v6  ;;  %v2695_v17 = vmax.f32 %v1644_v11, 0.0  ;;  %v1151_v7 = vld [vmem:[%s3342_s22 + $0x1cd8] sm:$0xff]  ;;  %v610_v8 = vld [vmem:[%s3342_s22 + $0xbf0] sm:$0xff] }
 0x16d   : > { %2074 = vmatpush.msra.mxu1 %v1076_v9  ;;  %2092 = vmatpush.msra.mxu2 %v573_v10  ;;  %2730 = vst [vmem:[%s3761_s26 + $0x40] sm:$0xff] %v2694_v14  ;;  %v1114_v10 = vld [vmem:[%s3342_s22 + $0x1bb0] sm:$0xff]  ;;  %v611_v11 = vld [vmem:[%s3342_s22 + $0xbf8] sm:$0xff] }
 0x16e   : > { %2114 = vmatpush.msra.mxu0 %v1077_v12  ;;  %2053 = vmatpush.msra.mxu3 %v536_v13  ;;  %2731 = vst [vmem:[%s3761_s26 + $0x48] sm:$0xff] %v2695_v17  ;;  %v1115_v13 = vld [vmem:[%s3342_s22 + $0x1bb8] sm:$0xff]  ;;  %v574_v14 = vld [vmem:[%s3342_s22 + $0xad0] sm:$0xff] }
 0x16f   : > { %2075 = vmatpush.msra.mxu1 %v1040_v15  ;;  %2093 = vmatpush.msra.mxu2 %v537_v16  ;;  %v1078_v16 = vld [vmem:[%s3342_s22 + $0x1a90] sm:$0xff]  ;;  %v575_v17 = vld [vmem:[%s3342_s22 + $0xad8] sm:$0xff] }
 0x170   : > { %2115 = vmatpush.msra.mxu0 %v1041_v18  ;;  %2054 = vmatpush.msra.mxu3 %v500_v19  ;;  %v1079_v19 = vld [vmem:[%s3342_s22 + $0x1a98] sm:$0xff] }
 0x171   : > { %2076 = vmatpush.msra.mxu1 %v1004_v21  ;;  %2094 = vmatpush.msra.mxu2 %v501_v22  ;;  %v538_v21 = vld [vmem:[%s3342_s22 + $0x9b0] sm:$0xff] }
 0x172   : > { %2116 = vmatpush.msra.mxu0 %v1005_v23  ;;  %2055 = vmatpush.msra.mxu3 %v464_v24  ;;  %v1042_v22 = vld [vmem:[%s3342_s22 + $0x1970] sm:$0xff]  ;;  %v539_v23 = vld [vmem:[%s3342_s22 + $0x9b8] sm:$0xff] }
 0x173   : > { %2077 = vmatpush.msra.mxu1 %v968_v40  ;;  %2095 = vmatpush.msra.mxu2 %v465_v25  ;;  %v1043_v24 = vld [vmem:[%s3342_s22 + $0x1978] sm:$0xff]  ;;  %v502_v40 = vld [vmem:[%s3342_s22 + $0x890] sm:$0xff] }
 0x174   : > { %2117 = vmatpush.msra.mxu0 %v969_v26  ;;  %2056 = vmatpush.msra.mxu3 %v428_v27  ;;  %v1006_v25 = vld [vmem:[%s3342_s22 + $0x1850] sm:$0xff]  ;;  %v503_v26 = vld [vmem:[%s3342_s22 + $0x898] sm:$0xff] }
 0x175   : > { %2078 = vmatpush.msra.mxu1 %v932_v29  ;;  %2096 = vmatpush.msra.mxu2 %v429_v30  ;;  %v1007_v27 = vld [vmem:[%s3342_s22 + $0x1858] sm:$0xff]  ;;  %v466_v29 = vld [vmem:[%s3342_s22 + $0x770] sm:$0xff] }
 0x176   : > { %2118 = vmatpush.msra.mxu0 %v933_v31  ;;  %2057 = vmatpush.msra.mxu3 %v392_v32  ;;  %v970_v30 = vld [vmem:[%s3342_s22 + $0x1730] sm:$0xff]  ;;  %v467_v31 = vld [vmem:[%s3342_s22 + $0x778] sm:$0xff] }
 0x177   : > { %2079 = vmatpush.msra.mxu1 %v896_v33  ;;  %2097 = vmatpush.msra.mxu2 %v393_v34  ;;  %v971_v32 = vld [vmem:[%s3342_s22 + $0x1738] sm:$0xff]  ;;  %v430_v33 = vld [vmem:[%s3342_s22 + $0x650] sm:$0xff] }
 0x178   : > { %2119 = vmatpush.msra.mxu0 %v897_v35  ;;  %2902 = vmatmul.msk.f32.vlgmr.msrb.gmra.mxu3 %vm1242_vm0, %v4047_v39  ;;  %v934_v34 = vld [vmem:[%s3342_s22 + $0x1610] sm:$0xff]  ;;  %v431_v35 = vld [vmem:[%s3342_s22 + $0x658] sm:$0xff] }
 0x179   : > { %2903 = vmatmul.msk.f32.vlgmr.msrb.gmra.mxu2 %vm1242_vm0, %v4047_v39  ;;  %2058 = vmatpush.msra.mxu3 %v356_v36  ;;  %v935_v36 = vld [vmem:[%s3342_s22 + $0x1618] sm:$0xff] }
 0x17a   : > { %2080 = vmatpush.msra.mxu1 %v860_v37  ;;  %2098 = vmatpush.msra.mxu2 %v357_v38  ;;  %v394_v37 = vld [vmem:[%s3342_s22 + $0x530] sm:$0xff] }
 0x17b   : > { %2120 = vmatpush.msra.mxu0 %v861_v41  ;;  %2059 = vmatpush.msra.mxu3 %v320_v44  ;;  %v898_v38 = vld [vmem:[%s3342_s22 + $0x14f0] sm:$0xff]  ;;  %v395_v41 = vld [vmem:[%s3342_s22 + $0x538] sm:$0xff] }
 0x17c   : > { %2081 = vmatpush.msra.mxu1 %v824_v42  ;;  %2099 = vmatpush.msra.mxu2 %v321_v43  ;;  %v899_v44 = vld [vmem:[%s3342_s22 + $0x14f8] sm:$0xff]  ;;  %v358_v42 = vld [vmem:[%s3342_s22 + $0x410] sm:$0xff] }
 0x17d   : > { %2121 = vmatpush.msra.mxu0 %v825_v28  ;;  %1982 = vmatmul.f32.vlgmr.msrb.gmra.mxu1 %v4061_v49  ;;  %v862_v43 = vld [vmem:[%s3342_s22 + $0x13d0] sm:$0xff]  ;;  %v359_v28 = vld [vmem:[%s3342_s22 + $0x418] sm:$0xff] }
 0x17e   : > { %2022 = vmatmul.f32.vlgmr.msrb.gmra.mxu0 %v4061_v49  ;;  %2126 = vmatpush.msrb.mxu1 %v790_v45  ;;  %v863_v45 = vld [vmem:[%s3342_s22 + $0x13d8] sm:$0xff] }
 0x17f   : > { %2166 = vmatpush.msrb.mxu0 %v791_v46  ;;  %2060 = vmatpush.msra.mxu3 %v284_v48  ;;  %v322_v46 = vld [vmem:[%s3342_s22 + $0x2f0] sm:$0xff] }
 0x180   : > { %2100 = vmatpush.msra.mxu2 %v285_v50  ;;  %2127 = vmatpush.msrb.mxu1 %v754_v51  ;;  %v826_v48 = vld [vmem:[%s3342_s22 + $0x12b0] sm:$0xff]  ;;  %v323_v50 = vld [vmem:[%s3342_s22 + $0x2f8] sm:$0xff] }
 0x181   : > { %2167 = vmatpush.msrb.mxu0 %v755_v52  ;;  %2061 = vmatpush.msra.mxu3 %v248_v53  ;;  %v827_v51 = vld [vmem:[%s3342_s22 + $0x12b8] sm:$0xff]  ;;  %v792_v52 = vld [vmem:[%s3342_s22 + $0x11a0] sm:$0xff]  ;;  %v793_v53 = vld [vmem:[%s3342_s22 + $0x11a8] sm:$0xff] }
 0x182   : > { %2101 = vmatpush.msra.mxu2 %v249_v54  ;;  %2128 = vmatpush.msrb.mxu1 %v718_v55  ;;  %v1663_v20 = vpop.f32.mrf.mxu1  ;;  %v286_v54 = vld [vmem:[%s3342_s22 + $0x1d0] sm:$0xff]  ;;  %v287_v55 = vld [vmem:[%s3342_s22 + $0x1d8] sm:$0xff] }
 0x183   : > { %2150 = vmatpush.msrb.mxu3 %v1222_v56  ;;  %2168 = vmatpush.msrb.mxu0 %v719_v57  ;;  %v1664_v0 = vadd.f32 %v1663_v20, %v3740_v47  ;;  %v1703_v1 = vpop.f32.mrf.mxu0  ;;  %v1683_v2 = vpop.f32.mrf.mxu3  ;;  %v756_v56 = vld [vmem:[%s3342_s22 + $0x1080] sm:$0xff]  ;;  %v757_v57 = vld [vmem:[%s3342_s22 + $0x1088] sm:$0xff] }
 0x184   : > { %2190 = vmatpush.msrb.mxu2 %v1223_v58  ;;  %2129 = vmatpush.msrb.mxu1 %v682_v59  ;;  %v1704_v5 = vadd.f32 %v1703_v1, %v3740_v47  ;;  %v1723_v6 = vpop.f32.mrf.mxu2  ;;  %v250_v58 = vld [vmem:[%s3342_s22 + $0xb0] sm:$0xff]  ;;  %v251_v59 = vld [vmem:[%s3342_s22 + $0xb8] sm:$0xff]  ;;  %v721_v20 = vld [vmem:[%s3342_s22 + $0xf68] sm:$0xff] }
 0x185   : > { %2151 = vmatpush.msrb.mxu3 %v1186_v60  ;;  %2169 = vmatpush.msrb.mxu0 %v683_v61  ;;  %v1684_v9 = vadd.f32 %v1683_v2, %v1664_v0  ;;  %v720_v60 = vld [vmem:[%s3342_s22 + $0xf60] sm:$0xff]  ;;  %v685_v1 = vld [vmem:[%s3342_s22 + $0xe48] sm:$0xff] }
 0x186   : > { %2191 = vmatpush.msrb.mxu2 %v1187_v62  ;;  %2130 = vmatpush.msrb.mxu1 %v646_v63  ;;  %v1724_v12 = vadd.f32 %v1723_v6, %v1704_v5  ;;  %v1224_v61 = vld [vmem:[%s3342_s22 + $0x1f20] sm:$0xff]  ;;  %v1225_v62 = vld [vmem:[%s3342_s22 + $0x1f28] sm:$0xff] }
 0x187   : > { %2152 = vmatpush.msrb.mxu3 %v1150_v3  ;;  %2170 = vmatpush.msrb.mxu0 %v647_v4  ;;  %v2696_v15 = vmax.f32 %v1684_v9, 0.0  ;;  %v684_v63 = vld [vmem:[%s3342_s22 + $0xe40] sm:$0xff]  ;;  %v1189_v2 = vld [vmem:[%s3342_s22 + $0x1e08] sm:$0xff] }
 0x188   : > { %2192 = vmatpush.msrb.mxu2 %v1151_v7  ;;  %2131 = vmatpush.msrb.mxu1 %v610_v8  ;;  %v2697_v18 = vmax.f32 %v1724_v12, 0.0  ;;  %v1188_v0 = vld [vmem:[%s3342_s22 + $0x1e00] sm:$0xff]  ;;  %v649_v6 = vld [vmem:[%s3342_s22 + $0xd28] sm:$0xff] }
 0x189   : > { %2153 = vmatpush.msrb.mxu3 %v1114_v10  ;;  %2171 = vmatpush.msrb.mxu0 %v611_v11  ;;  %2732 = vst [vmem:[%s3761_s26 + $0x50] sm:$0xff] %v2696_v15  ;;  %v648_v3 = vld [vmem:[%s3342_s22 + $0xd20] sm:$0xff]  ;;  %v1153_v9 = vld [vmem:[%s3342_s22 + $0x1ce8] sm:$0xff] }
 0x18a   : > { %2193 = vmatpush.msrb.mxu2 %v1115_v13  ;;  %2132 = vmatpush.msrb.mxu1 %v574_v14  ;;  %2733 = vst [vmem:[%s3761_s26 + $0x58] sm:$0xff] %v2697_v18  ;;  %v1152_v5 = vld [vmem:[%s3342_s22 + $0x1ce0] sm:$0xff]  ;;  %v613_v13 = vld [vmem:[%s3342_s22 + $0xc08] sm:$0xff] }
 0x18b   : > { %2154 = vmatpush.msrb.mxu3 %v1078_v16  ;;  %2172 = vmatpush.msrb.mxu0 %v575_v17  ;;  %v612_v10 = vld [vmem:[%s3342_s22 + $0xc00] sm:$0xff]  ;;  %v1117_v15 = vld [vmem:[%s3342_s22 + $0x1bc8] sm:$0xff] }
 0x18c   : > { %2194 = vmatpush.msrb.mxu2 %v1079_v19  ;;  %2133 = vmatpush.msrb.mxu1 %v538_v21  ;;  %v1116_v12 = vld [vmem:[%s3342_s22 + $0x1bc0] sm:$0xff]  ;;  %v577_v21 = vld [vmem:[%s3342_s22 + $0xae8] sm:$0xff] }
 0x18d   : > { %2155 = vmatpush.msrb.mxu3 %v1042_v22  ;;  %2173 = vmatpush.msrb.mxu0 %v539_v23  ;;  %v576_v16 = vld [vmem:[%s3342_s22 + $0xae0] sm:$0xff]  ;;  %v1081_v23 = vld [vmem:[%s3342_s22 + $0x1aa8] sm:$0xff] }
 0x18e   : > { %2195 = vmatpush.msrb.mxu2 %v1043_v24  ;;  %2134 = vmatpush.msrb.mxu1 %v502_v40  ;;  %v1080_v19 = vld [vmem:[%s3342_s22 + $0x1aa0] sm:$0xff] }
 0x18f   : > { %2156 = vmatpush.msrb.mxu3 %v1006_v25  ;;  %2174 = vmatpush.msrb.mxu0 %v503_v26  ;;  %v540_v24 = vld [vmem:[%s3342_s22 + $0x9c0] sm:$0xff]  ;;  %v541_v26 = vld [vmem:[%s3342_s22 + $0x9c8] sm:$0xff] }
 0x190   : > { %2196 = vmatpush.msrb.mxu2 %v1007_v27  ;;  %2135 = vmatpush.msrb.mxu1 %v466_v29  ;;  %v1044_v25 = vld [vmem:[%s3342_s22 + $0x1980] sm:$0xff]  ;;  %v1045_v29 = vld [vmem:[%s3342_s22 + $0x1988] sm:$0xff] }
 0x191   : > { %2157 = vmatpush.msrb.mxu3 %v970_v30  ;;  %2175 = vmatpush.msrb.mxu0 %v467_v31  ;;  %v504_v30 = vld [vmem:[%s3342_s22 + $0x8a0] sm:$0xff] }
 0x192   : > { %2197 = vmatpush.msrb.mxu2 %v971_v32  ;;  %2136 = vmatpush.msrb.mxu1 %v430_v33  ;;  %v1008_v31 = vld [vmem:[%s3342_s22 + $0x1860] sm:$0xff]  ;;  %v505_v32 = vld [vmem:[%s3342_s22 + $0x8a8] sm:$0xff] }
 0x193   : > { %2158 = vmatpush.msrb.mxu3 %v934_v34  ;;  %2176 = vmatpush.msrb.mxu0 %v431_v35  ;;  %v1009_v33 = vld [vmem:[%s3342_s22 + $0x1868] sm:$0xff]  ;;  %v468_v34 = vld [vmem:[%s3342_s22 + $0x780] sm:$0xff] }
 0x194   : > { %2198 = vmatpush.msrb.mxu2 %v935_v36  ;;  %2137 = vmatpush.msrb.mxu1 %v394_v37  ;;  %v972_v35 = vld [vmem:[%s3342_s22 + $0x1740] sm:$0xff]  ;;  %v469_v36 = vld [vmem:[%s3342_s22 + $0x788] sm:$0xff] }
 0x195   : > { %2159 = vmatpush.msrb.mxu3 %v898_v38  ;;  %2177 = vmatpush.msrb.mxu0 %v395_v41  ;;  %v973_v37 = vld [vmem:[%s3342_s22 + $0x1748] sm:$0xff]  ;;  %v432_v38 = vld [vmem:[%s3342_s22 + $0x660] sm:$0xff] }
 0x196   : > { %2199 = vmatpush.msrb.mxu2 %v899_v44  ;;  %2062 = vmatmul.f32.vlgmr.msra.gmra.mxu3 %v4061_v49  ;;  %v936_v41 = vld [vmem:[%s3342_s22 + $0x1620] sm:$0xff]  ;;  %v433_v44 = vld [vmem:[%s3342_s22 + $0x668] sm:$0xff] }
 0x197   : > { %2102 = vmatmul.f32.vlgmr.msra.gmra.mxu2 %v4061_v49  ;;  %2138 = vmatpush.msrb.mxu1 %v358_v42  ;;  %v937_v42 = vld [vmem:[%s3342_s22 + $0x1628] sm:$0xff] }
 0x198   : > { %2160 = vmatpush.msrb.mxu3 %v862_v43  ;;  %2178 = vmatpush.msrb.mxu0 %v359_v28  ;;  %v396_v43 = vld [vmem:[%s3342_s22 + $0x540] sm:$0xff] }
 0x199   : > { %2200 = vmatpush.msrb.mxu2 %v863_v45  ;;  %2139 = vmatpush.msrb.mxu1 %v322_v46  ;;  %v900_v28 = vld [vmem:[%s3342_s22 + $0x1500] sm:$0xff]  ;;  %v397_v45 = vld [vmem:[%s3342_s22 + $0x548] sm:$0xff] }
 0x19a   : > { %2161 = vmatpush.msrb.mxu3 %v826_v48  ;;  %2179 = vmatpush.msrb.mxu0 %v323_v50  ;;  %v901_v46 = vld [vmem:[%s3342_s22 + $0x1508] sm:$0xff]  ;;  %v360_v48 = vld [vmem:[%s3342_s22 + $0x420] sm:$0xff] }
 0x19b   : > { %2201 = vmatpush.msrb.mxu2 %v827_v51  ;;  %2140 = vmatpush.msrb.mxu1 %v286_v54  ;;  %v864_v50 = vld [vmem:[%s3342_s22 + $0x13e0] sm:$0xff]  ;;  %v361_v51 = vld [vmem:[%s3342_s22 + $0x428] sm:$0xff] }
 0x19c   : > { %2206 = vmatpush.msra.mxu3 %v792_v52  ;;  %2180 = vmatpush.msrb.mxu0 %v287_v55  ;;  %v865_v52 = vld [vmem:[%s3342_s22 + $0x13e8] sm:$0xff]  ;;  %v828_v54 = vld [vmem:[%s3342_s22 + $0x12c0] sm:$0xff] }
 0x19d   : > { %2246 = vmatpush.msra.mxu2 %v793_v53  ;;  %2141 = vmatpush.msrb.mxu1 %v250_v58  ;;  %v324_v53 = vld [vmem:[%s3342_s22 + $0x300] sm:$0xff]  ;;  %v325_v55 = vld [vmem:[%s3342_s22 + $0x308] sm:$0xff]  ;;  %v795_v58 = vld [vmem:[%s3342_s22 + $0x11b8] sm:$0xff] }
 0x19e   : > { %2207 = vmatpush.msra.mxu3 %v756_v56  ;;  %2181 = vmatpush.msrb.mxu0 %v251_v59  ;;  %v829_v56 = vld [vmem:[%s3342_s22 + $0x12c8] sm:$0xff]  ;;  %v288_v59 = vld [vmem:[%s3342_s22 + $0x1e0] sm:$0xff] }
 0x19f   : > { %2247 = vmatpush.msra.mxu2 %v757_v57  ;;  %2904 = vmatmul.msk.f32.vlgmr.msra.gmra.mxu1 %vm1242_vm0, %v4047_v39  ;;  %v794_v57 = vld [vmem:[%s3342_s22 + $0x11b0] sm:$0xff] }
 0x1a0   : > { %2905 = vmatmul.msk.f32.vlgmr.msra.gmra.mxu0 %vm1242_vm0, %v4047_v39  ;;  %2208 = vmatpush.msra.mxu3 %v720_v60  ;;  %v289_v60 = vld [vmem:[%s3342_s22 + $0x1e8] sm:$0xff] }
 0x1a1   : > { %2230 = vmatpush.msra.mxu1 %v1224_v61  ;;  %2248 = vmatpush.msra.mxu2 %v721_v20  ;;  %v1743_v4 = vpop.f32.mrf.mxu3  ;;  %v758_v61 = vld [vmem:[%s3342_s22 + $0x1090] sm:$0xff]  ;;  %v759_v20 = vld [vmem:[%s3342_s22 + $0x1098] sm:$0xff] }
 0x1a2   : > { %2270 = vmatpush.msra.mxu0 %v1225_v62  ;;  %2209 = vmatpush.msra.mxu3 %v684_v63  ;;  %v1744_v7 = vadd.f32 %v1743_v4, %v3740_v47  ;;  %v1783_v8 = vpop.f32.mrf.mxu2  ;;  %v252_v62 = vld [vmem:[%s3342_s22 + $0xc0] sm:$0xff]  ;;  %v253_v63 = vld [vmem:[%s3342_s22 + $0xc8] sm:$0xff]  ;;  %v686_v4 = vld [vmem:[%s3342_s22 + $0xe50] sm:$0xff] }
 0x1a3   : > { %2231 = vmatpush.msra.mxu1 %v1188_v0  ;;  %2249 = vmatpush.msra.mxu2 %v685_v1  ;;  %v1784_v11 = vadd.f32 %v1783_v8, %v3740_v47  ;;  %v722_v0 = vld [vmem:[%s3342_s22 + $0xf70] sm:$0xff]  ;;  %v1191_v8 = vld [vmem:[%s3342_s22 + $0x1e18] sm:$0xff] }
 0x1a4   : > { %2271 = vmatpush.msra.mxu0 %v1189_v2  ;;  %2210 = vmatpush.msra.mxu3 %v648_v3  ;;  %v1763_v14 = vpop.f32.mrf.mxu1  ;;  %v1226_v1 = vld [vmem:[%s3342_s22 + $0x1f30] sm:$0xff]  ;;  %v723_v2 = vld [vmem:[%s3342_s22 + $0xf78] sm:$0xff] }
 0x1a5   : > { %2232 = vmatpush.msra.mxu1 %v1152_v5  ;;  %2250 = vmatpush.msra.mxu2 %v649_v6  ;;  %v1764_v17 = vadd.f32 %v1763_v14, %v1744_v7  ;;  %v1803_v18 = vpop.f32.mrf.mxu0  ;;  %v1227_v3 = vld [vmem:[%s3342_s22 + $0x1f38] sm:$0xff]  ;;  %v1190_v5 = vld [vmem:[%s3342_s22 + $0x1e10] sm:$0xff] }
 0x1a6   : > { %2272 = vmatpush.msra.mxu0 %v1153_v9  ;;  %2211 = vmatpush.msra.mxu3 %v612_v10  ;;  %v1804_v22 = vadd.f32 %v1803_v18, %v1784_v11  ;;  %v687_v6 = vld [vmem:[%s3342_s22 + $0xe58] sm:$0xff]  ;;  %v650_v9 = vld [vmem:[%s3342_s22 + $0xd30] sm:$0xff] }
 0x1a7   : > { %2233 = vmatpush.msra.mxu1 %v1116_v12  ;;  %2251 = vmatpush.msra.mxu2 %v613_v13  ;;  %v2698_v40 = vmax.f32 %v1764_v17, 0.0  ;;  %v1154_v13 = vld [vmem:[%s3342_s22 + $0x1cf0] sm:$0xff]  ;;  %v651_v14 = vld [vmem:[%s3342_s22 + $0xd38] sm:$0xff] }
 0x1a8   : > { %2273 = vmatpush.msra.mxu0 %v1117_v15  ;;  %2212 = vmatpush.msra.mxu3 %v576_v16  ;;  %v2699_v27 = vmax.f32 %v1804_v22, 0.0  ;;  %v1155_v17 = vld [vmem:[%s3342_s22 + $0x1cf8] sm:$0xff]  ;;  %v614_v18 = vld [vmem:[%s3342_s22 + $0xc10] sm:$0xff] }
 0x1a9   : > { %2234 = vmatpush.msra.mxu1 %v1080_v19  ;;  %2252 = vmatpush.msra.mxu2 %v577_v21  ;;  %2734 = vst [vmem:[%s3761_s26 + $0x60] sm:$0xff] %v2698_v40  ;;  %v1118_v21 = vld [vmem:[%s3342_s22 + $0x1bd0] sm:$0xff]  ;;  %v615_v22 = vld [vmem:[%s3342_s22 + $0xc18] sm:$0xff] }
 0x1aa   : > { %2274 = vmatpush.msra.mxu0 %v1081_v23  ;;  %2213 = vmatpush.msra.mxu3 %v540_v24  ;;  %2735 = vst [vmem:[%s3761_s26 + $0x68] sm:$0xff] %v2699_v27  ;;  %v1119_v24 = vld [vmem:[%s3342_s22 + $0x1bd8] sm:$0xff]  ;;  %v578_v40 = vld [vmem:[%s3342_s22 + $0xaf0] sm:$0xff] }
 0x1ab   : > { %2235 = vmatpush.msra.mxu1 %v1044_v25  ;;  %2253 = vmatpush.msra.mxu2 %v541_v26  ;;  %v1082_v26 = vld [vmem:[%s3342_s22 + $0x1ab0] sm:$0xff]  ;;  %v579_v27 = vld [vmem:[%s3342_s22 + $0xaf8] sm:$0xff] }
 0x1ac   : > { %2275 = vmatpush.msra.mxu0 %v1045_v29  ;;  %2214 = vmatpush.msra.mxu3 %v504_v30  ;;  %v1083_v30 = vld [vmem:[%s3342_s22 + $0x1ab8] sm:$0xff] }
 0x1ad   : > { %2236 = vmatpush.msra.mxu1 %v1008_v31  ;;  %2254 = vmatpush.msra.mxu2 %v505_v32  ;;  %v542_v31 = vld [vmem:[%s3342_s22 + $0x9d0] sm:$0xff] }
 0x1ae   : > { %2276 = vmatpush.msra.mxu0 %v1009_v33  ;;  %2215 = vmatpush.msra.mxu3 %v468_v34  ;;  %v1046_v32 = vld [vmem:[%s3342_s22 + $0x1990] sm:$0xff]  ;;  %v543_v33 = vld [vmem:[%s3342_s22 + $0x9d8] sm:$0xff] }
 0x1af   : > { %2237 = vmatpush.msra.mxu1 %v972_v35  ;;  %2255 = vmatpush.msra.mxu2 %v469_v36  ;;  %v1047_v34 = vld [vmem:[%s3342_s22 + $0x1998] sm:$0xff]  ;;  %v506_v35 = vld [vmem:[%s3342_s22 + $0x8b0] sm:$0xff] }
 0x1b0   : > { %2277 = vmatpush.msra.mxu0 %v973_v37  ;;  %2216 = vmatpush.msra.mxu3 %v432_v38  ;;  %v1010_v36 = vld [vmem:[%s3342_s22 + $0x1870] sm:$0xff]  ;;  %v507_v37 = vld [vmem:[%s3342_s22 + $0x8b8] sm:$0xff] }
 0x1b1   : > { %2238 = vmatpush.msra.mxu1 %v936_v41  ;;  %2256 = vmatpush.msra.mxu2 %v433_v44  ;;  %v1011_v38 = vld [vmem:[%s3342_s22 + $0x1878] sm:$0xff]  ;;  %v470_v41 = vld [vmem:[%s3342_s22 + $0x790] sm:$0xff] }
 0x1b2   : > { %2278 = vmatpush.msra.mxu0 %v937_v42  ;;  %2217 = vmatpush.msra.mxu3 %v396_v43  ;;  %v974_v44 = vld [vmem:[%s3342_s22 + $0x1750] sm:$0xff]  ;;  %v471_v42 = vld [vmem:[%s3342_s22 + $0x798] sm:$0xff] }
 0x1b3   : > { %2239 = vmatpush.msra.mxu1 %v900_v28  ;;  %2257 = vmatpush.msra.mxu2 %v397_v45  ;;  %v975_v43 = vld [vmem:[%s3342_s22 + $0x1758] sm:$0xff]  ;;  %v434_v28 = vld [vmem:[%s3342_s22 + $0x670] sm:$0xff] }
 0x1b4   : > { %2279 = vmatpush.msra.mxu0 %v901_v46  ;;  %2906 = vmatmul.msk.f32.vlgmr.msrb.gmra.mxu3 %vm1242_vm0, %v4047_v39  ;;  %v938_v45 = vld [vmem:[%s3342_s22 + $0x1630] sm:$0xff]  ;;  %v435_v46 = vld [vmem:[%s3342_s22 + $0x678] sm:$0xff] }
 0x1b5   : > { %2907 = vmatmul.msk.f32.vlgmr.msrb.gmra.mxu2 %vm1242_vm0, %v4047_v39  ;;  %2218 = vmatpush.msra.mxu3 %v360_v48  ;;  %v939_v48 = vld [vmem:[%s3342_s22 + $0x1638] sm:$0xff] }
 0x1b6   : > { %2240 = vmatpush.msra.mxu1 %v864_v50  ;;  %2258 = vmatpush.msra.mxu2 %v361_v51  ;;  %v398_v50 = vld [vmem:[%s3342_s22 + $0x550] sm:$0xff] }
 0x1b7   : > { %2280 = vmatpush.msra.mxu0 %v865_v52  ;;  %2219 = vmatpush.msra.mxu3 %v324_v53  ;;  %v902_v51 = vld [vmem:[%s3342_s22 + $0x1510] sm:$0xff]  ;;  %v399_v52 = vld [vmem:[%s3342_s22 + $0x558] sm:$0xff] }
 0x1b8   : > { %2241 = vmatpush.msra.mxu1 %v828_v54  ;;  %2259 = vmatpush.msra.mxu2 %v325_v55  ;;  %v903_v53 = vld [vmem:[%s3342_s22 + $0x1518] sm:$0xff]  ;;  %v362_v54 = vld [vmem:[%s3342_s22 + $0x430] sm:$0xff] }
 0x1b9   : > { %2281 = vmatpush.msra.mxu0 %v829_v56  ;;  %2142 = vmatmul.f32.vlgmr.msrb.gmra.mxu1 %v4061_v49  ;;  %v866_v55 = vld [vmem:[%s3342_s22 + $0x13f0] sm:$0xff]  ;;  %v363_v56 = vld [vmem:[%s3342_s22 + $0x438] sm:$0xff] }
 0x1ba   : > { %2182 = vmatmul.f32.vlgmr.msrb.gmra.mxu0 %v4061_v49  ;;  %2286 = vmatpush.msrb.mxu1 %v794_v57  ;;  %v867_v57 = vld [vmem:[%s3342_s22 + $0x13f8] sm:$0xff] }
 0x1bb   : > { %2326 = vmatpush.msrb.mxu0 %v795_v58  ;;  %2220 = vmatpush.msra.mxu3 %v288_v59  ;;  %v326_v58 = vld [vmem:[%s3342_s22 + $0x310] sm:$0xff] }
 0x1bc   : > { %2260 = vmatpush.msra.mxu2 %v289_v60  ;;  %2287 = vmatpush.msrb.mxu1 %v758_v61  ;;  %v830_v59 = vld [vmem:[%s3342_s22 + $0x12d0] sm:$0xff]  ;;  %v327_v60 = vld [vmem:[%s3342_s22 + $0x318] sm:$0xff] }
 0x1bd   : > { %2327 = vmatpush.msrb.mxu0 %v759_v20  ;;  %2221 = vmatpush.msra.mxu3 %v252_v62  ;;  %v831_v61 = vld [vmem:[%s3342_s22 + $0x12d8] sm:$0xff]  ;;  %v796_v20 = vld [vmem:[%s3342_s22 + $0x11c0] sm:$0xff]  ;;  %v797_v62 = vld [vmem:[%s3342_s22 + $0x11c8] sm:$0xff] }
 0x1be   : > { %2261 = vmatpush.msra.mxu2 %v253_v63  ;;  %2288 = vmatpush.msrb.mxu1 %v722_v0  ;;  %v1823_v7 = vpop.f32.mrf.mxu1  ;;  %v290_v63 = vld [vmem:[%s3342_s22 + $0x1f0] sm:$0xff]  ;;  %v760_v0 = vld [vmem:[%s3342_s22 + $0x10a0] sm:$0xff] }
 0x1bf   : > { %2310 = vmatpush.msrb.mxu3 %v1226_v1  ;;  %2328 = vmatpush.msrb.mxu0 %v723_v2  ;;  %v1824_v10 = vadd.f32 %v1823_v7, %v3740_v47  ;;  %v1863_v11 = vpop.f32.mrf.mxu0  ;;  %v1843_v12 = vpop.f32.mrf.mxu3  ;;  %v761_v1 = vld [vmem:[%s3342_s22 + $0x10a8] sm:$0xff]  ;;  %v254_v2 = vld [vmem:[%s3342_s22 + $0xd0] sm:$0xff] }
 0x1c0   : > { %2350 = vmatpush.msrb.mxu2 %v1227_v3  ;;  %2289 = vmatpush.msrb.mxu1 %v686_v4  ;;  %v1864_v15 = vadd.f32 %v1863_v11, %v3740_v47  ;;  %v1883_v16 = vpop.f32.mrf.mxu2  ;;  %v255_v3 = vld [vmem:[%s3342_s22 + $0xd8] sm:$0xff]  ;;  %v724_v4 = vld [vmem:[%s3342_s22 + $0xf80] sm:$0xff]  ;;  %v1229_v7 = vld [vmem:[%s3342_s22 + $0x1f48] sm:$0xff] }
 0x1c1   : > { %2311 = vmatpush.msrb.mxu3 %v1190_v5  ;;  %2329 = vmatpush.msrb.mxu0 %v687_v6  ;;  %v1844_v19 = vadd.f32 %v1843_v12, %v1824_v10  ;;  %v1228_v5 = vld [vmem:[%s3342_s22 + $0x1f40] sm:$0xff]  ;;  %v725_v6 = vld [vmem:[%s3342_s22 + $0xf88] sm:$0xff] }
 0x1c2   : > { %2351 = vmatpush.msrb.mxu2 %v1191_v8  ;;  %2290 = vmatpush.msrb.mxu1 %v650_v9  ;;  %v1884_v23 = vadd.f32 %v1883_v16, %v1864_v15  ;;  %v688_v8 = vld [vmem:[%s3342_s22 + $0xe60] sm:$0xff]  ;;  %v689_v10 = vld [vmem:[%s3342_s22 + $0xe68] sm:$0xff] }
 0x1c3   : > { %2312 = vmatpush.msrb.mxu3 %v1154_v13  ;;  %2330 = vmatpush.msrb.mxu0 %v651_v14  ;;  %v2700_v25 = vmax.f32 %v1844_v19, 0.0  ;;  %v1192_v9 = vld [vmem:[%s3342_s22 + $0x1e20] sm:$0xff]  ;;  %v1193_v11 = vld [vmem:[%s3342_s22 + $0x1e28] sm:$0xff] }
 0x1c4   : > { %2352 = vmatpush.msrb.mxu2 %v1155_v17  ;;  %2291 = vmatpush.msrb.mxu1 %v614_v18  ;;  %v2701_v29 = vmax.f32 %v1884_v23, 0.0  ;;  %v652_v12 = vld [vmem:[%s3342_s22 + $0xd40] sm:$0xff]  ;;  %v653_v15 = vld [vmem:[%s3342_s22 + $0xd48] sm:$0xff] }
 0x1c5   : > { %2313 = vmatpush.msrb.mxu3 %v1118_v21  ;;  %2331 = vmatpush.msrb.mxu0 %v615_v22  ;;  %2736 = vst [vmem:[%s3761_s26 + $0x70] sm:$0xff] %v2700_v25  ;;  %v1156_v14 = vld [vmem:[%s3342_s22 + $0x1d00] sm:$0xff]  ;;  %v1157_v17 = vld [vmem:[%s3342_s22 + $0x1d08] sm:$0xff] }
 0x1c6   : > { %2353 = vmatpush.msrb.mxu2 %v1119_v24  ;;  %2292 = vmatpush.msrb.mxu1 %v578_v40  ;;  %2737 = vst [vmem:[%s3761_s26 + $0x78] sm:$0xff] %v2701_v29  ;;  %v616_v18 = vld [vmem:[%s3342_s22 + $0xc20] sm:$0xff]  ;;  %v617_v22 = vld [vmem:[%s3342_s22 + $0xc28] sm:$0xff] }
 0x1c7   : > { %2314 = vmatpush.msrb.mxu3 %v1082_v26  ;;  %2332 = vmatpush.msrb.mxu0 %v579_v27  ;;  %v1120_v21 = vld [vmem:[%s3342_s22 + $0x1be0] sm:$0xff]  ;;  %v1121_v24 = vld [vmem:[%s3342_s22 + $0x1be8] sm:$0xff] }
 0x1c8   : > { %2354 = vmatpush.msrb.mxu2 %v1083_v30  ;;  %2293 = vmatpush.msrb.mxu1 %v542_v31  ;;  %v580_v40 = vld [vmem:[%s3342_s22 + $0xb00] sm:$0xff]  ;;  %v581_v29 = vld [vmem:[%s3342_s22 + $0xb08] sm:$0xff] }
 0x1c9   : > { %2315 = vmatpush.msrb.mxu3 %v1046_v32  ;;  %2333 = vmatpush.msrb.mxu0 %v543_v33  ;;  %v1084_v27 = vld [vmem:[%s3342_s22 + $0x1ac0] sm:$0xff]  ;;  %v1085_v31 = vld [vmem:[%s3342_s22 + $0x1ac8] sm:$0xff] }
 0x1ca   : > { %2355 = vmatpush.msrb.mxu2 %v1047_v34  ;;  %2294 = vmatpush.msrb.mxu1 %v506_v35  ;;  %v544_v32 = vld [vmem:[%s3342_s22 + $0x9e0] sm:$0xff]  ;;  %v545_v35 = vld [vmem:[%s3342_s22 + $0x9e8] sm:$0xff] }
 0x1cb   : > { %2316 = vmatpush.msrb.mxu3 %v1010_v36  ;;  %2334 = vmatpush.msrb.mxu0 %v507_v37  ;;  %v1048_v34 = vld [vmem:[%s3342_s22 + $0x19a0] sm:$0xff]  ;;  %v1049_v37 = vld [vmem:[%s3342_s22 + $0x19a8] sm:$0xff] }
 0x1cc   : > { %2356 = vmatpush.msrb.mxu2 %v1011_v38  ;;  %2295 = vmatpush.msrb.mxu1 %v470_v41  ;;  %v508_v38 = vld [vmem:[%s3342_s22 + $0x8c0] sm:$0xff] }
 0x1cd   : > { %2317 = vmatpush.msrb.mxu3 %v974_v44  ;;  %2335 = vmatpush.msrb.mxu0 %v471_v42  ;;  %v1012_v41 = vld [vmem:[%s3342_s22 + $0x1880] sm:$0xff]  ;;  %v509_v44 = vld [vmem:[%s3342_s22 + $0x8c8] sm:$0xff] }
 0x1ce   : > { %2357 = vmatpush.msrb.mxu2 %v975_v43  ;;  %2296 = vmatpush.msrb.mxu1 %v434_v28  ;;  %v1013_v42 = vld [vmem:[%s3342_s22 + $0x1888] sm:$0xff]  ;;  %v472_v43 = vld [vmem:[%s3342_s22 + $0x7a0] sm:$0xff] }
 0x1cf   : > { %2318 = vmatpush.msrb.mxu3 %v938_v45  ;;  %2336 = vmatpush.msrb.mxu0 %v435_v46  ;;  %v976_v28 = vld [vmem:[%s3342_s22 + $0x1760] sm:$0xff]  ;;  %v473_v45 = vld [vmem:[%s3342_s22 + $0x7a8] sm:$0xff] }
 0x1d0   : > { %2358 = vmatpush.msrb.mxu2 %v939_v48  ;;  %2297 = vmatpush.msrb.mxu1 %v398_v50  ;;  %v977_v46 = vld [vmem:[%s3342_s22 + $0x1768] sm:$0xff]  ;;  %v436_v48 = vld [vmem:[%s3342_s22 + $0x680] sm:$0xff] }
 0x1d1   : > { %2319 = vmatpush.msrb.mxu3 %v902_v51  ;;  %2337 = vmatpush.msrb.mxu0 %v399_v52  ;;  %v940_v50 = vld [vmem:[%s3342_s22 + $0x1640] sm:$0xff]  ;;  %v437_v51 = vld [vmem:[%s3342_s22 + $0x688] sm:$0xff] }
 0x1d2   : > { %2359 = vmatpush.msrb.mxu2 %v903_v53  ;;  %2222 = vmatmul.f32.vlgmr.msra.gmra.mxu3 %v4061_v49  ;;  %v941_v52 = vld [vmem:[%s3342_s22 + $0x1648] sm:$0xff]  ;;  %v400_v53 = vld [vmem:[%s3342_s22 + $0x560] sm:$0xff] }
 0x1d3   : > { %2262 = vmatmul.f32.vlgmr.msra.gmra.mxu2 %v4061_v49  ;;  %2298 = vmatpush.msrb.mxu1 %v362_v54  ;;  %v291_v49 = vld [vmem:[%s3342_s22 + $0x1f8] sm:$0xff]  ;;  %v904_v54 = vld [vmem:[%s3342_s22 + $0x1520] sm:$0xff] }
 0x1d4   : > { %2320 = vmatpush.msrb.mxu3 %v866_v55  ;;  %2338 = vmatpush.msrb.mxu0 %v363_v56  ;;  %v401_v55 = vld [vmem:[%s3342_s22 + $0x568] sm:$0xff] }
 0x1d5   : > { %2360 = vmatpush.msrb.mxu2 %v867_v57  ;;  %2299 = vmatpush.msrb.mxu1 %v326_v58  ;;  %v905_v56 = vld [vmem:[%s3342_s22 + $0x1528] sm:$0xff]  ;;  %v364_v57 = vld [vmem:[%s3342_s22 + $0x440] sm:$0xff] }
 0x1d6   : > { %2321 = vmatpush.msrb.mxu3 %v830_v59  ;;  %2339 = vmatpush.msrb.mxu0 %v327_v60  ;;  %v868_v58 = vld [vmem:[%s3342_s22 + $0x1400] sm:$0xff]  ;;  %v365_v59 = vld [vmem:[%s3342_s22 + $0x448] sm:$0xff]  ;;  %v4315_v60 = vld [vmem:[#allocation2 + $0x8] sm:$0xff] }
 0x1d7   : > { %2361 = vmatpush.msrb.mxu2 %v831_v61  ;;  %2300 = vmatpush.msrb.mxu1 %v290_v63  ;;  %v869_v61 = vld [vmem:[%s3342_s22 + $0x1408] sm:$0xff] }
 0x1d8   : > { %2366 = vmatpush.msra.mxu3 %v796_v20  ;;  %2340 = vmatpush.msrb.mxu0 %v291_v49  ;;  %v328_v20 = vld [vmem:[%s3342_s22 + $0x320] sm:$0xff]  ;;  %v329_v63 = vld [vmem:[%s3342_s22 + $0x328] sm:$0xff] }
 0x1d9   : > { %2406 = vmatpush.msra.mxu2 %v797_v62  ;;  %2301 = vmatpush.msrb.mxu1 %v254_v2  ;;  %v832_v62 = vld [vmem:[%s3342_s22 + $0x12e0] sm:$0xff]  ;;  %v833_v49 = vld [vmem:[%s3342_s22 + $0x12e8] sm:$0xff] }
 0x1da   : > { %2367 = vmatpush.msra.mxu3 %v760_v0  ;;  %2341 = vmatpush.msrb.mxu0 %v255_v3  ;;  %v798_v0 = vld [vmem:[%s3342_s22 + $0x11d0] sm:$0xff]  ;;  %v292_v2 = vld [vmem:[%s3342_s22 + $0x200] sm:$0xff] }
 0x1db   : > { %2407 = vmatpush.msra.mxu2 %v761_v1  ;;  %2908 = vmatmul.msk.f32.vlgmr.msra.gmra.mxu1 %vm1242_vm0, %v4047_v39  ;;  %v799_v1 = vld [vmem:[%s3342_s22 + $0x11d8] sm:$0xff]  ;;  %v4329_v3 = vld [vmem:[#allocation2] sm:$0xff] }
 0x1dc   : > { %2909 = vmatmul.msk.f32.vlgmr.msra.gmra.mxu0 %vm1242_vm0, %v4047_v39  ;;  %2368 = vmatpush.msra.mxu3 %v724_v4  ;;  %v293_v4 = vld [vmem:[%s3342_s22 + $0x208] sm:$0xff] }
 0x1dd   : > { %2390 = vmatpush.msra.mxu1 %v1228_v5  ;;  %2408 = vmatpush.msra.mxu2 %v725_v6  ;;  %v1903_v13 = vpop.f32.mrf.mxu3  ;;  %v762_v5 = vld [vmem:[%s3342_s22 + $0x10b0] sm:$0xff]  ;;  %v763_v6 = vld [vmem:[%s3342_s22 + $0x10b8] sm:$0xff] }
 0x1de   : > { %2430 = vmatpush.msra.mxu0 %v1229_v7  ;;  %2369 = vmatpush.msra.mxu3 %v688_v8  ;;  %v1904_v39 = vadd.f32 %v1903_v13, %v3740_v47  ;;  %v1943_v16 = vpop.f32.mrf.mxu2  ;;  %v256_v7 = vld [vmem:[%s3342_s22 + $0xe0] sm:$0xff]  ;;  %v257_v8 = vld [vmem:[%s3342_s22 + $0xe8] sm:$0xff]  ;;  %v690_v13 = vld [vmem:[%s3342_s22 + $0xe70] sm:$0xff] }
 0x1df   : > { %2391 = vmatpush.msra.mxu1 %v1192_v9  ;;  %2409 = vmatpush.msra.mxu2 %v689_v10  ;;  %v1944_v19 = vadd.f32 %v1943_v16, %v3740_v47  ;;  %v726_v9 = vld [vmem:[%s3342_s22 + $0xf90] sm:$0xff]  ;;  %v1195_v16 = vld [vmem:[%s3342_s22 + $0x1e38] sm:$0xff] }
 0x1e0   : > { %2431 = vmatpush.msra.mxu0 %v1193_v11  ;;  %2370 = vmatpush.msra.mxu3 %v652_v12  ;;  %v1923_v23 = vpop.f32.mrf.mxu1  ;;  %v1230_v10 = vld [vmem:[%s3342_s22 + $0x1f50] sm:$0xff]  ;;  %v727_v11 = vld [vmem:[%s3342_s22 + $0xf98] sm:$0xff] }
 0x1e1   : > { %2392 = vmatpush.msra.mxu1 %v1156_v14  ;;  %2410 = vmatpush.msra.mxu2 %v653_v15  ;;  %v1924_v25 = vadd.f32 %v1923_v23, %v1904_v39  ;;  %v1963_v26 = vpop.f32.mrf.mxu0  ;;  %v1231_v12 = vld [vmem:[%s3342_s22 + $0x1f58] sm:$0xff]  ;;  %v1194_v14 = vld [vmem:[%s3342_s22 + $0x1e30] sm:$0xff] }
 0x1e2   : > { %2432 = vmatpush.msra.mxu0 %v1157_v17  ;;  %2371 = vmatpush.msra.mxu3 %v616_v18  ;;  %v1964_v30 = vadd.f32 %v1963_v26, %v1944_v19  ;;  %v691_v15 = vld [vmem:[%s3342_s22 + $0xe78] sm:$0xff]  ;;  %v654_v17 = vld [vmem:[%s3342_s22 + $0xd50] sm:$0xff] }
 0x1e3   : > { %2393 = vmatpush.msra.mxu1 %v1120_v21  ;;  %2411 = vmatpush.msra.mxu2 %v617_v22  ;;  %v2702_v33 = vmax.f32 %v1924_v25, 0.0  ;;  %v1158_v22 = vld [vmem:[%s3342_s22 + $0x1d10] sm:$0xff]  ;;  %v655_v23 = vld [vmem:[%s3342_s22 + $0xd58] sm:$0xff] }
 0x1e4   : > { %2433 = vmatpush.msra.mxu0 %v1121_v24  ;;  %2372 = vmatpush.msra.mxu3 %v580_v40  ;;  %v2703_v36 = vmax.f32 %v1964_v30, 0.0  ;;  %v1159_v25 = vld [vmem:[%s3342_s22 + $0x1d18] sm:$0xff]  ;;  %v618_v26 = vld [vmem:[%s3342_s22 + $0xc30] sm:$0xff] }
 0x1e5   : > { %2394 = vmatpush.msra.mxu1 %v1084_v27  ;;  %2412 = vmatpush.msra.mxu2 %v581_v29  ;;  %2738 = vst [vmem:[%s3761_s26 + $0x80] sm:$0xff] %v2702_v33  ;;  %v1122_v29 = vld [vmem:[%s3342_s22 + $0x1bf0] sm:$0xff]  ;;  %v619_v30 = vld [vmem:[%s3342_s22 + $0xc38] sm:$0xff] }
 0x1e6   : > { %2434 = vmatpush.msra.mxu0 %v1085_v31  ;;  %2373 = vmatpush.msra.mxu3 %v544_v32  ;;  %2739 = vst [vmem:[%s3761_s26 + $0x88] sm:$0xff] %v2703_v36  ;;  %v1123_v32 = vld [vmem:[%s3342_s22 + $0x1bf8] sm:$0xff]  ;;  %v582_v33 = vld [vmem:[%s3342_s22 + $0xb10] sm:$0xff] }
 0x1e7   : > { %2395 = vmatpush.msra.mxu1 %v1048_v34  ;;  %2413 = vmatpush.msra.mxu2 %v545_v35  ;;  %v1086_v35 = vld [vmem:[%s3342_s22 + $0x1ad0] sm:$0xff]  ;;  %v583_v36 = vld [vmem:[%s3342_s22 + $0xb18] sm:$0xff] }
 0x1e8   : > { %2435 = vmatpush.msra.mxu0 %v1049_v37  ;;  %2374 = vmatpush.msra.mxu3 %v508_v38  ;;  %v1087_v38 = vld [vmem:[%s3342_s22 + $0x1ad8] sm:$0xff] }
 0x1e9   : > { %2396 = vmatpush.msra.mxu1 %v1012_v41  ;;  %2414 = vmatpush.msra.mxu2 %v509_v44  ;;  %v546_v41 = vld [vmem:[%s3342_s22 + $0x9f0] sm:$0xff] }
 0x1ea   : > { %2436 = vmatpush.msra.mxu0 %v1013_v42  ;;  %2375 = vmatpush.msra.mxu3 %v472_v43  ;;  %v1050_v44 = vld [vmem:[%s3342_s22 + $0x19b0] sm:$0xff]  ;;  %v547_v42 = vld [vmem:[%s3342_s22 + $0x9f8] sm:$0xff] }
 0x1eb   : > { %2397 = vmatpush.msra.mxu1 %v976_v28  ;;  %2415 = vmatpush.msra.mxu2 %v473_v45  ;;  %v1051_v43 = vld [vmem:[%s3342_s22 + $0x19b8] sm:$0xff]  ;;  %v510_v28 = vld [vmem:[%s3342_s22 + $0x8d0] sm:$0xff] }
 0x1ec   : > { %2437 = vmatpush.msra.mxu0 %v977_v46  ;;  %2376 = vmatpush.msra.mxu3 %v436_v48  ;;  %v1014_v45 = vld [vmem:[%s3342_s22 + $0x1890] sm:$0xff]  ;;  %v511_v46 = vld [vmem:[%s3342_s22 + $0x8d8] sm:$0xff] }
 0x1ed   : > { %2398 = vmatpush.msra.mxu1 %v940_v50  ;;  %2416 = vmatpush.msra.mxu2 %v437_v51  ;;  %v1015_v48 = vld [vmem:[%s3342_s22 + $0x1898] sm:$0xff]  ;;  %v474_v50 = vld [vmem:[%s3342_s22 + $0x7b0] sm:$0xff] }
 0x1ee   : > { %2438 = vmatpush.msra.mxu0 %v941_v52  ;;  %2377 = vmatpush.msra.mxu3 %v400_v53  ;;  %v978_v51 = vld [vmem:[%s3342_s22 + $0x1770] sm:$0xff]  ;;  %v475_v52 = vld [vmem:[%s3342_s22 + $0x7b8] sm:$0xff] }
 0x1ef   : > { %2399 = vmatpush.msra.mxu1 %v904_v54  ;;  %2417 = vmatpush.msra.mxu2 %v401_v55  ;;  %v979_v53 = vld [vmem:[%s3342_s22 + $0x1778] sm:$0xff]  ;;  %v438_v54 = vld [vmem:[%s3342_s22 + $0x690] sm:$0xff] }
 0x1f0   : > { %2439 = vmatpush.msra.mxu0 %v905_v56  ;;  %2910 = vmatmul.msk.f32.vlgmr.msrb.gmra.mxu3 %vm1242_vm0, %v4315_v60  ;;  %v942_v55 = vld [vmem:[%s3342_s22 + $0x1650] sm:$0xff]  ;;  %v439_v56 = vld [vmem:[%s3342_s22 + $0x698] sm:$0xff] }
 0x1f1   : > { %2911 = vmatmul.msk.f32.vlgmr.msrb.gmra.mxu2 %vm1242_vm0, %v4315_v60  ;;  %2378 = vmatpush.msra.mxu3 %v364_v57  ;;  %v943_v57 = vld [vmem:[%s3342_s22 + $0x1658] sm:$0xff] }
 0x1f2   : > { %2400 = vmatpush.msra.mxu1 %v868_v58  ;;  %2418 = vmatpush.msra.mxu2 %v365_v59  ;;  %v402_v58 = vld [vmem:[%s3342_s22 + $0x570] sm:$0xff] }
 0x1f3   : > { %2440 = vmatpush.msra.mxu0 %v869_v61  ;;  %2379 = vmatpush.msra.mxu3 %v328_v20  ;;  %v906_v59 = vld [vmem:[%s3342_s22 + $0x1530] sm:$0xff]  ;;  %v403_v61 = vld [vmem:[%s3342_s22 + $0x578] sm:$0xff] }
 0x1f4   : > { %2401 = vmatpush.msra.mxu1 %v832_v62  ;;  %2419 = vmatpush.msra.mxu2 %v329_v63  ;;  %v907_v20 = vld [vmem:[%s3342_s22 + $0x1538] sm:$0xff]  ;;  %v366_v62 = vld [vmem:[%s3342_s22 + $0x450] sm:$0xff] }
 0x1f5   : > { %2441 = vmatpush.msra.mxu0 %v833_v49  ;;  %2302 = vmatmul.f32.vlgmr.msrb.gmra.mxu1 %v4329_v3  ;;  %v870_v63 = vld [vmem:[%s3342_s22 + $0x1410] sm:$0xff]  ;;  %v367_v49 = vld [vmem:[%s3342_s22 + $0x458] sm:$0xff] }
 0x1f6   : > { %2342 = vmatmul.f32.vlgmr.msrb.gmra.mxu0 %v4329_v3  ;;  %2446 = vmatpush.msrb.mxu1 %v798_v0  ;;  %v871_v0 = vld [vmem:[%s3342_s22 + $0x1418] sm:$0xff] }
 0x1f7   : > { %2486 = vmatpush.msrb.mxu0 %v799_v1  ;;  %2380 = vmatpush.msra.mxu3 %v292_v2  ;;  %v330_v1 = vld [vmem:[%s3342_s22 + $0x330] sm:$0xff] }
 0x1f8   : > { %2420 = vmatpush.msra.mxu2 %v293_v4  ;;  %2447 = vmatpush.msrb.mxu1 %v762_v5  ;;  %v834_v2 = vld [vmem:[%s3342_s22 + $0x12f0] sm:$0xff]  ;;  %v331_v4 = vld [vmem:[%s3342_s22 + $0x338] sm:$0xff] }
 0x1f9   : > { %2487 = vmatpush.msrb.mxu0 %v763_v6  ;;  %2381 = vmatpush.msra.mxu3 %v256_v7  ;;  %v835_v5 = vld [vmem:[%s3342_s22 + $0x12f8] sm:$0xff]  ;;  %v800_v6 = vld [vmem:[%s3342_s22 + $0x11e0] sm:$0xff]  ;;  %v801_v7 = vld [vmem:[%s3342_s22 + $0x11e8] sm:$0xff] }
 0x1fa   : > { %2421 = vmatpush.msra.mxu2 %v257_v8  ;;  %2448 = vmatpush.msrb.mxu1 %v726_v9  ;;  %v1983_v39 = vpop.f32.mrf.mxu1  ;;  %v294_v8 = vld [vmem:[%s3342_s22 + $0x210] sm:$0xff]  ;;  %v295_v9 = vld [vmem:[%s3342_s22 + $0x218] sm:$0xff] }
 0x1fb   : > { %2470 = vmatpush.msrb.mxu3 %v1230_v10  ;;  %2488 = vmatpush.msrb.mxu0 %v727_v11  ;;  %v1984_v18 = vadd.f32 %v1983_v39, %v3740_v47  ;;  %v2023_v19 = vpop.f32.mrf.mxu0  ;;  %v2003_v21 = vpop.f32.mrf.mxu3  ;;  %v764_v10 = vld [vmem:[%s3342_s22 + $0x10c0] sm:$0xff]  ;;  %v765_v11 = vld [vmem:[%s3342_s22 + $0x10c8] sm:$0xff] }
 0x1fc   : > { %2510 = vmatpush.msrb.mxu2 %v1231_v12  ;;  %2449 = vmatpush.msrb.mxu1 %v690_v13  ;;  %v2024_v24 = vadd.f32 %v2023_v19, %v3740_v47  ;;  %v2043_v40 = vpop.f32.mrf.mxu2  ;;  %v258_v12 = vld [vmem:[%s3342_s22 + $0xf0] sm:$0xff]  ;;  %v259_v13 = vld [vmem:[%s3342_s22 + $0xf8] sm:$0xff]  ;;  %v729_v39 = vld [vmem:[%s3342_s22 + $0xfa8] sm:$0xff] }
 0x1fd   : > { %2471 = vmatpush.msrb.mxu3 %v1194_v14  ;;  %2489 = vmatpush.msrb.mxu0 %v691_v15  ;;  %v2004_v27 = vadd.f32 %v2003_v21, %v1984_v18  ;;  %v728_v14 = vld [vmem:[%s3342_s22 + $0xfa0] sm:$0xff]  ;;  %v693_v19 = vld [vmem:[%s3342_s22 + $0xe88] sm:$0xff] }
 0x1fe   : > { %2511 = vmatpush.msrb.mxu2 %v1195_v16  ;;  %2450 = vmatpush.msrb.mxu1 %v654_v17  ;;  %v2044_v31 = vadd.f32 %v2043_v40, %v2024_v24  ;;  %v1232_v15 = vld [vmem:[%s3342_s22 + $0x1f60] sm:$0xff]  ;;  %v1233_v16 = vld [vmem:[%s3342_s22 + $0x1f68] sm:$0xff] }
 0x1ff   : > { %2472 = vmatpush.msrb.mxu3 %v1158_v22  ;;  %2490 = vmatpush.msrb.mxu0 %v655_v23  ;;  %v2704_v34 = vmax.f32 %v2004_v27, 0.0  ;;  %v692_v17 = vld [vmem:[%s3342_s22 + $0xe80] sm:$0xff]  ;;  %v1197_v21 = vld [vmem:[%s3342_s22 + $0x1e48] sm:$0xff] }
 0x200   : > { %2512 = vmatpush.msrb.mxu2 %v1159_v25  ;;  %2451 = vmatpush.msrb.mxu1 %v618_v26  ;;  %v2705_v37 = vmax.f32 %v2044_v31, 0.0  ;;  %v1196_v18 = vld [vmem:[%s3342_s22 + $0x1e40] sm:$0xff]  ;;  %v657_v40 = vld [vmem:[%s3342_s22 + $0xd68] sm:$0xff] }
 0x201   : > { %2473 = vmatpush.msrb.mxu3 %v1122_v29  ;;  %2491 = vmatpush.msrb.mxu0 %v619_v30  ;;  %2740 = vst [vmem:[%s3761_s26 + $0x90] sm:$0xff] %v2704_v34  ;;  %v656_v22 = vld [vmem:[%s3342_s22 + $0xd60] sm:$0xff]  ;;  %v1161_v27 = vld [vmem:[%s3342_s22 + $0x1d28] sm:$0xff] }
 0x202   : > { %2513 = vmatpush.msrb.mxu2 %v1123_v32  ;;  %2452 = vmatpush.msrb.mxu1 %v582_v33  ;;  %2741 = vst [vmem:[%s3761_s26 + $0x98] sm:$0xff] %v2705_v37  ;;  %v1160_v24 = vld [vmem:[%s3342_s22 + $0x1d20] sm:$0xff]  ;;  %v621_v32 = vld [vmem:[%s3342_s22 + $0xc48] sm:$0xff] }
 0x203   : > { %2474 = vmatpush.msrb.mxu3 %v1086_v35  ;;  %2492 = vmatpush.msrb.mxu0 %v583_v36  ;;  %v620_v29 = vld [vmem:[%s3342_s22 + $0xc40] sm:$0xff]  ;;  %v1125_v34 = vld [vmem:[%s3342_s22 + $0x1c08] sm:$0xff] }
 0x204   : > { %2514 = vmatpush.msrb.mxu2 %v1087_v38  ;;  %2453 = vmatpush.msrb.mxu1 %v546_v41  ;;  %v1124_v31 = vld [vmem:[%s3342_s22 + $0x1c00] sm:$0xff]  ;;  %v585_v41 = vld [vmem:[%s3342_s22 + $0xb28] sm:$0xff] }
 0x205   : > { %2475 = vmatpush.msrb.mxu3 %v1050_v44  ;;  %2493 = vmatpush.msrb.mxu0 %v547_v42  ;;  %v584_v35 = vld [vmem:[%s3342_s22 + $0xb20] sm:$0xff]  ;;  %v1089_v42 = vld [vmem:[%s3342_s22 + $0x1ae8] sm:$0xff] }
 0x206   : > { %2515 = vmatpush.msrb.mxu2 %v1051_v43  ;;  %2454 = vmatpush.msrb.mxu1 %v510_v28  ;;  %v1088_v38 = vld [vmem:[%s3342_s22 + $0x1ae0] sm:$0xff] }
 0x207   : > { %2476 = vmatpush.msrb.mxu3 %v1014_v45  ;;  %2494 = vmatpush.msrb.mxu0 %v511_v46  ;;  %v548_v43 = vld [vmem:[%s3342_s22 + $0xa00] sm:$0xff]  ;;  %v549_v46 = vld [vmem:[%s3342_s22 + $0xa08] sm:$0xff] }
 0x208   : > { %2516 = vmatpush.msrb.mxu2 %v1015_v48  ;;  %2455 = vmatpush.msrb.mxu1 %v474_v50  ;;  %v1052_v45 = vld [vmem:[%s3342_s22 + $0x19c0] sm:$0xff]  ;;  %v1053_v50 = vld [vmem:[%s3342_s22 + $0x19c8] sm:$0xff] }
 0x209   : > { %2477 = vmatpush.msrb.mxu3 %v978_v51  ;;  %2495 = vmatpush.msrb.mxu0 %v475_v52  ;;  %v512_v51 = vld [vmem:[%s3342_s22 + $0x8e0] sm:$0xff] }
 0x20a   : > { %2517 = vmatpush.msrb.mxu2 %v979_v53  ;;  %2456 = vmatpush.msrb.mxu1 %v438_v54  ;;  %v1016_v52 = vld [vmem:[%s3342_s22 + $0x18a0] sm:$0xff]  ;;  %v513_v53 = vld [vmem:[%s3342_s22 + $0x8e8] sm:$0xff] }
 0x20b   : > { %2478 = vmatpush.msrb.mxu3 %v942_v55  ;;  %2496 = vmatpush.msrb.mxu0 %v439_v56  ;;  %v1017_v54 = vld [vmem:[%s3342_s22 + $0x18a8] sm:$0xff]  ;;  %v476_v55 = vld [vmem:[%s3342_s22 + $0x7c0] sm:$0xff] }
 0x20c   : > { %2518 = vmatpush.msrb.mxu2 %v943_v57  ;;  %2457 = vmatpush.msrb.mxu1 %v402_v58  ;;  %v980_v56 = vld [vmem:[%s3342_s22 + $0x1780] sm:$0xff]  ;;  %v477_v57 = vld [vmem:[%s3342_s22 + $0x7c8] sm:$0xff] }
 0x20d   : > { %2479 = vmatpush.msrb.mxu3 %v906_v59  ;;  %2497 = vmatpush.msrb.mxu0 %v403_v61  ;;  %v981_v58 = vld [vmem:[%s3342_s22 + $0x1788] sm:$0xff]  ;;  %v440_v59 = vld [vmem:[%s3342_s22 + $0x6a0] sm:$0xff] }
 0x20e   : > { %2519 = vmatpush.msrb.mxu2 %v907_v20  ;;  %2382 = vmatmul.f32.vlgmr.msra.gmra.mxu3 %v4329_v3  ;;  %v944_v61 = vld [vmem:[%s3342_s22 + $0x1660] sm:$0xff]  ;;  %v441_v20 = vld [vmem:[%s3342_s22 + $0x6a8] sm:$0xff] }
 0x20f   : > { %2422 = vmatmul.f32.vlgmr.msra.gmra.mxu2 %v4329_v3  ;;  %2458 = vmatpush.msrb.mxu1 %v366_v62  ;;  %v945_v62 = vld [vmem:[%s3342_s22 + $0x1668] sm:$0xff] }
 0x210   : > { %2480 = vmatpush.msrb.mxu3 %v870_v63  ;;  %2498 = vmatpush.msrb.mxu0 %v367_v49  ;;  %v404_v63 = vld [vmem:[%s3342_s22 + $0x580] sm:$0xff] }
 0x211   : > { %2520 = vmatpush.msrb.mxu2 %v871_v0  ;;  %2459 = vmatpush.msrb.mxu1 %v330_v1  ;;  %v908_v49 = vld [vmem:[%s3342_s22 + $0x1540] sm:$0xff]  ;;  %v405_v0 = vld [vmem:[%s3342_s22 + $0x588] sm:$0xff] }
 0x212   : > { %2481 = vmatpush.msrb.mxu3 %v834_v2  ;;  %2499 = vmatpush.msrb.mxu0 %v331_v4  ;;  %v909_v1 = vld [vmem:[%s3342_s22 + $0x1548] sm:$0xff]  ;;  %v368_v2 = vld [vmem:[%s3342_s22 + $0x460] sm:$0xff] }
 0x213   : > { %2521 = vmatpush.msrb.mxu2 %v835_v5  ;;  %2460 = vmatpush.msrb.mxu1 %v294_v8  ;;  %v872_v4 = vld [vmem:[%s3342_s22 + $0x1420] sm:$0xff]  ;;  %v369_v5 = vld [vmem:[%s3342_s22 + $0x468] sm:$0xff] }
 0x214   : > { %2526 = vmatpush.msra.mxu3 %v800_v6  ;;  %2500 = vmatpush.msrb.mxu0 %v295_v9  ;;  %v873_v6 = vld [vmem:[%s3342_s22 + $0x1428] sm:$0xff]  ;;  %v836_v8 = vld [vmem:[%s3342_s22 + $0x1300] sm:$0xff] }
 0x215   : > { %2566 = vmatpush.msra.mxu2 %v801_v7  ;;  %2461 = vmatpush.msrb.mxu1 %v258_v12  ;;  %v332_v7 = vld [vmem:[%s3342_s22 + $0x340] sm:$0xff]  ;;  %v333_v9 = vld [vmem:[%s3342_s22 + $0x348] sm:$0xff]  ;;  %v803_v12 = vld [vmem:[%s3342_s22 + $0x11f8] sm:$0xff] }
 0x216   : > { %2527 = vmatpush.msra.mxu3 %v764_v10  ;;  %2501 = vmatpush.msrb.mxu0 %v259_v13  ;;  %v837_v10 = vld [vmem:[%s3342_s22 + $0x1308] sm:$0xff]  ;;  %v296_v13 = vld [vmem:[%s3342_s22 + $0x220] sm:$0xff] }
 0x217   : > { %2567 = vmatpush.msra.mxu2 %v765_v11  ;;  %2912 = vmatmul.msk.f32.vlgmr.msra.gmra.mxu1 %vm1242_vm0, %v4315_v60  ;;  %v802_v11 = vld [vmem:[%s3342_s22 + $0x11f0] sm:$0xff] }
 0x218   : > { %2913 = vmatmul.msk.f32.vlgmr.msra.gmra.mxu0 %vm1242_vm0, %v4315_v60  ;;  %2528 = vmatpush.msra.mxu3 %v728_v14  ;;  %v297_v14 = vld [vmem:[%s3342_s22 + $0x228] sm:$0xff] }
 0x219   : > { %2550 = vmatpush.msra.mxu1 %v1232_v15  ;;  %2568 = vmatpush.msra.mxu2 %v729_v39  ;;  %v2063_v23 = vpop.f32.mrf.mxu3  ;;  %v766_v15 = vld [vmem:[%s3342_s22 + $0x10d0] sm:$0xff]  ;;  %v767_v39 = vld [vmem:[%s3342_s22 + $0x10d8] sm:$0xff] }
 0x21a   : > { %2590 = vmatpush.msra.mxu0 %v1233_v16  ;;  %2529 = vmatpush.msra.mxu3 %v692_v17  ;;  %v2064_v25 = vadd.f32 %v2063_v23, %v3740_v47  ;;  %v2103_v26 = vpop.f32.mrf.mxu2  ;;  %v260_v16 = vld [vmem:[%s3342_s22 + $0x100] sm:$0xff]  ;;  %v261_v17 = vld [vmem:[%s3342_s22 + $0x108] sm:$0xff]  ;;  %v694_v23 = vld [vmem:[%s3342_s22 + $0xe90] sm:$0xff] }
 0x21b   : > { %2551 = vmatpush.msra.mxu1 %v1196_v18  ;;  %2569 = vmatpush.msra.mxu2 %v693_v19  ;;  %v2104_v30 = vadd.f32 %v2103_v26, %v3740_v47  ;;  %v730_v18 = vld [vmem:[%s3342_s22 + $0xfb0] sm:$0xff]  ;;  %v1199_v26 = vld [vmem:[%s3342_s22 + $0x1e58] sm:$0xff] }
 0x21c   : > { %2591 = vmatpush.msra.mxu0 %v1197_v21  ;;  %2530 = vmatpush.msra.mxu3 %v656_v22  ;;  %v2083_v33 = vpop.f32.mrf.mxu1  ;;  %v1234_v19 = vld [vmem:[%s3342_s22 + $0x1f70] sm:$0xff]  ;;  %v731_v21 = vld [vmem:[%s3342_s22 + $0xfb8] sm:$0xff] }
 0x21d   : > { %2552 = vmatpush.msra.mxu1 %v1160_v24  ;;  %2570 = vmatpush.msra.mxu2 %v657_v40  ;;  %v2084_v36 = vadd.f32 %v2083_v33, %v2064_v25  ;;  %v2123_v37 = vpop.f32.mrf.mxu0  ;;  %v1235_v22 = vld [vmem:[%s3342_s22 + $0x1f78] sm:$0xff]  ;;  %v1198_v24 = vld [vmem:[%s3342_s22 + $0x1e50] sm:$0xff] }
 0x21e   : > { %2592 = vmatpush.msra.mxu0 %v1161_v27  ;;  %2531 = vmatpush.msra.mxu3 %v620_v29  ;;  %v2124_v44 = vadd.f32 %v2123_v37, %v2104_v30  ;;  %v695_v40 = vld [vmem:[%s3342_s22 + $0xe98] sm:$0xff]  ;;  %v658_v27 = vld [vmem:[%s3342_s22 + $0xd70] sm:$0xff] }
 0x21f   : > { %2553 = vmatpush.msra.mxu1 %v1124_v31  ;;  %2571 = vmatpush.msra.mxu2 %v621_v32  ;;  %v2706_v28 = vmax.f32 %v2084_v36, 0.0  ;;  %v1162_v32 = vld [vmem:[%s3342_s22 + $0x1d30] sm:$0xff]  ;;  %v659_v33 = vld [vmem:[%s3342_s22 + $0xd78] sm:$0xff] }
 0x220   : > { %2593 = vmatpush.msra.mxu0 %v1125_v34  ;;  %2532 = vmatpush.msra.mxu3 %v584_v35  ;;  %v2707_v48 = vmax.f32 %v2124_v44, 0.0  ;;  %v1163_v36 = vld [vmem:[%s3342_s22 + $0x1d38] sm:$0xff]  ;;  %v622_v37 = vld [vmem:[%s3342_s22 + $0xc50] sm:$0xff] }
 0x221   : > { %2554 = vmatpush.msra.mxu1 %v1088_v38  ;;  %2572 = vmatpush.msra.mxu2 %v585_v41  ;;  %2742 = vst [vmem:[%s3761_s26 + $0xa0] sm:$0xff] %v2706_v28  ;;  %v1126_v41 = vld [vmem:[%s3342_s22 + $0x1c10] sm:$0xff]  ;;  %v623_v44 = vld [vmem:[%s3342_s22 + $0xc58] sm:$0xff] }
 0x222   : > { %2594 = vmatpush.msra.mxu0 %v1089_v42  ;;  %2533 = vmatpush.msra.mxu3 %v548_v43  ;;  %2743 = vst [vmem:[%s3761_s26 + $0xa8] sm:$0xff] %v2707_v48  ;;  %v1127_v43 = vld [vmem:[%s3342_s22 + $0x1c18] sm:$0xff]  ;;  %v586_v28 = vld [vmem:[%s3342_s22 + $0xb30] sm:$0xff] }
 0x223   : > { %2555 = vmatpush.msra.mxu1 %v1052_v45  ;;  %2573 = vmatpush.msra.mxu2 %v549_v46  ;;  %v1090_v46 = vld [vmem:[%s3342_s22 + $0x1af0] sm:$0xff]  ;;  %v587_v48 = vld [vmem:[%s3342_s22 + $0xb38] sm:$0xff] }
 0x224   : > { %2595 = vmatpush.msra.mxu0 %v1053_v50  ;;  %2534 = vmatpush.msra.mxu3 %v512_v51  ;;  %v1091_v51 = vld [vmem:[%s3342_s22 + $0x1af8] sm:$0xff] }
 0x225   : > { %2556 = vmatpush.msra.mxu1 %v1016_v52  ;;  %2574 = vmatpush.msra.mxu2 %v513_v53  ;;  %v550_v52 = vld [vmem:[%s3342_s22 + $0xa10] sm:$0xff] }
 0x226   : > { %2596 = vmatpush.msra.mxu0 %v1017_v54  ;;  %2535 = vmatpush.msra.mxu3 %v476_v55  ;;  %v1054_v53 = vld [vmem:[%s3342_s22 + $0x19d0] sm:$0xff]  ;;  %v551_v54 = vld [vmem:[%s3342_s22 + $0xa18] sm:$0xff] }
 0x227   : > { %2557 = vmatpush.msra.mxu1 %v980_v56  ;;  %2575 = vmatpush.msra.mxu2 %v477_v57  ;;  %v1055_v55 = vld [vmem:[%s3342_s22 + $0x19d8] sm:$0xff]  ;;  %v514_v56 = vld [vmem:[%s3342_s22 + $0x8f0] sm:$0xff] }
 0x228   : > { %2597 = vmatpush.msra.mxu0 %v981_v58  ;;  %2536 = vmatpush.msra.mxu3 %v440_v59  ;;  %v1018_v57 = vld [vmem:[%s3342_s22 + $0x18b0] sm:$0xff]  ;;  %v515_v58 = vld [vmem:[%s3342_s22 + $0x8f8] sm:$0xff] }
 0x229   : > { %2558 = vmatpush.msra.mxu1 %v944_v61  ;;  %2576 = vmatpush.msra.mxu2 %v441_v20  ;;  %v1019_v59 = vld [vmem:[%s3342_s22 + $0x18b8] sm:$0xff]  ;;  %v478_v61 = vld [vmem:[%s3342_s22 + $0x7d0] sm:$0xff] }
 0x22a   : > { %2598 = vmatpush.msra.mxu0 %v945_v62  ;;  %2537 = vmatpush.msra.mxu3 %v404_v63  ;;  %v982_v20 = vld [vmem:[%s3342_s22 + $0x1790] sm:$0xff]  ;;  %v479_v62 = vld [vmem:[%s3342_s22 + $0x7d8] sm:$0xff] }
 0x22b   : > { %2559 = vmatpush.msra.mxu1 %v908_v49  ;;  %2577 = vmatpush.msra.mxu2 %v405_v0  ;;  %v983_v63 = vld [vmem:[%s3342_s22 + $0x1798] sm:$0xff]  ;;  %v442_v49 = vld [vmem:[%s3342_s22 + $0x6b0] sm:$0xff] }
 0x22c   : > { %2599 = vmatpush.msra.mxu0 %v909_v1  ;;  %2914 = vmatmul.msk.f32.vlgmr.msrb.gmra.mxu3 %vm1242_vm0, %v4315_v60  ;;  %v946_v0 = vld [vmem:[%s3342_s22 + $0x1670] sm:$0xff]  ;;  %v443_v1 = vld [vmem:[%s3342_s22 + $0x6b8] sm:$0xff] }
 0x22d   : > { %2915 = vmatmul.msk.f32.vlgmr.msrb.gmra.mxu2 %vm1242_vm0, %v4315_v60  ;;  %2538 = vmatpush.msra.mxu3 %v368_v2  ;;  %v947_v2 = vld [vmem:[%s3342_s22 + $0x1678] sm:$0xff] }
 0x22e   : > { %2560 = vmatpush.msra.mxu1 %v872_v4  ;;  %2578 = vmatpush.msra.mxu2 %v369_v5  ;;  %v406_v4 = vld [vmem:[%s3342_s22 + $0x590] sm:$0xff] }
 0x22f   : > { %2600 = vmatpush.msra.mxu0 %v873_v6  ;;  %2539 = vmatpush.msra.mxu3 %v332_v7  ;;  %v910_v5 = vld [vmem:[%s3342_s22 + $0x1550] sm:$0xff]  ;;  %v407_v6 = vld [vmem:[%s3342_s22 + $0x598] sm:$0xff] }
 0x230   : > { %2561 = vmatpush.msra.mxu1 %v836_v8  ;;  %2579 = vmatpush.msra.mxu2 %v333_v9  ;;  %v911_v7 = vld [vmem:[%s3342_s22 + $0x1558] sm:$0xff]  ;;  %v370_v8 = vld [vmem:[%s3342_s22 + $0x470] sm:$0xff] }
 0x231   : > { %2601 = vmatpush.msra.mxu0 %v837_v10  ;;  %2462 = vmatmul.f32.vlgmr.msrb.gmra.mxu1 %v4329_v3  ;;  %v874_v9 = vld [vmem:[%s3342_s22 + $0x1430] sm:$0xff]  ;;  %v371_v10 = vld [vmem:[%s3342_s22 + $0x478] sm:$0xff] }
 0x232   : > { %2502 = vmatmul.f32.vlgmr.msrb.gmra.mxu0 %v4329_v3  ;;  %2606 = vmatpush.msrb.mxu1 %v802_v11  ;;  %v875_v11 = vld [vmem:[%s3342_s22 + $0x1438] sm:$0xff] }
 0x233   : > { %2646 = vmatpush.msrb.mxu0 %v803_v12  ;;  %2540 = vmatpush.msra.mxu3 %v296_v13  ;;  %v334_v12 = vld [vmem:[%s3342_s22 + $0x350] sm:$0xff] }
 0x234   : > { %2580 = vmatpush.msra.mxu2 %v297_v14  ;;  %2607 = vmatpush.msrb.mxu1 %v766_v15  ;;  %v838_v13 = vld [vmem:[%s3342_s22 + $0x1310] sm:$0xff]  ;;  %v335_v14 = vld [vmem:[%s3342_s22 + $0x358] sm:$0xff] }
 0x235   : > { %2647 = vmatpush.msrb.mxu0 %v767_v39  ;;  %2541 = vmatpush.msra.mxu3 %v260_v16  ;;  %v839_v15 = vld [vmem:[%s3342_s22 + $0x1318] sm:$0xff]  ;;  %v298_v39 = vld [vmem:[%s3342_s22 + $0x230] sm:$0xff] }
 0x236   : > { %2581 = vmatpush.msra.mxu2 %v261_v17  ;;  %2608 = vmatpush.msrb.mxu1 %v730_v18  ;;  %v2143_v25 = vpop.f32.mrf.mxu1  ;;  %v299_v16 = vld [vmem:[%s3342_s22 + $0x238] sm:$0xff]  ;;  %v262_v17 = vld [vmem:[%s3342_s22 + $0x110] sm:$0xff] }
 0x237   : > { %2630 = vmatpush.msrb.mxu3 %v1234_v19  ;;  %2648 = vmatpush.msrb.mxu0 %v731_v21  ;;  %v2144_v29 = vadd.f32 %v2143_v25, %v3740_v47  ;;  %v2183_v30 = vpop.f32.mrf.mxu0  ;;  %v2163_v31 = vpop.f32.mrf.mxu3  ;;  %v263_v18 = vld [vmem:[%s3342_s22 + $0x118] sm:$0xff] }
 0x238   : > { %2670 = vmatpush.msrb.mxu2 %v1235_v22  ;;  %2609 = vmatpush.msrb.mxu1 %v694_v23  ;;  %v2184_v34 = vadd.f32 %v2183_v30, %v3740_v47  ;;  %v2203_v35 = vpop.f32.mrf.mxu2 }
 0x239   : > { %2631 = vmatpush.msrb.mxu3 %v1198_v24  ;;  %2649 = vmatpush.msrb.mxu0 %v695_v40  ;;  %v2164_v38 = vadd.f32 %v2163_v31, %v2144_v29 }
 0x23a   : > { %2671 = vmatpush.msrb.mxu2 %v1199_v26  ;;  %2610 = vmatpush.msrb.mxu1 %v658_v27  ;;  %v2204_v42 = vadd.f32 %v2203_v35, %v2184_v34 }
 0x23b   : > { %2632 = vmatpush.msrb.mxu3 %v1162_v32  ;;  %2650 = vmatpush.msrb.mxu0 %v659_v33  ;;  %v2708_v45 = vmax.f32 %v2164_v38, 0.0 }
 0x23c   : > { %2672 = vmatpush.msrb.mxu2 %v1163_v36  ;;  %2611 = vmatpush.msrb.mxu1 %v622_v37  ;;  %v2709_v50 = vmax.f32 %v2204_v42, 0.0 }
 0x23d   : > { %2633 = vmatpush.msrb.mxu3 %v1126_v41  ;;  %2651 = vmatpush.msrb.mxu0 %v623_v44  ;;  %2744 = vst [vmem:[%s3761_s26 + $0xb0] sm:$0xff] %v2708_v45 }
 0x23e   : > { %2673 = vmatpush.msrb.mxu2 %v1127_v43  ;;  %2612 = vmatpush.msrb.mxu1 %v586_v28  ;;  %2745 = vst [vmem:[%s3761_s26 + $0xb8] sm:$0xff] %v2709_v50 }
 0x23f   : > { %2634 = vmatpush.msrb.mxu3 %v1090_v46  ;;  %2652 = vmatpush.msrb.mxu0 %v587_v48 }
 0x240   : > { %2674 = vmatpush.msrb.mxu2 %v1091_v51  ;;  %2613 = vmatpush.msrb.mxu1 %v550_v52 }
 0x241   : > { %2635 = vmatpush.msrb.mxu3 %v1054_v53  ;;  %2653 = vmatpush.msrb.mxu0 %v551_v54 }
 0x242   : > { %2675 = vmatpush.msrb.mxu2 %v1055_v55  ;;  %2542 = vmatmul.f32.vlgmr.msra.gmra.mxu3 %v4329_v3 }
 0x243   : > { %2582 = vmatmul.f32.vlgmr.msra.gmra.mxu2 %v4329_v3  ;;  %2614 = vmatpush.msrb.mxu1 %v514_v56 }
 0x244   : > { %2636 = vmatpush.msrb.mxu3 %v1018_v57  ;;  %2654 = vmatpush.msrb.mxu0 %v515_v58 }
 0x245   : > { %2676 = vmatpush.msrb.mxu2 %v1019_v59  ;;  %2615 = vmatpush.msrb.mxu1 %v478_v61 }
 0x246   : > { %2637 = vmatpush.msrb.mxu3 %v982_v20  ;;  %2655 = vmatpush.msrb.mxu0 %v479_v62 }
 0x247   : > { %2677 = vmatpush.msrb.mxu2 %v983_v63  ;;  %2616 = vmatpush.msrb.mxu1 %v442_v49 }
 0x248   : > { %2638 = vmatpush.msrb.mxu3 %v946_v0  ;;  %2656 = vmatpush.msrb.mxu0 %v443_v1 }
 0x249   : > { %2678 = vmatpush.msrb.mxu2 %v947_v2  ;;  %2617 = vmatpush.msrb.mxu1 %v406_v4 }
 0x24a   : > { %2639 = vmatpush.msrb.mxu3 %v910_v5  ;;  %2657 = vmatpush.msrb.mxu0 %v407_v6 }
 0x24b   : > { %2679 = vmatpush.msrb.mxu2 %v911_v7  ;;  %2916 = vmatmul.msk.f32.vlgmr.msra.gmra.mxu1 %vm1242_vm0, %v4315_v60 }
 0x24c   : > { %2917 = vmatmul.msk.f32.vlgmr.msra.gmra.mxu0 %vm1242_vm0, %v4315_v60  ;;  %2618 = vmatpush.msrb.mxu1 %v370_v8 }
 0x24d   : > { %2640 = vmatpush.msrb.mxu3 %v874_v9  ;;  %2658 = vmatpush.msrb.mxu0 %v371_v10 }
 0x24e   : > { %2680 = vmatpush.msrb.mxu2 %v875_v11  ;;  %2619 = vmatpush.msrb.mxu1 %v334_v12 }
 0x24f   : > { %2641 = vmatpush.msrb.mxu3 %v838_v13  ;;  %2659 = vmatpush.msrb.mxu0 %v335_v14 }
 0x250   : > { %2681 = vmatpush.msrb.mxu2 %v839_v15  ;;  %2918 = vmatmul.msk.f32.vlgmr.msrb.gmra.mxu3 %vm1242_vm0, %v4315_v60 }
 0x251   : > { %2919 = vmatmul.msk.f32.vlgmr.msrb.gmra.mxu2 %vm1242_vm0, %v4315_v60  ;;  %2620 = vmatpush.msrb.mxu1 %v298_v39 }
 0x252   : > { %2660 = vmatpush.msrb.mxu0 %v299_v16 }
 0x253   : > { %2621 = vmatpush.msrb.mxu1 %v262_v17 }
 0x254   : > { %2661 = vmatpush.msrb.mxu0 %v263_v18  ;;  %2622 = vmatmul.f32.vlgmr.msrb.gmra.mxu1 %v4329_v3 }
 0x255   : > { %2662 = vmatmul.f32.vlgmr.msrb.gmra.mxu0 %v4329_v3  ;;  %v2223_v19 = vpop.f32.mrf.mxu3 }
 0x256   : > { %v2224_v21 = vadd.f32 %v2223_v19, %v3740_v47  ;;  %v2263_v22 = vpop.f32.mrf.mxu2 }
 0x257   : > { %v2264_v23 = vadd.f32 %v2263_v22, %v3740_v47 }
 0x258   : > { %v2243_v24 = vpop.f32.mrf.mxu1 }
 0x259   : > { %v2244_v40 = vadd.f32 %v2243_v24, %v2224_v21  ;;  %v2283_v60 = vpop.f32.mrf.mxu0 }
 0x25a   : > { %v2284_v25 = vadd.f32 %v2283_v60, %v2264_v23 }
 0x25b   : > { %v2710_v26 = vmax.f32 %v2244_v40, 0.0 }
 0x25c   : > { %v2711_v27 = vmax.f32 %v2284_v25, 0.0 }
 0x25d   : > { %2746 = vst [vmem:[%s3761_s26 + $0xc0] sm:$0xff] %v2710_v26 }
 0x25e   : > { %2747 = vst [vmem:[%s3761_s26 + $0xc8] sm:$0xff] %v2711_v27 }
 0x272   : > { %v2303_v29 = vpop.f32.mrf.mxu1 }
 0x273   : > { %v2304_v30 = vadd.f32 %v2303_v29, %v3740_v47  ;;  %v2343_v3 = vpop.f32.mrf.mxu0  ;;  %v2323_v31 = vpop.f32.mrf.mxu3 }
 0x274   : > { %v2344_v32 = vadd.f32 %v2343_v3, %v3740_v47  ;;  %v2363_v33 = vpop.f32.mrf.mxu2 }
 0x275   : > { %v2324_v34 = vadd.f32 %v2323_v31, %v2304_v30 }
 0x276   : > { %v2364_v35 = vadd.f32 %v2363_v33, %v2344_v32 }
 0x277   : > { %v2712_v36 = vmax.f32 %v2324_v34, 0.0 }
 0x278   : > { %v2713_v37 = vmax.f32 %v2364_v35, 0.0 }
 0x279   : > { %2748 = vst [vmem:[%s3761_s26 + $0xd0] sm:$0xff] %v2712_v36 }
 0x27a   : > { %2749 = vst [vmem:[%s3761_s26 + $0xd8] sm:$0xff] %v2713_v37 }
 0x291   : > { %v2383_v38 = vpop.f32.mrf.mxu3 }
 0x292   : > { %v2384_v41 = vadd.f32 %v2383_v38, %v3740_v47  ;;  %v2423_v44 = vpop.f32.mrf.mxu2 }
 0x293   : > { %v2424_v42 = vadd.f32 %v2423_v44, %v3740_v47 }
 0x294   : > { %v2403_v43 = vpop.f32.mrf.mxu1 }
 0x295   : > { %v2404_v28 = vadd.f32 %v2403_v43, %v2384_v41  ;;  %v2443_v45 = vpop.f32.mrf.mxu0 }
 0x296   : > { %v2444_v46 = vadd.f32 %v2443_v45, %v2424_v42 }
 0x297   : > { %v2714_v48 = vmax.f32 %v2404_v28, 0.0 }
 0x298   : > { %v2715_v50 = vmax.f32 %v2444_v46, 0.0 }
 0x299   : > { %2750 = vst [vmem:[%s3761_s26 + $0xe0] sm:$0xff] %v2714_v48 }
 0x29a   : > { %2751 = vst [vmem:[%s3761_s26 + $0xe8] sm:$0xff] %v2715_v50 }
 0x2ae   : > { %v2463_v51 = vpop.f32.mrf.mxu1 }
 0x2af   : > { %v2464_v52 = vadd.f32 %v2463_v51, %v3740_v47  ;;  %v2503_v53 = vpop.f32.mrf.mxu0  ;;  %v2483_v54 = vpop.f32.mrf.mxu3 }
 0x2b0   : > { %v2504_v55 = vadd.f32 %v2503_v53, %v3740_v47  ;;  %v2523_v56 = vpop.f32.mrf.mxu2 }
 0x2b1   : > { %v2484_v57 = vadd.f32 %v2483_v54, %v2464_v52 }
 0x2b2   : > { %v2524_v58 = vadd.f32 %v2523_v56, %v2504_v55 }
 0x2b3   : > { %v2716_v59 = vmax.f32 %v2484_v57, 0.0 }
 0x2b4   : > { %v2717_v61 = vmax.f32 %v2524_v58, 0.0 }
 0x2b5   : > { %2752 = vst [vmem:[%s3761_s26 + $0xf0] sm:$0xff] %v2716_v59 }
 0x2b6   : > { %2753 = vst [vmem:[%s3761_s26 + $0xf8] sm:$0xff] %v2717_v61 }
 0x2c5   : > { %v2543_v20 = vpop.f32.mrf.mxu3 }
 0x2c6   : > { %v2544_v62 = vadd.f32 %v2543_v20, %v3740_v47  ;;  %v2583_v63 = vpop.f32.mrf.mxu2 }
 0x2c7   : > { %v2584_v49 = vadd.f32 %v2583_v63, %v3740_v47 }
 0x2c8   : > { %v2563_v0 = vpop.f32.mrf.mxu1 }
 0x2c9   : > { %v2564_v1 = vadd.f32 %v2563_v0, %v2544_v62  ;;  %v2603_v2 = vpop.f32.mrf.mxu0 }
 0x2ca   : > { %v2604_v4 = vadd.f32 %v2603_v2, %v2584_v49 }
 0x2cb   : > { %v2718_v5 = vmax.f32 %v2564_v1, 0.0 }
 0x2cc   : > { %v2719_v6 = vmax.f32 %v2604_v4, 0.0 }
 0x2cd   : > { %2754 = vst [vmem:[%s3761_s26 + $0x100] sm:$0xff] %v2718_v5 }
 0x2ce   : > { %2755 = vst [vmem:[%s3761_s26 + $0x108] sm:$0xff] %v2719_v6 }
 0x2d1   : > { %v2623_v7 = vpop.f32.mrf.mxu1 }
 0x2d2   : > { %v2624_v8 = vadd.f32 %v2623_v7, %v3740_v47  ;;  %v2663_v9 = vpop.f32.mrf.mxu0 }
 0x2d3   : > { %v2664_v10 = vadd.f32 %v2663_v9, %v3740_v47  ;;  %v2643_v11 = vpop.f32.mrf.mxu3 }
 0x2d4   : > { %v2644_v12 = vadd.f32 %v2643_v11, %v2624_v8  ;;  %v2683_v13 = vpop.f32.mrf.mxu2 }
 0x2d5   : > { %v2684_v14 = vadd.f32 %v2683_v13, %v2664_v10 }
 0x2d6   : > { %v2720_v15 = vmax.f32 %v2644_v12, 0.0 }
 0x2d7   : > { %v2721_v39 = vmax.f32 %v2684_v14, 0.0 }
 0x2d8   : > { %2756 = vst [vmem:[%s3761_s26 + $0x110] sm:$0xff] %v2720_v15 }
 0x2d9   : > { %2757 = vst [vmem:[%s3761_s26 + $0x118] sm:$0xff] %v2721_v39 }
 0x2da   : > { %3115 = shalt.err (!%p3112_p0)
}
 0x2db   : > { %2934 = dma.vmem_to_hbm [thread:$0]  (%p3279_p8), %s2775_s28, 4608, %s2777_s29, %s2759_s30  }
 0x2dc PF: > { %s4639_s0 = sld [smem:[#allocation13_spill]] }
 0x2dd   : > { %s4640_s3 = sld [smem:[#allocation11_spill]] }
 0x2e2   : > { %p2951_p1 = scmp.ge.s32.totalorder %s4639_s0, 2 }
 0x2e3   : > { %s2788_s25 = sand.u32 1, %s4640_s3  }
 0x2e4   : > { %p2945_p2 = pnand %p2951_p1, %p3283_p9  ;;  %s2789_s26 = scalar_lea.sflag [#allocation4], %s2788_s25 }
 0x2e6   : > { %p2946_p4 = pneg %p2945_p2 }
 0x2e8   : > { %3157 = dma.done.wait (%p2946_p4), %s2789_s26, 4608  }
 0x2e9   : > { %3159 = vsyncadd (%p2946_p4), %s2789_s26, 4294962688  ;;  %s20_s27 = sadd.s32 1, %s4639_s0   ;;  %s4642_s15 = sld [smem:[#allocation12_spill]] }
 0x2ea   : > { %p17_p6 = scmp.ge.s32.totalorder %s20_s27, 6   ;;  %s4643_s17 = sld [smem:[#allocation16_spill]] }
 0x2eb   : > { %s4644_s12 = smov %s3166_s13  ;;  %s4645_s13 = smov %s3170_s14 }
 0x2ec   : > { %s4646_s14 = smov %s3327_s19  ;;  %s4647_s16 = smov %s3186_s18 }
 0x2ed   : > { %s4648_s18 = smov %s4655_s9  ;;  %s4649_s19 = smov %s20_s27 }
 0x2ee   :  { %19 = sbr.rel (!%p17_p6) target bundleno = 11 (0xb), region = 82 }
 0x2f3   :  { %2795 = vsyncpa [#allocation3], 1 }
 0x2f4   :  { %2797 = vsyncpa [#allocation3 + $0x1], 1 }
 0x2f5   :  { %2798 = vsyncpa [#allocation6], 1 }
 0x2f6   :  { %2800 = vsyncpa [#allocation6 + $0x1], 1 }
 0x2f7   :  { %2801 = vsyncpa [#allocation4], 1 }
 0x2f8   :  { %2803 = vsyncpa [#allocation4 + $0x1], 1 }

</bundles_post_ra>
